<compile_context>
chip_gen: v7x
topology: tpu7x:2x2x1
jax: 0.10.0
libtpu: 0.0.40
codegen_flags: <defaults>
</compile_context>

<pallas_src>
import functools

import jax
import jax.numpy as jnp
from jax.experimental import pallas as pl
from jax.experimental.pallas import tpu as pltpu

LANE = 128


# ---------------------------------------------------------------------------
# Fused Bottleneck kernel (one grid step = one (batch, H-tile) output block)
# ---------------------------------------------------------------------------
def _bottleneck_kernel(x_ref, xt_ref, xb_ref, w1_ref, w2_ref, w3_ref,
                       b1_ref, b2_ref, b3_ref, out_ref, a1_ref):
    TH, W, Coutp = out_ref.shape          # output tile (TH, W, Coutp)
    Cinp = x_ref.shape[-1]                # padded input channels (== Coutp)
    Cwp = w1_ref.shape[1]                 # padded bottleneck width

    ht = pl.program_id(1)
    last_h = pl.num_programs(1) - 1

    w1 = w1_ref[...]                      # (Cinp,  Cwp)   bf16, BN1-scaled
    w3 = w3_ref[...]                      # (Cwp, Coutp)   bf16, BN3-scaled
    b1 = b1_ref[...]                      # (1, Cwp)  f32 folded BN bias
    b2 = b2_ref[...]
    b3 = b3_ref[...]                      # (1, Coutp)

    def conv1_bn_relu(rows_f32):          # (R, Cinp) f32 -> (R, Cwp) f32
        y = jnp.dot(rows_f32.astype(jnp.bfloat16), w1,
                    preferred_element_type=jnp.float32)
        return jnp.maximum(y + b1, 0.0)

    # ---- stage 1: conv1 (1x1) + bn1 + relu into a zero-padded VMEM scratch.
    # a1_ref holds rows [h0-1, h0+TH] x cols [-1, W] of the conv1 activation;
    # out-of-image rows/cols are zero -> conv2's "same" padding, in-kernel.
    zero_col = jnp.zeros((TH + 2, 1, Cwp), jnp.bfloat16)
    a1_ref[:, 0:1, :] = zero_col                  # left  W-pad column
    a1_ref[:, W + 1:W + 2, :] = zero_col          # right W-pad column

    x_main = x_ref[...]                           # (TH, W, Cinp) f32
    a_main = conv1_bn_relu(x_main.reshape(TH * W, Cinp))
    a1_ref[1:TH + 1, 1:W + 1, :] = (
        a_main.astype(jnp.bfloat16).reshape(TH, W, Cwp))

    # 1-row halo above / below the tile (fetched via clamped index maps;
    # masked to zero at the image border).
    top_ok = (ht > 0).astype(jnp.float32)
    a_top = conv1_bn_relu(xt_ref[...].reshape(W, Cinp)) * top_ok
    a1_ref[0:1, 1:W + 1, :] = a_top.astype(jnp.bfloat16).reshape(1, W, Cwp)

    bot_ok = (ht < last_h).astype(jnp.float32)
    a_bot = conv1_bn_relu(xb_ref[...].reshape(W, Cinp)) * bot_ok
    a1_ref[TH + 1:TH + 2, 1:W + 1, :] = (
        a_bot.astype(jnp.bfloat16).reshape(1, W, Cwp))

    # ---- stage 2: conv2 (3x3) + bn2 + relu as 9 accumulating MXU matmuls
    # on shifted views of the padded activation (no im2col scratch).
    acc = jnp.zeros((TH * W, Cwp), jnp.float32)
    for kh in range(3):
        for kw in range(3):
            tap = a1_ref[kh:kh + TH, kw:kw + W, :].reshape(TH * W, Cwp)
            wk = w2_ref[(kh * 3 + kw) * Cwp:(kh * 3 + kw + 1) * Cwp, :]
            acc = acc + jnp.dot(tap, wk, preferred_element_type=jnp.float32)
    a2 = jnp.maximum(acc + b2, 0.0).astype(jnp.bfloat16)         # (TH*W, Cwp)

    # ---- stage 3: conv3 (1x1) + bn3 + residual (reuse f32 input tile) + relu.
    y3 = jnp.dot(a2, w3, preferred_element_type=jnp.float32) + b3
    out = jnp.maximum(y3 + x_main.reshape(TH * W, Cinp), 0.0)    # Cinp == Coutp
    out_ref[...] = out.reshape(TH, W, Coutp).astype(out_ref.dtype)


# ---------------------------------------------------------------------------
# Wrapper helpers
# ---------------------------------------------------------------------------
def _round_up(x, m):
    return (x + m - 1) // m * m


def _fold_bn(gamma, beta, mean, var, eps=1e-5):
    scale = gamma / jnp.sqrt(var + eps)
    bias = beta - mean * scale
    return scale.astype(jnp.float32), bias.astype(jnp.float32)


def _vmem_limits():
    """(vmem_limit_bytes, tile_budget_bytes), sized per TPU generation."""
    try:
        cap = int(pltpu.get_tpu_info().vmem_capacity_bytes)
    except Exception:
        cap = 64 * 1024 * 1024            # conservative: v7x per-TC physical
    limit = min(int(cap * 0.6), 100 * 1024 * 1024)   # v7x ~38MiB, v5e/v6e ~76MiB
    limit = max(limit, 32 * 1024 * 1024)
    return limit, int(limit * 0.8)


def _tile_vmem_bytes(W, cinp, cwp, coutp, th):
    x_blk = 2 * th * W * cinp * 4                    # main input block (x2 buf)
    halos = 2 * 2 * W * cinp * 4                     # top + bottom 1-row halos
    out_blk = 2 * th * W * coutp * 4                 # output block (x2 buf)
    wts = 2 * (cinp * cwp + 9 * cwp * cwp + cwp * coutp) * 2   # bf16, x2 buf
    bias = 2 * 3 * 8 * max(cwp, coutp) * 4
    a1 = (th + 2) * (W + 2) * cwp * 2                # conv1 activation scratch
    # live f32/bf16 values: conv1 act, conv2 acc, y3/out, identity, a2 + tap
    live = th * W * (2 * cwp + coutp + cinp) * 4 + 2 * th * W * cwp * 2
    return x_blk + halos + out_blk + wts + bias + a1 + live


def _choose_tile_h(H, W, cinp, cwp, coutp, budget_bytes):
    divs = sorted((d for d in range(1, H + 1) if H % d == 0), reverse=True)
    fitting = [d for d in divs
               if _tile_vmem_bytes(W, cinp, cwp, coutp, d) <= budget_bytes]
    if not fitting:
        return 1
    aligned = [d for d in fitting if (d * W) % 128 == 0]   # MXU-friendly M
    return aligned[0] if aligned else fitting[0]


# ---------------------------------------------------------------------------
# Wrapper: layout / BN folding / channel padding / pallas_call
# ---------------------------------------------------------------------------
def bottleneck2d_forward(x_nchw, params, tile_h=None):
    """Bottleneck2d.forward. Input/output are NCHW (PyTorch convention)."""
    N, Cin, H, W = x_nchw.shape
    Cw = params["w1"].shape[0]            # width = planes (base_width=64, groups=1)
    Cout = params["w3"].shape[0]          # planes * expansion
    assert Cin == Cout, "identity path requires inplanes == planes * expansion"

    Cinp = _round_up(Cin, LANE)
    Cwp = _round_up(Cw, LANE)
    Coutp = _round_up(Cout, LANE)
    assert Cinp == Coutp

    # NHWC + channel zero-pad (one XLA layout pass; no-op pad at real widths).
    x_nhwc = jnp.transpose(x_nchw, (0, 2, 3, 1)).astype(jnp.float32)
    if Cinp != Cin:
        x_nhwc = jnp.pad(x_nhwc, ((0, 0), (0, 0), (0, 0), (0, Cinp - Cin)))

    # Fold BN: scale into weights (f32, before bf16 cast); bias stays separate.
    s1, b1 = _fold_bn(params["gamma1"], params["beta1"], params["mean1"], params["var1"])
    s2, b2 = _fold_bn(params["gamma2"], params["beta2"], params["mean2"], params["var2"])
    s3, b3 = _fold_bn(params["gamma3"], params["beta3"], params["mean3"], params["var3"])

    w1 = params["w1"][:, :, 0, 0].T * s1[None, :]                # (Cin, Cw)
    w1 = jnp.pad(w1, ((0, Cinp - Cin), (0, Cwp - Cw))).astype(jnp.bfloat16)

    w2 = jnp.transpose(params["w2"], (2, 3, 1, 0)) * s2[None, None, None, :]
    w2 = jnp.pad(w2, ((0, 0), (0, 0), (0, Cwp - Cw), (0, Cwp - Cw)))
    w2 = w2.reshape(9 * Cwp, Cwp).astype(jnp.bfloat16)           # (9*Cwp, Cwp)

    w3 = params["w3"][:, :, 0, 0].T * s3[None, :]                # (Cw, Cout)
    w3 = jnp.pad(w3, ((0, Cwp - Cw), (0, Coutp - Cout))).astype(jnp.bfloat16)

    b1p = jnp.pad(b1, (0, Cwp - Cw))[None, :]                    # (1, Cwp)
    b2p = jnp.pad(b2, (0, Cwp - Cw))[None, :]
    b3p = jnp.pad(b3, (0, Coutp - Cout))[None, :]                # (1, Coutp)

    vmem_limit, tile_budget = _vmem_limits()
    if tile_h is None:
        tile_h = _choose_tile_h(H, W, Cinp, Cwp, Coutp, tile_budget)
    assert H % tile_h == 0, "tile_h must divide H"
    n_h = H // tile_h

    flops = 2 * N * H * W * (Cinp * Cwp + 9 * Cwp * Cwp + Cwp * Coutp)
    bytes_accessed = (x_nhwc.size + N * H * W * Coutp) * 4 \
        + (w1.size + w2.size + w3.size) * 2 + (b1p.size + b2p.size + b3p.size) * 4

    out_nhwc = pl.pallas_call(
        _bottleneck_kernel,
        out_shape=jax.ShapeDtypeStruct((N, H, W, Coutp), jnp.float32),
        grid_spec=pltpu.PrefetchScalarGridSpec(
            num_scalar_prefetch=0,
            grid=(N, n_h),
            in_specs=[
                # main input tile (also the residual)
                pl.BlockSpec((None, tile_h, W, Cinp), lambda n, h: (n, h, 0, 0)),
                # 1-row halo above / below (row index clamped to the image)
                pl.BlockSpec((None, 1, W, Cinp),
                             lambda n, h: (n, jnp.maximum(h * tile_h - 1, 0), 0, 0)),
                pl.BlockSpec((None, 1, W, Cinp),
                             lambda n, h: (n, jnp.minimum(h * tile_h + tile_h, H - 1), 0, 0)),
                # BN-scaled weights (constant index -> fetched once / held)
                pl.BlockSpec((Cinp, Cwp), lambda n, h: (0, 0)),
                pl.BlockSpec((9 * Cwp, Cwp), lambda n, h: (0, 0)),
                pl.BlockSpec((Cwp, Coutp), lambda n, h: (0, 0)),
                # folded BN biases
                pl.BlockSpec((1, Cwp), lambda n, h: (0, 0)),
                pl.BlockSpec((1, Cwp), lambda n, h: (0, 0)),
                pl.BlockSpec((1, Coutp), lambda n, h: (0, 0)),
            ],
            out_specs=pl.BlockSpec((None, tile_h, W, Coutp),
                                   lambda n, h: (n, h, 0, 0)),
            scratch_shapes=[
                pltpu.VMEM((tile_h + 2, W + 2, Cwp), jnp.bfloat16),  # padded a1
            ],
        ),
        compiler_params=pltpu.CompilerParams(
            dimension_semantics=("parallel", "parallel"),
            vmem_limit_bytes=vmem_limit,
        ),
        cost_estimate=pl.CostEstimate(flops=flops, transcendentals=0,
                                      bytes_accessed=bytes_accessed),
    )(x_nhwc, x_nhwc, x_nhwc, w1, w2, w3, b1p, b2p, b3p)

    out_nhwc = out_nhwc[..., :Cout]
    return jnp.transpose(out_nhwc, (0, 3, 1, 2))   # back to NCHW


# ---------------------------------------------------------------------------
# Pure-JAX reference (for correctness check)
# ---------------------------------------------------------------------------
def _ref_forward(x, params, eps=1e-5):
    def conv(z, w, pad):
        return jax.lax.conv_general_dilated(
            z, w, window_strides=(1, 1), padding=((pad, pad), (pad, pad)),
            dimension_numbers=("NCHW", "OIHW", "NCHW"))

    def bn(z, g, b, m, v):
        s = g / jnp.sqrt(v + eps)
        return z * s[None, :, None, None] + (b - m * s)[None, :, None, None]

    out = jax.nn.relu(bn(conv(x, params["w1"], 0), params["gamma1"],
                         params["beta1"], params["mean1"], params["var1"]))
    out = jax.nn.relu(bn(conv(out, params["w2"], 1), params["gamma2"],
                         params["beta2"], params["mean2"], params["var2"]))
    out = bn(conv(out, params["w3"], 0), params["gamma3"],
             params["beta3"], params["mean3"], params["var3"])
    return jax.nn.relu(out + x)


# ---------------------------------------------------------------------------
if __name__ == "__main__":
    key = jax.random.PRNGKey(0)
    N, H, W = 2, 16, 16
    planes = 4
    width = planes                 # base_width=64, groups=1 -> width = planes
    cout = planes * 4              # expansion = 4
    cin = cout                     # identity path needs inplanes == planes*4

    ks = jax.random.split(key, 16)
    x = jax.random.normal(ks[0], (N, cin, H, W), jnp.float32)

    def bn_params(k, c):
        k1, k2, k3, k4 = jax.random.split(k, 4)
        return (1.0 + 0.1 * jax.random.normal(k1, (c,), jnp.float32),
                0.1 * jax.random.normal(k2, (c,), jnp.float32),
                0.1 * jax.random.normal(k3, (c,), jnp.float32),
                1.0 + 0.1 * jnp.abs(jax.random.normal(k4, (c,), jnp.float32)))

    g1, be1, m1, v1 = bn_params(ks[4], width)
    g2, be2, m2, v2 = bn_params(ks[5], width)
    g3, be3, m3, v3 = bn_params(ks[6], cout)

    params = {
        "w1": 0.1 * jax.random.normal(ks[1], (width, cin, 1, 1), jnp.float32),
        "w2": 0.1 * jax.random.normal(ks[2], (width, width, 3, 3), jnp.float32),
        "w3": 0.1 * jax.random.normal(ks[3], (cout, width, 1, 1), jnp.float32),
        "gamma1": g1, "beta1": be1, "mean1": m1, "var1": v1,
        "gamma2": g2, "beta2": be2, "mean2": m2, "var2": v2,
        "gamma3": g3, "beta3": be3, "mean3": m3, "var3": v3,
    }

    fwd = jax.jit(functools.partial(bottleneck2d_forward))
    out = jax.block_until_ready(fwd(x, params))

    ref = _ref_forward(x, params)
    assert out.shape == (N, cout, H, W)
    max_err = jnp.max(jnp.abs(out - ref))
    # bf16 MXU operands (with BN scale folded into bf16 weights) -> ~1e-2 level
    assert jnp.allclose(out, ref, atol=2e-2, rtol=2e-2), f"max err {max_err}"

    print("KERNEL_OK")
</pallas_src>

<mosaic_0001>
module attributes {stable_mosaic.version = 11 : i64} {
  func.func @_bottleneck_kernel(%arg0: i32, %arg1: i32, %arg2: memref<1x16x16x128xf32, #tpu.memory_space<vmem>>, %arg3: memref<1x1x16x128xf32, #tpu.memory_space<vmem>>, %arg4: memref<1x1x16x128xf32, #tpu.memory_space<vmem>>, %arg5: memref<128x128xbf16, #tpu.memory_space<vmem>>, %arg6: memref<1152x128xbf16, #tpu.memory_space<vmem>>, %arg7: memref<128x128xbf16, #tpu.memory_space<vmem>>, %arg8: memref<1x128xf32, #tpu.memory_space<vmem>>, %arg9: memref<1x128xf32, #tpu.memory_space<vmem>>, %arg10: memref<1x128xf32, #tpu.memory_space<vmem>>, %arg11: memref<1x16x16x128xf32, #tpu.memory_space<vmem>>, %arg12: memref<18x18x128xbf16, #tpu.memory_space<vmem>>) attributes {dimension_semantics = [#tpu.dimension_semantics<parallel>, #tpu.dimension_semantics<parallel>], iteration_bounds = array<i64: 2, 1>, scalar_prefetch = 0 : i64, scratch_operands = 1 : i64, tpu.core_type = #tpu.core_type<tc>, window_params = [{transform_indices = @transform_0, window_bounds = array<i64: 1, 16, 16, 128>}, {transform_indices = @transform_1, window_bounds = array<i64: 1, 1, 16, 128>}, {transform_indices = @transform_2, window_bounds = array<i64: 1, 1, 16, 128>}, {pipeline_mode = #tpu.pipeline_mode<synchronous>, transform_indices = @transform_3, window_bounds = array<i64: 128, 128>}, {pipeline_mode = #tpu.pipeline_mode<synchronous>, transform_indices = @transform_4, window_bounds = array<i64: 1152, 128>}, {pipeline_mode = #tpu.pipeline_mode<synchronous>, transform_indices = @transform_5, window_bounds = array<i64: 128, 128>}, {pipeline_mode = #tpu.pipeline_mode<synchronous>, transform_indices = @transform_6, window_bounds = array<i64: 1, 128>}, {pipeline_mode = #tpu.pipeline_mode<synchronous>, transform_indices = @transform_7, window_bounds = array<i64: 1, 128>}, {pipeline_mode = #tpu.pipeline_mode<synchronous>, transform_indices = @transform_8, window_bounds = array<i64: 1, 128>}, {transform_indices = @transform_9, window_bounds = array<i64: 1, 16, 16, 128>}]} {
    %c0 = arith.constant 0 : index
    %c0_0 = arith.constant 0 : index
    %0 = vector.load %arg5[%c0, %c0_0] : memref<128x128xbf16, #tpu.memory_space<vmem>>, vector<128x128xbf16>
    %c0_1 = arith.constant 0 : index
    %c0_2 = arith.constant 0 : index
    %1 = vector.load %arg7[%c0_1, %c0_2] : memref<128x128xbf16, #tpu.memory_space<vmem>>, vector<128x128xbf16>
    %c0_3 = arith.constant 0 : index
    %c0_4 = arith.constant 0 : index
    %2 = vector.load %arg8[%c0_3, %c0_4] : memref<1x128xf32, #tpu.memory_space<vmem>>, vector<1x128xf32>
    %c0_5 = arith.constant 0 : index
    %c0_6 = arith.constant 0 : index
    %3 = vector.load %arg9[%c0_5, %c0_6] : memref<1x128xf32, #tpu.memory_space<vmem>>, vector<1x128xf32>
    %c0_7 = arith.constant 0 : index
    %c0_8 = arith.constant 0 : index
    %4 = vector.load %arg10[%c0_7, %c0_8] : memref<1x128xf32, #tpu.memory_space<vmem>>, vector<1x128xf32>
    %cst = arith.constant 0.000000e+00 : bf16
    %5 = vector.broadcast %cst : bf16 to vector<18x1x128xbf16>
    %c0_9 = arith.constant 0 : index
    %c0_10 = arith.constant 0 : index
    %c0_11 = arith.constant 0 : index
    %6 = vector.load %arg12[%c0_9, %c0_10, %c0_11] : memref<18x18x128xbf16, #tpu.memory_space<vmem>>, vector<18x1x128xbf16>
    tpu.vector_store %arg12[%c0_9, %c0_10, %c0_11], %5 {strides = array<i32>} : memref<18x18x128xbf16, #tpu.memory_space<vmem>>, vector<18x1x128xbf16>,
    %c0_12 = arith.constant 0 : index
    %c17 = arith.constant 17 : index
    %c0_13 = arith.constant 0 : index
    %7 = vector.load %arg12[%c0_12, %c17, %c0_13] : memref<18x18x128xbf16, #tpu.memory_space<vmem>>, vector<18x1x128xbf16>
    tpu.vector_store %arg12[%c0_12, %c17, %c0_13], %5 {strides = array<i32>} : memref<18x18x128xbf16, #tpu.memory_space<vmem>>, vector<18x1x128xbf16>,
    %c0_14 = arith.constant 0 : index
    %c0_15 = arith.constant 0 : index
    %c0_16 = arith.constant 0 : index
    %c0_17 = arith.constant 0 : index
    %8 = vector.load %arg2[%c0_14, %c0_15, %c0_16, %c0_17] : memref<1x16x16x128xf32, #tpu.memory_space<vmem>>, vector<1x16x16x128xf32>
    %9 = vector.shape_cast %8 : vector<1x16x16x128xf32> to vector<16x16x128xf32>
    %10 = vector.shape_cast %9 : vector<16x16x128xf32> to vector<256x128xf32>
    %11 = arith.truncf %10 : vector<256x128xf32> to vector<256x128xbf16>
    %cst_18 = arith.constant dense<0.000000e+00> : vector<256x128xf32>
    %12 = tpu.matmul %11, %0, %cst_18 {dimension_numbers = #tpu.dot_dimension_numbers<[1], [0], [0], [1], [0, 0, 1, 1], [], []>} : vector<256x128xbf16>, vector<128x128xbf16>, vector<256x128xf32> -> vector<256x128xf32>
    %13 = vector.broadcast %2 : vector<1x128xf32> to vector<256x128xf32>
    %14 = arith.addf %12, %13 : vector<256x128xf32>
    %cst_19 = arith.constant 0.000000e+00 : f32
    %15 = vector.broadcast %cst_19 : f32 to vector<256x128xf32>
    %16 = arith.maximumf %14, %15 : vector<256x128xf32>
    %17 = arith.truncf %16 : vector<256x128xf32> to vector<256x128xbf16>
    %18 = vector.shape_cast %17 : vector<256x128xbf16> to vector<16x16x128xbf16>
    %c1 = arith.constant 1 : index
    %c1_20 = arith.constant 1 : index
    %c0_21 = arith.constant 0 : index
    %19 = vector.load %arg12[%c1, %c1_20, %c0_21] : memref<18x18x128xbf16, #tpu.memory_space<vmem>>, vector<16x16x128xbf16>
    tpu.vector_store %arg12[%c1, %c1_20, %c0_21], %18 {strides = array<i32>} : memref<18x18x128xbf16, #tpu.memory_space<vmem>>, vector<16x16x128xbf16>,
    %c0_i32 = arith.constant 0 : i32
    %20 = arith.cmpi sgt, %arg1, %c0_i32 : i32
    %21 = arith.extui %20 : i1 to i32
    %22 = arith.sitofp %21 : i32 to f32
    %c0_22 = arith.constant 0 : index
    %c0_23 = arith.constant 0 : index
    %c0_24 = arith.constant 0 : index
    %c0_25 = arith.constant 0 : index
    %23 = vector.load %arg3[%c0_22, %c0_23, %c0_24, %c0_25] : memref<1x1x16x128xf32, #tpu.memory_space<vmem>>, vector<1x1x16x128xf32>
    %24 = vector.shape_cast %23 : vector<1x1x16x128xf32> to vector<1x16x128xf32>
    %25 = vector.shape_cast %24 : vector<1x16x128xf32> to vector<16x128xf32>
    %26 = arith.truncf %25 : vector<16x128xf32> to vector<16x128xbf16>
    %cst_26 = arith.constant dense<0.000000e+00> : vector<16x128xf32>
    %27 = tpu.matmul %26, %0, %cst_26 {dimension_numbers = #tpu.dot_dimension_numbers<[1], [0], [0], [1], [0, 0, 1, 1], [], []>} : vector<16x128xbf16>, vector<128x128xbf16>, vector<16x128xf32> -> vector<16x128xf32>
    %28 = vector.broadcast %2 : vector<1x128xf32> to vector<16x128xf32>
    %29 = arith.addf %27, %28 : vector<16x128xf32>
    %cst_27 = arith.constant 0.000000e+00 : f32
    %30 = vector.broadcast %cst_27 : f32 to vector<16x128xf32>
    %31 = arith.maximumf %29, %30 : vector<16x128xf32>
    %32 = vector.broadcast %22 : f32 to vector<16x128xf32>
    %33 = arith.mulf %31, %32 : vector<16x128xf32>
    %34 = arith.truncf %33 : vector<16x128xf32> to vector<16x128xbf16>
    %35 = vector.shape_cast %34 : vector<16x128xbf16> to vector<1x16x128xbf16>
    %c0_28 = arith.constant 0 : index
    %c1_29 = arith.constant 1 : index
    %c0_30 = arith.constant 0 : index
    %36 = vector.load %arg12[%c0_28, %c1_29, %c0_30] : memref<18x18x128xbf16, #tpu.memory_space<vmem>>, vector<1x16x128xbf16>
    tpu.vector_store %arg12[%c0_28, %c1_29, %c0_30], %35 {strides = array<i32>} : memref<18x18x128xbf16, #tpu.memory_space<vmem>>, vector<1x16x128xbf16>,
    %c0_i32_31 = arith.constant 0 : i32
    %37 = arith.cmpi slt, %arg1, %c0_i32_31 : i32
    %38 = arith.extui %37 : i1 to i32
    %39 = arith.sitofp %38 : i32 to f32
    %c0_32 = arith.constant 0 : index
    %c0_33 = arith.constant 0 : index
    %c0_34 = arith.constant 0 : index
    %c0_35 = arith.constant 0 : index
    %40 = vector.load %arg4[%c0_32, %c0_33, %c0_34, %c0_35] : memref<1x1x16x128xf32, #tpu.memory_space<vmem>>, vector<1x1x16x128xf32>
    %41 = vector.shape_cast %40 : vector<1x1x16x128xf32> to vector<1x16x128xf32>
    %42 = vector.shape_cast %41 : vector<1x16x128xf32> to vector<16x128xf32>
    %43 = arith.truncf %42 : vector<16x128xf32> to vector<16x128xbf16>
    %cst_36 = arith.constant dense<0.000000e+00> : vector<16x128xf32>
    %44 = tpu.matmul %43, %0, %cst_36 {dimension_numbers = #tpu.dot_dimension_numbers<[1], [0], [0], [1], [0, 0, 1, 1], [], []>} : vector<16x128xbf16>, vector<128x128xbf16>, vector<16x128xf32> -> vector<16x128xf32>
    %45 = vector.broadcast %2 : vector<1x128xf32> to vector<16x128xf32>
    %46 = arith.addf %44, %45 : vector<16x128xf32>
    %cst_37 = arith.constant 0.000000e+00 : f32
    %47 = vector.broadcast %cst_37 : f32 to vector<16x128xf32>
    %48 = arith.maximumf %46, %47 : vector<16x128xf32>
    %49 = vector.broadcast %39 : f32 to vector<16x128xf32>
    %50 = arith.mulf %48, %49 : vector<16x128xf32>
    %51 = arith.truncf %50 : vector<16x128xf32> to vector<16x128xbf16>
    %52 = vector.shape_cast %51 : vector<16x128xbf16> to vector<1x16x128xbf16>
    %c17_38 = arith.constant 17 : index
    %c1_39 = arith.constant 1 : index
    %c0_40 = arith.constant 0 : index
    %53 = vector.load %arg12[%c17_38, %c1_39, %c0_40] : memref<18x18x128xbf16, #tpu.memory_space<vmem>>, vector<1x16x128xbf16>
    tpu.vector_store %arg12[%c17_38, %c1_39, %c0_40], %52 {strides = array<i32>} : memref<18x18x128xbf16, #tpu.memory_space<vmem>>, vector<1x16x128xbf16>,
    %cst_41 = arith.constant 0.000000e+00 : f32
    %54 = vector.broadcast %cst_41 : f32 to vector<256x128xf32>
    %c0_42 = arith.constant 0 : index
    %c0_43 = arith.constant 0 : index
    %c0_44 = arith.constant 0 : index
    %55 = vector.load %arg12[%c0_42, %c0_43, %c0_44] : memref<18x18x128xbf16, #tpu.memory_space<vmem>>, vector<16x16x128xbf16>
    %56 = vector.shape_cast %55 : vector<16x16x128xbf16> to vector<256x128xbf16>
    %c0_45 = arith.constant 0 : index
    %c0_46 = arith.constant 0 : index
    %57 = vector.load %arg6[%c0_45, %c0_46] : memref<1152x128xbf16, #tpu.memory_space<vmem>>, vector<128x128xbf16>
    %cst_47 = arith.constant dense<0.000000e+00> : vector<256x128xf32>
    %58 = tpu.matmul %56, %57, %cst_47 {dimension_numbers = #tpu.dot_dimension_numbers<[1], [0], [0], [1], [0, 0, 1, 1], [], []>} : vector<256x128xbf16>, vector<128x128xbf16>, vector<256x128xf32> -> vector<256x128xf32>
    %59 = arith.addf %54, %58 : vector<256x128xf32>
    %c0_48 = arith.constant 0 : index
    %c1_49 = arith.constant 1 : index
    %c0_50 = arith.constant 0 : index
    %60 = vector.load %arg12[%c0_48, %c1_49, %c0_50] : memref<18x18x128xbf16, #tpu.memory_space<vmem>>, vector<16x16x128xbf16>
    %61 = vector.shape_cast %60 : vector<16x16x128xbf16> to vector<256x128xbf16>
    %c128 = arith.constant 128 : index
    %c0_51 = arith.constant 0 : index
    %62 = vector.load %arg6[%c128, %c0_51] : memref<1152x128xbf16, #tpu.memory_space<vmem>>, vector<128x128xbf16>
    %cst_52 = arith.constant dense<0.000000e+00> : vector<256x128xf32>
    %63 = tpu.matmul %61, %62, %cst_52 {dimension_numbers = #tpu.dot_dimension_numbers<[1], [0], [0], [1], [0, 0, 1, 1], [], []>} : vector<256x128xbf16>, vector<128x128xbf16>, vector<256x128xf32> -> vector<256x128xf32>
    %64 = arith.addf %59, %63 : vector<256x128xf32>
    %c0_53 = arith.constant 0 : index
    %c2 = arith.constant 2 : index
    %c0_54 = arith.constant 0 : index
    %65 = vector.load %arg12[%c0_53, %c2, %c0_54] : memref<18x18x128xbf16, #tpu.memory_space<vmem>>, vector<16x16x128xbf16>
    %66 = vector.shape_cast %65 : vector<16x16x128xbf16> to vector<256x128xbf16>
    %c256 = arith.constant 256 : index
    %c0_55 = arith.constant 0 : index
    %67 = vector.load %arg6[%c256, %c0_55] : memref<1152x128xbf16, #tpu.memory_space<vmem>>, vector<128x128xbf16>
    %cst_56 = arith.constant dense<0.000000e+00> : vector<256x128xf32>
    %68 = tpu.matmul %66, %67, %cst_56 {dimension_numbers = #tpu.dot_dimension_numbers<[1], [0], [0], [1], [0, 0, 1, 1], [], []>} : vector<256x128xbf16>, vector<128x128xbf16>, vector<256x128xf32> -> vector<256x128xf32>
    %69 = arith.addf %64, %68 : vector<256x128xf32>
    %c1_57 = arith.constant 1 : index
    %c0_58 = arith.constant 0 : index
    %c0_59 = arith.constant 0 : index
    %70 = vector.load %arg12[%c1_57, %c0_58, %c0_59] : memref<18x18x128xbf16, #tpu.memory_space<vmem>>, vector<16x16x128xbf16>
    %71 = vector.shape_cast %70 : vector<16x16x128xbf16> to vector<256x128xbf16>
    %c384 = arith.constant 384 : index
    %c0_60 = arith.constant 0 : index
    %72 = vector.load %arg6[%c384, %c0_60] : memref<1152x128xbf16, #tpu.memory_space<vmem>>, vector<128x128xbf16>
    %cst_61 = arith.constant dense<0.000000e+00> : vector<256x128xf32>
    %73 = tpu.matmul %71, %72, %cst_61 {dimension_numbers = #tpu.dot_dimension_numbers<[1], [0], [0], [1], [0, 0, 1, 1], [], []>} : vector<256x128xbf16>, vector<128x128xbf16>, vector<256x128xf32> -> vector<256x128xf32>
    %74 = arith.addf %69, %73 : vector<256x128xf32>
    %c1_62 = arith.constant 1 : index
    %c1_63 = arith.constant 1 : index
    %c0_64 = arith.constant 0 : index
    %75 = vector.load %arg12[%c1_62, %c1_63, %c0_64] : memref<18x18x128xbf16, #tpu.memory_space<vmem>>, vector<16x16x128xbf16>
    %76 = vector.shape_cast %75 : vector<16x16x128xbf16> to vector<256x128xbf16>
    %c512 = arith.constant 512 : index
    %c0_65 = arith.constant 0 : index
    %77 = vector.load %arg6[%c512, %c0_65] : memref<1152x128xbf16, #tpu.memory_space<vmem>>, vector<128x128xbf16>
    %cst_66 = arith.constant dense<0.000000e+00> : vector<256x128xf32>
    %78 = tpu.matmul %76, %77, %cst_66 {dimension_numbers = #tpu.dot_dimension_numbers<[1], [0], [0], [1], [0, 0, 1, 1], [], []>} : vector<256x128xbf16>, vector<128x128xbf16>, vector<256x128xf32> -> vector<256x128xf32>
    %79 = arith.addf %74, %78 : vector<256x128xf32>
    %c1_67 = arith.constant 1 : index
    %c2_68 = arith.constant 2 : index
    %c0_69 = arith.constant 0 : index
    %80 = vector.load %arg12[%c1_67, %c2_68, %c0_69] : memref<18x18x128xbf16, #tpu.memory_space<vmem>>, vector<16x16x128xbf16>
    %81 = vector.shape_cast %80 : vector<16x16x128xbf16> to vector<256x128xbf16>
    %c640 = arith.constant 640 : index
    %c0_70 = arith.constant 0 : index
    %82 = vector.load %arg6[%c640, %c0_70] : memref<1152x128xbf16, #tpu.memory_space<vmem>>, vector<128x128xbf16>
    %cst_71 = arith.constant dense<0.000000e+00> : vector<256x128xf32>
    %83 = tpu.matmul %81, %82, %cst_71 {dimension_numbers = #tpu.dot_dimension_numbers<[1], [0], [0], [1], [0, 0, 1, 1], [], []>} : vector<256x128xbf16>, vector<128x128xbf16>, vector<256x128xf32> -> vector<256x128xf32>
    %84 = arith.addf %79, %83 : vector<256x128xf32>
    %c2_72 = arith.constant 2 : index
    %c0_73 = arith.constant 0 : index
    %c0_74 = arith.constant 0 : index
    %85 = vector.load %arg12[%c2_72, %c0_73, %c0_74] : memref<18x18x128xbf16, #tpu.memory_space<vmem>>, vector<16x16x128xbf16>
    %86 = vector.shape_cast %85 : vector<16x16x128xbf16> to vector<256x128xbf16>
    %c768 = arith.constant 768 : index
    %c0_75 = arith.constant 0 : index
    %87 = vector.load %arg6[%c768, %c0_75] : memref<1152x128xbf16, #tpu.memory_space<vmem>>, vector<128x128xbf16>
    %cst_76 = arith.constant dense<0.000000e+00> : vector<256x128xf32>
    %88 = tpu.matmul %86, %87, %cst_76 {dimension_numbers = #tpu.dot_dimension_numbers<[1], [0], [0], [1], [0, 0, 1, 1], [], []>} : vector<256x128xbf16>, vector<128x128xbf16>, vector<256x128xf32> -> vector<256x128xf32>
    %89 = arith.addf %84, %88 : vector<256x128xf32>
    %c2_77 = arith.constant 2 : index
    %c1_78 = arith.constant 1 : index
    %c0_79 = arith.constant 0 : index
    %90 = vector.load %arg12[%c2_77, %c1_78, %c0_79] : memref<18x18x128xbf16, #tpu.memory_space<vmem>>, vector<16x16x128xbf16>
    %91 = vector.shape_cast %90 : vector<16x16x128xbf16> to vector<256x128xbf16>
    %c896 = arith.constant 896 : index
    %c0_80 = arith.constant 0 : index
    %92 = vector.load %arg6[%c896, %c0_80] : memref<1152x128xbf16, #tpu.memory_space<vmem>>, vector<128x128xbf16>
    %cst_81 = arith.constant dense<0.000000e+00> : vector<256x128xf32>
    %93 = tpu.matmul %91, %92, %cst_81 {dimension_numbers = #tpu.dot_dimension_numbers<[1], [0], [0], [1], [0, 0, 1, 1], [], []>} : vector<256x128xbf16>, vector<128x128xbf16>, vector<256x128xf32> -> vector<256x128xf32>
    %94 = arith.addf %89, %93 : vector<256x128xf32>
    %c2_82 = arith.constant 2 : index
    %c2_83 = arith.constant 2 : index
    %c0_84 = arith.constant 0 : index
    %95 = vector.load %arg12[%c2_82, %c2_83, %c0_84] : memref<18x18x128xbf16, #tpu.memory_space<vmem>>, vector<16x16x128xbf16>
    %96 = vector.shape_cast %95 : vector<16x16x128xbf16> to vector<256x128xbf16>
    %c1024 = arith.constant 1024 : index
    %c0_85 = arith.constant 0 : index
    %97 = vector.load %arg6[%c1024, %c0_85] : memref<1152x128xbf16, #tpu.memory_space<vmem>>, vector<128x128xbf16>
    %cst_86 = arith.constant dense<0.000000e+00> : vector<256x128xf32>
    %98 = tpu.matmul %96, %97, %cst_86 {dimension_numbers = #tpu.dot_dimension_numbers<[1], [0], [0], [1], [0, 0, 1, 1], [], []>} : vector<256x128xbf16>, vector<128x128xbf16>, vector<256x128xf32> -> vector<256x128xf32>
    %99 = arith.addf %94, %98 : vector<256x128xf32>
    %100 = vector.broadcast %3 : vector<1x128xf32> to vector<256x128xf32>
    %101 = arith.addf %99, %100 : vector<256x128xf32>
    %cst_87 = arith.constant 0.000000e+00 : f32
    %102 = vector.broadcast %cst_87 : f32 to vector<256x128xf32>
    %103 = arith.maximumf %101, %102 : vector<256x128xf32>
    %104 = arith.truncf %103 : vector<256x128xf32> to vector<256x128xbf16>
    %cst_88 = arith.constant dense<0.000000e+00> : vector<256x128xf32>
    %105 = tpu.matmul %104, %1, %cst_88 {dimension_numbers = #tpu.dot_dimension_numbers<[1], [0], [0], [1], [0, 0, 1, 1], [], []>} : vector<256x128xbf16>, vector<128x128xbf16>, vector<256x128xf32> -> vector<256x128xf32>
    %106 = vector.broadcast %4 : vector<1x128xf32> to vector<256x128xf32>
    %107 = arith.addf %105, %106 : vector<256x128xf32>
    %108 = vector.shape_cast %9 : vector<16x16x128xf32> to vector<256x128xf32>
    %109 = arith.addf %107, %108 : vector<256x128xf32>
    %cst_89 = arith.constant 0.000000e+00 : f32
    %110 = vector.broadcast %cst_89 : f32 to vector<256x128xf32>
    %111 = arith.maximumf %109, %110 : vector<256x128xf32>
    %112 = vector.shape_cast %111 : vector<256x128xf32> to vector<16x16x128xf32>
    %c0_90 = arith.constant 0 : index
    %c0_91 = arith.constant 0 : index
    %c0_92 = arith.constant 0 : index
    %c0_93 = arith.constant 0 : index
    %113 = vector.load %arg11[%c0_90, %c0_91, %c0_92, %c0_93] : memref<1x16x16x128xf32, #tpu.memory_space<vmem>>, vector<1x16x16x128xf32>
    %114 = vector.shape_cast %113 : vector<1x16x16x128xf32> to vector<16x16x128xf32>
    %115 = vector.shape_cast %112 : vector<16x16x128xf32> to vector<1x16x16x128xf32>
    tpu.vector_store %arg11[%c0_90, %c0_91, %c0_92, %c0_93], %115 {strides = array<i32>} : memref<1x16x16x128xf32, #tpu.memory_space<vmem>>, vector<1x16x16x128xf32>,
    return
  }
  func.func @transform_0(%arg0: i32, %arg1: i32) -> (i32, i32, i32, i32) {
    %c0_i32 = arith.constant 0 : i32
    %c0_i32_0 = arith.constant 0 : i32
    %c0_i32_1 = arith.constant 0 : i32
    return %arg0, %arg1, %c0_i32, %c0_i32_0 : i32, i32, i32, i32
  }
  func.func @transform_1(%arg0: i32, %arg1: i32) -> (i32, i32, i32, i32) {
    %c16_i32 = arith.constant 16 : i32
    %0 = arith.muli %arg1, %c16_i32 : i32
    %c1_i32 = arith.constant 1 : i32
    %1 = arith.subi %0, %c1_i32 : i32
    %c0_i32 = arith.constant 0 : i32
    %2 = arith.maxsi %1, %c0_i32 : i32
    %c0_i32_0 = arith.constant 0 : i32
    %c0_i32_1 = arith.constant 0 : i32
    %c0_i32_2 = arith.constant 0 : i32
    return %arg0, %2, %c0_i32_0, %c0_i32_1 : i32, i32, i32, i32
  }
  func.func @transform_2(%arg0: i32, %arg1: i32) -> (i32, i32, i32, i32) {
    %c16_i32 = arith.constant 16 : i32
    %0 = arith.muli %arg1, %c16_i32 : i32
    %c16_i32_0 = arith.constant 16 : i32
    %1 = arith.addi %0, %c16_i32_0 : i32
    %c15_i32 = arith.constant 15 : i32
    %2 = arith.minsi %1, %c15_i32 : i32
    %c0_i32 = arith.constant 0 : i32
    %c0_i32_1 = arith.constant 0 : i32
    %c0_i32_2 = arith.constant 0 : i32
    return %arg0, %2, %c0_i32, %c0_i32_1 : i32, i32, i32, i32
  }
  func.func @transform_3(%arg0: i32, %arg1: i32) -> (i32, i32) {
    %c0_i32 = arith.constant 0 : i32
    %c0_i32_0 = arith.constant 0 : i32
    %c0_i32_1 = arith.constant 0 : i32
    return %c0_i32, %c0_i32_0 : i32, i32
  }
  func.func @transform_4(%arg0: i32, %arg1: i32) -> (i32, i32) {
    %c0_i32 = arith.constant 0 : i32
    %c0_i32_0 = arith.constant 0 : i32
    %c0_i32_1 = arith.constant 0 : i32
    return %c0_i32, %c0_i32_0 : i32, i32
  }
  func.func @transform_5(%arg0: i32, %arg1: i32) -> (i32, i32) {
    %c0_i32 = arith.constant 0 : i32
    %c0_i32_0 = arith.constant 0 : i32
    %c0_i32_1 = arith.constant 0 : i32
    return %c0_i32, %c0_i32_0 : i32, i32
  }
  func.func @transform_6(%arg0: i32, %arg1: i32) -> (i32, i32) {
    %c0_i32 = arith.constant 0 : i32
    %c0_i32_0 = arith.constant 0 : i32
    %c0_i32_1 = arith.constant 0 : i32
    return %c0_i32, %c0_i32_0 : i32, i32
  }
  func.func @transform_7(%arg0: i32, %arg1: i32) -> (i32, i32) {
    %c0_i32 = arith.constant 0 : i32
    %c0_i32_0 = arith.constant 0 : i32
    %c0_i32_1 = arith.constant 0 : i32
    return %c0_i32, %c0_i32_0 : i32, i32
  }
  func.func @transform_8(%arg0: i32, %arg1: i32) -> (i32, i32) {
    %c0_i32 = arith.constant 0 : i32
    %c0_i32_0 = arith.constant 0 : i32
    %c0_i32_1 = arith.constant 0 : i32
    return %c0_i32, %c0_i32_0 : i32, i32
  }
  func.func @transform_9(%arg0: i32, %arg1: i32) -> (i32, i32, i32, i32) {
    %c0_i32 = arith.constant 0 : i32
    %c0_i32_0 = arith.constant 0 : i32
    %c0_i32_1 = arith.constant 0 : i32
    return %arg0, %arg1, %c0_i32, %c0_i32_0 : i32, i32, i32, i32
  }
}

</mosaic_0001>

<bundles_post_ra>
// kernel: bottleneck2d_forward.1
= control target key start
LH: loop header
LB: loop body
LE: loop exit
PB: predicated region body
PF: predicated region fallthrough
CT: control target
= control target key end

     0   :  { %s8791_s30 = smov 0   ;;  %s8793_s10 = smov 0   ;;  %s10950_s0 = inlined_call_operand.vmem [shape: f32[2,16,16,128], index: 0, kind: input, shape index: {}, may-alias: {0,1,2}]   ;;  %s10951_s1 = inlined_call_operand.vmem [shape: f32[2,16,16,128], index: 1, kind: input, shape index: {}, may-alias: {0,1,2}]   ;;  %s10952_s2 = inlined_call_operand.vmem [shape: f32[2,16,16,128], index: 2, kind: input, shape index: {}, may-alias: {0,1,2}]   ;;  %s10953_s3 = inlined_call_operand.vmem [shape: bf16[128,128], index: 3, kind: input, shape index: {}]   ;;  %s10954_s4 = inlined_call_operand.vmem [shape: bf16[1152,128], index: 4, kind: input, shape index: {}]   ;;  %s10955_s5 = inlined_call_operand.vmem [shape: bf16[128,128], index: 5, kind: input, shape index: {}]   ;;  %s10956_s6 = inlined_call_operand.vmem [shape: f32[1,128], index: 6, kind: input, shape index: {}]   ;;  %s10957_s7 = inlined_call_operand.vmem [shape: f32[1,128], index: 7, kind: input, shape index: {}]   ;;  %s10958_s8 = inlined_call_operand.vmem [shape: f32[1,128], index: 8, kind: input, shape index: {}]   ;;  %s10959_s9 = inlined_call_operand.vmem [shape: f32[2,16,16,128], index: 9, kind: output, shape index: {}]  }
   0x1   :  { %s8795_s11 = smov 0  }
   0x2 LB: > { %s31_s12 = sadd.s32 1, %s8733_s10  ;;  %p6988_p0 = scmp.ge.s32.totalorder %s8737_s11, 1  ;;  %s8737_s11 = sphi %s8795_s11, %s19_s11   ;;  %s8733_s10 = sphi %s8793_s10, %s11045_s10   ;;  %s8729_s30 = sphi %s8791_s30, %s11044_s30  }
   0x3   : > { %p33_p1 = scmp.ge.s32.totalorder %s31_s12, 2  ;;  %p373_p2 = scmp.lt.s32.totalorder %s8737_s11, 3 }
   0x5   : > { %s11047_s12 = smov (%p33_p1, %s31_s12), 0  ;;  %p374_p3 = pnand %p6988_p0, %p373_p2 }
   0x7   : > { %377 = sbr.rel (%p374_p3) target bundleno = 1178 (0x49a), region = 56 }
   0xe   : > { %v8812_v0 = vld [vmem:[%s10953_s3] sm:$0xff]   ;;  %p446_p4 = scmp.lt.s32.totalorder %s8729_s30, 1  ;;  %v8817_v1 = vld [vmem:[%s10953_s3 + $0x8] sm:$0xff]   ;;  %v8825_v2 = vld [vmem:[%s10953_s3 + $0x10] sm:$0xff]   ;;  %vm537_vm0 = vcmask 1040384   ;;  %v8739_v22 = vmov 0.0  }
   0xf   : > { %7642 = vmatprep.subr.bf16.mxu1 %v8812_v0  ;;  %v8840_v3 = vld [vmem:[%s10953_s3 + $0x18] sm:$0xff]   ;;  %v8849_v7 = vld [vmem:[%s10953_s3 + $0x20] sm:$0xff]   ;;  %v8856_v8 = vld [vmem:[%s10953_s3 + $0x28] sm:$0xff]   ;;  %vm538_vm1 = vsmask.f32 256  ;;  %vm8740_vm3 = vmmov 0  }
  0x10   : > { %s11049_s30 = smov (!%p446_p4, %s8729_s30), 1  ;;  %7643 = vmatpush3.bf16.msra.mxu1 %v8812_v0  ;;  %v8862_v9 = vld [vmem:[%s10953_s3 + $0x30] sm:$0xff]   ;;  %v8500_v10 = vld [vmem:[%s10954_s4 + $0xc0] sm:$0xff]   ;;  %v8501_v11 = vld [vmem:[%s10954_s4 + $0xc8] sm:$0xff]   ;;  %vm594_vm4 = vsmask.f32 7938 }
  0x11   : > { %7644 = vmatprep.subr.bf16.mxu1 %v8817_v1  ;;  %s8827_s19 = sshll.u32 %s11049_s30, 8  ;;  %vm8873_vm2 = vmand %vm537_vm0, %vm538_vm1  ;;  %v546_v13 = vld [vmem:[#allocation2 + $0x18] sm:$0x1]  ;;  %7874 = vmatprep.subr.bf16.mxu0 %v8500_v10  ;;  %vm1364_vm6 = vcmask 1043456   ;;  %vm1041_vm7 = vsmask.f32 4368 }
  0x12   : > { %s8833_s22 = scalar_lea.vmem %s10950_s0, %s8827_s19  ;;  %v8880_v14 = vld [vmem:[%s10953_s3 + $0x38] sm:$0xff]   ;;  %v547_v15 = vsel %vm8873_vm2, 0, %v546_v13  ;;  %7875 = vmatpush3.bf16.msra.mxu0 %v8500_v10  ;;  %s468_s23 = scalar_lea.vmem %s10951_s1, %s8827_s19  ;;  %vm8961_vm5 = vmand %vm537_vm0, %vm594_vm4  ;;  %vm1713_vm10 = vsmask.f32 3328  ;;  %vm1714_vm11 = vsmask.f32 7440 }
  0x13   : > { %v650_v4 = vld [vmem:[%s8833_s22] sm:$0xff]  ;;  %v651_v5 = vld [vmem:[%s8833_s22 + $0x8] sm:$0xff]  ;;  %548 = vst [vmem:[#allocation2 + $0x18] sm:$0x1] %v547_v15  ;;  %7876 = vmatprep.subr.bf16.mxu0 %v8501_v11  ;;  %v652_v16 = vld [vmem:[%s8833_s22 + $0x10] sm:$0xff]  ;;  %s7321_s18 = sadd.s32 240, %s8827_s19  ;;  %s10847_s16 = scalar_lea.vmem %s10959_s9, %s8827_s19 }
  0x14   : > { %7645 = vmatpush3.bf16.msra.mxu1 %v8817_v1  ;;  %v682_v6 = vpack.c.bf16 %v651_v5, %v650_v4  ;;  %v653_v17 = vld [vmem:[%s8833_s22 + $0x18] sm:$0xff]  ;;  %v654_v18 = vld [vmem:[%s8833_s22 + $0x20] sm:$0xff]  ;;  %v655_v19 = vld [vmem:[%s8833_s22 + $0x28] sm:$0xff]  ;;  %vm2742_vm13 = vcmask 1042432   ;;  %vm2743_vm14 = vcmask 1046532  }
  0x15   : > { %7646 = vmatprep.subr.bf16.mxu1 %v8825_v2  ;;  %v683_v20 = vpack.c.bf16 %v653_v17, %v652_v16  ;;  %v684_v21 = vpack.c.bf16 %v655_v19, %v654_v18  ;;  %v656_v23 = vld [vmem:[%s8833_s22 + $0x30] sm:$0xff]  ;;  %v657_v24 = vld [vmem:[%s8833_s22 + $0x38] sm:$0xff]  ;;  %v658_v25 = vld [vmem:[%s8833_s22 + $0x40] sm:$0xff] }
  0x16   : > { %7658 = vmatprep.mubr.bf16.mxu1 %v682_v6  ;;  %7877 = vmatpush3.bf16.msra.mxu0 %v8501_v11  ;;  %v659_v26 = vld [vmem:[%s8833_s22 + $0x48] sm:$0xff]  ;;  %v685_v27 = vpack.c.bf16 %v657_v24, %v656_v23  ;;  %v660_v29 = vld [vmem:[%s8833_s22 + $0x50] sm:$0xff]  ;;  %v661_v30 = vld [vmem:[%s8833_s22 + $0x58] sm:$0xff] }
  0x17   : > { %v686_v28 = vpack.c.bf16 %v659_v26, %v658_v25  ;;  %v662_v31 = vld [vmem:[%s8833_s22 + $0x60] sm:$0xff]  ;;  %v663_v32 = vld [vmem:[%s8833_s22 + $0x68] sm:$0xff]  ;;  %v687_v33 = vpack.c.bf16 %v661_v30, %v660_v29  ;;  %v664_v35 = vld [vmem:[%s8833_s22 + $0x70] sm:$0xff] }
  0x18   : > { %7647 = vmatpush3.bf16.msra.mxu1 %v8825_v2  ;;  %v688_v34 = vpack.c.bf16 %v663_v32, %v662_v31  ;;  %v665_v36 = vld [vmem:[%s8833_s22 + $0x78] sm:$0xff]  ;;  %v666_v37 = vld [vmem:[%s8833_s22 + $0x80] sm:$0xff]  ;;  %v667_v38 = vld [vmem:[%s8833_s22 + $0x88] sm:$0xff] }
  0x19   : > { %7648 = vmatprep.subr.bf16.mxu1 %v8840_v3  ;;  %v689_v39 = vpack.c.bf16 %v665_v36, %v664_v35  ;;  %v690_v40 = vpack.c.bf16 %v667_v38, %v666_v37  ;;  %v668_v41 = vld [vmem:[%s8833_s22 + $0x90] sm:$0xff]  ;;  %v669_v42 = vld [vmem:[%s8833_s22 + $0x98] sm:$0xff]  ;;  %v670_v43 = vld [vmem:[%s8833_s22 + $0xa0] sm:$0xff] }
  0x1a   : > { %v671_v44 = vld [vmem:[%s8833_s22 + $0xa8] sm:$0xff]  ;;  %v691_v45 = vpack.c.bf16 %v669_v42, %v668_v41  ;;  %v672_v47 = vld [vmem:[%s8833_s22 + $0xb0] sm:$0xff]  ;;  %v673_v48 = vld [vmem:[%s8833_s22 + $0xb8] sm:$0xff] }
  0x1b   : > { %v692_v46 = vpack.c.bf16 %v671_v44, %v670_v43  ;;  %v674_v49 = vld [vmem:[%s8833_s22 + $0xc0] sm:$0xff]  ;;  %v675_v50 = vld [vmem:[%s8833_s22 + $0xc8] sm:$0xff]  ;;  %v693_v51 = vpack.c.bf16 %v673_v48, %v672_v47  ;;  %v676_v53 = vld [vmem:[%s8833_s22 + $0xd0] sm:$0xff] }
  0x1c   : > { %7649 = vmatpush3.bf16.msra.mxu1 %v8840_v3  ;;  %v694_v52 = vpack.c.bf16 %v675_v50, %v674_v49  ;;  %v677_v54 = vld [vmem:[%s8833_s22 + $0xd8] sm:$0xff]  ;;  %v678_v55 = vld [vmem:[%s8833_s22 + $0xe0] sm:$0xff]  ;;  %v679_v56 = vld [vmem:[%s8833_s22 + $0xe8] sm:$0xff] }
  0x1d   : > { %7650 = vmatprep.subr.bf16.mxu1 %v8849_v7  ;;  %v695_v57 = vpack.c.bf16 %v677_v54, %v676_v53  ;;  %v696_v58 = vpack.c.bf16 %v679_v56, %v678_v55  ;;  %v680_v59 = vld [vmem:[%s8833_s22 + $0xf0] sm:$0xff]  ;;  %v681_v60 = vld [vmem:[%s8833_s22 + $0xf8] sm:$0xff]  ;;  %v1481_v62 = vld [vmem:[%s468_s23] sm:$0xff] }
  0x1e   : > { %v697_v61 = vpack.c.bf16 %v681_v60, %v680_v59  ;;  %v1482_v63 = vld [vmem:[%s468_s23 + $0x8] sm:$0xff]  ;;  %v602_v5 = vld [vmem:[#allocation2 + $0x20] sm:$0x1]  ;;  %v8503_v6 = vld [vmem:[%s10954_s4 + $0xd8] sm:$0xff]   ;;  %s485_s23 = scalar_lea.vmem %s10952_s2, %s7321_s18 }
  0x1f   : > { %v1483_v4 = vpack.c.bf16 %v1482_v63, %v1481_v62  ;;  %v552_v11 = vld [vmem:[#allocation2 + $0x30] sm:$0x1]  ;;  %v549_v15 = vld [vmem:[#allocation2 + $0x24] sm:$0x1]  ;;  %v608_v16 = vld [vmem:[#allocation2 + $0x38] sm:$0x1] }
  0x20   : > { %7651 = vmatpush3.bf16.msra.mxu1 %v8849_v7  ;;  %v553_v13 = vsel %vm8873_vm2, 0, %v552_v11  ;;  %v609_v17 = vsel %vm8961_vm5, 0, %v608_v16  ;;  %v8504_v18 = vld [vmem:[%s10954_s4 + $0xe0] sm:$0xff]   ;;  %v605_v19 = vld [vmem:[#allocation2 + $0x2c] sm:$0x1]  ;;  %vm9092_vm8 = vmand %vm1364_vm6, %vm594_vm4 }
  0x21   : > { %7652 = vmatprep.subr.bf16.mxu1 %v8856_v8  ;;  %554 = vst [vmem:[#allocation2 + $0x30] sm:$0x1] %v553_v13  ;;  %610 = vst [vmem:[#allocation2 + $0x38] sm:$0x1] %v609_v17  ;;  %v555_v24 = vld [vmem:[#allocation2 + $0x3c] sm:$0x1] }
  0x22   : > { %v556_v25 = vsel %vm8873_vm2, 0, %v555_v24  ;;  %v614_v26 = vld [vmem:[#allocation2 + $0x50] sm:$0x1]  ;;  %v611_v29 = vld [vmem:[#allocation2 + $0x44] sm:$0x1]  ;;  %v1567_v32 = vld [vmem:[%s485_s23 + $0x8] sm:$0xff] }
  0x23   : > { %557 = vst [vmem:[#allocation2 + $0x3c] sm:$0x1] %v556_v25  ;;  %v612_v30 = vsel %vm8961_vm5, 0, %v611_v29  ;;  %v1566_v31 = vld [vmem:[%s485_s23] sm:$0xff]  ;;  %v561_v36 = vld [vmem:[#allocation2 + $0x54] sm:$0x1]  ;;  %vm9099_vm9 = vmor %vm538_vm1, %vm1041_vm7 }
  0x24   : > { %7653 = vmatpush3.bf16.msra.mxu1 %v8856_v8  ;;  %613 = vst [vmem:[#allocation2 + $0x44] sm:$0x1] %v612_v30  ;;  %v562_v37 = vsel %vm8873_vm2, 0, %v561_v36  ;;  %v620_v38 = vld [vmem:[#allocation2 + $0x68] sm:$0x1]  ;;  %v9024_v48 = vld [vmem:[%s10954_s4 + $0x100] sm:$0xff]   ;;  %vm9316_vm12 = vmor %vm1713_vm10, %vm1714_vm11 }
  0x25   : > { %7654 = vmatprep.subr.bf16.mxu1 %v8862_v9  ;;  %563 = vst [vmem:[#allocation2 + $0x54] sm:$0x1] %v562_v37  ;;  %v570_v42 = vld [vmem:[#allocation2 + $0x78] sm:$0x1]  ;;  %v567_v44 = vld [vmem:[#allocation2 + $0x6c] sm:$0x1]  ;;  %vm9592_vm15 = vmor %vm2742_vm13, %vm2743_vm14 }
  0x26   : > { %v571_v43 = vsel %vm8873_vm2, 0, %v570_v42  ;;  %v623_v49 = vld [vmem:[#allocation2 + $0x74] sm:$0x1]  ;;  %v573_v53 = vld [vmem:[#allocation2 + $0x84] sm:$0x1]  ;;  %v8527_v17 = vld [vmem:[%s10954_s4 + $0x48] sm:$0xff]  }
  0x27   : > { %572 = vst [vmem:[#allocation2 + $0x78] sm:$0x1] %v571_v43  ;;  %v624_v50 = vsel %vm8961_vm5, 0, %v623_v49  ;;  %v574_v54 = vsel %vm8873_vm2, 0, %v573_v53  ;;  %v632_v55 = vld [vmem:[#allocation2 + $0x98] sm:$0x1] }
  0x28   : > { %7655 = vmatpush3.bf16.msra.mxu1 %v8862_v9  ;;  %625 = vst [vmem:[#allocation2 + $0x74] sm:$0x1] %v624_v50  ;;  %575 = vst [vmem:[#allocation2 + $0x84] sm:$0x1] %v574_v54  ;;  %v633_v56 = vsel %vm8961_vm5, 0, %v632_v55  ;;  %v8540_v24 = vld [vmem:[%s10954_s4 + $0x78] sm:$0xff]  }
  0x29   : > { %7656 = vmatprep.subr.bf16.mxu1 %v8880_v14  ;;  %634 = vst [vmem:[#allocation2 + $0x98] sm:$0x1] %v633_v56  ;;  %v582_v59 = vld [vmem:[#allocation2 + $0xa8] sm:$0x1]  ;;  %v638_v63 = vld [vmem:[#allocation2 + $0xb0] sm:$0x1] }
  0x2a   : > { %v583_v60 = vsel %vm8873_vm2, 0, %v582_v59  ;;  %v641_v11 = vld [vmem:[#allocation2 + $0xbc] sm:$0x1]  ;;  %v9084_v25 = vld [vmem:[%s10956_s6] ss:$0 sm:$0xff] }
  0x2b   : > { %584 = vst [vmem:[#allocation2 + $0xa8] sm:$0x1] %v583_v60  ;;  %v642_v13 = vsel %vm8961_vm5, 0, %v641_v11  ;;  %v1373_v54 = vld [vmem:[#allocation2 + $0x18] sm:$0xf] }
  0x2c   : > { %7657 = vmatpush3.bf16.msra.mxu1 %v8880_v14  ;;  %643 = vst [vmem:[#allocation2 + $0xbc] sm:$0x1] %v642_v13 }
  0x2d   : > { %7690 = vmatprep.subr.bf16.mxu1 %v8739_v22 }
  0x2f   : > { %7659 = vmatmul.mubr.bf16.vlgmr.msra.gmra.mrb[0].mxu1 %v683_v20  ;;  %v606_v20 = vsel %vm8961_vm5, 0, %v605_v19  ;;  %v8531_v19 = vld [vmem:[%s10954_s4 + $0x50] sm:$0xff]  }
  0x30   : > { %7662 = vmatprep.mubr.bf16.mxu1 %v684_v21  ;;  %7691 = vmatpush3.bf16.msra.mxu1 %v8812_v0  ;;  %607 = vst [vmem:[#allocation2 + $0x2c] sm:$0x1] %v606_v20  ;;  %v8506_v21 = vld [vmem:[%s10954_s4 + $0xf0] sm:$0xff]   ;;  %v8532_v20 = vld [vmem:[%s10954_s4 + $0x58] sm:$0xff]  }
  0x31   : > { %7692 = vmatprep.subr.bf16.mxu1 %v8739_v22 }
  0x34   : > { %7693 = vmatpush3.bf16.msra.mxu1 %v8817_v1 }
  0x35   : > { %7694 = vmatprep.subr.bf16.mxu1 %v8739_v22 }
  0x37   : > { %7663 = vmatmul.mubr.bf16.gmra.mrb[4].mxu1 %v685_v27  ;;  %v615_v27 = vsel %vm8961_vm5, 0, %v614_v26 }
  0x38   : > { %7666 = vmatprep.mubr.bf16.mxu1 %v686_v28  ;;  %7695 = vmatpush3.bf16.msra.mxu1 %v8825_v2  ;;  %v8507_v28 = vld [vmem:[%s10954_s4 + $0xf8] sm:$0xff]   ;;  %616 = vst [vmem:[#allocation2 + $0x50] sm:$0x1] %v615_v27 }
  0x39   : > { %7696 = vmatprep.subr.bf16.mxu1 %v8739_v22 }
  0x3c   : > { %7697 = vmatpush3.bf16.msra.mxu1 %v8840_v3 }
  0x3d   : > { %7698 = vmatprep.subr.bf16.mxu1 %v8739_v22 }
  0x3f   : > { %7667 = vmatmul.mubr.bf16.gmra.mrb[8].mxu1 %v687_v33  ;;  %v564_v33 = vld [vmem:[#allocation2 + $0x60] sm:$0x1] }
  0x40   : > { %7670 = vmatprep.mubr.bf16.mxu1 %v688_v34  ;;  %7699 = vmatpush3.bf16.msra.mxu1 %v8849_v7  ;;  %v1568_v34 = vpack.c.bf16 %v1567_v32, %v1566_v31  ;;  %v565_v35 = vsel %vm8873_vm2, 0, %v564_v33 }
  0x41   : > { %7700 = vmatprep.subr.bf16.mxu1 %v8739_v22  ;;  %566 = vst [vmem:[#allocation2 + $0x60] sm:$0x1] %v565_v35 }
  0x44   : > { %7701 = vmatpush3.bf16.msra.mxu1 %v8856_v8 }
  0x45   : > { %7702 = vmatprep.subr.bf16.mxu1 %v8739_v22 }
  0x47   : > { %7671 = vmatmul.mubr.bf16.gmra.mrb[12].mxu1 %v689_v39  ;;  %v621_v39 = vsel %vm8961_vm5, 0, %v620_v38 }
  0x48   : > { %7674 = vmatprep.mubr.bf16.mxu1 %v690_v40  ;;  %7703 = vmatpush3.bf16.msra.mxu1 %v8862_v9  ;;  %v617_v40 = vld [vmem:[#allocation2 + $0x5c] sm:$0x1]  ;;  %622 = vst [vmem:[#allocation2 + $0x68] sm:$0x1] %v621_v39 }
  0x49   : > { %7704 = vmatprep.subr.bf16.mxu1 %v8739_v22  ;;  %v618_v41 = vsel %vm8961_vm5, 0, %v617_v40 }
  0x4a   : > { %619 = vst [vmem:[#allocation2 + $0x5c] sm:$0x1] %v618_v41 }
  0x4c   : > { %7705 = vmatpush3.bf16.msra.mxu1 %v8880_v14 }
  0x4d   : > { %7710 = vmatprep.subr.bf16.mxu1 %v8739_v22 }
  0x4f   : > { %7675 = vmatmul.mubr.bf16.gmra.mrb[16].mxu1 %v691_v45  ;;  %v568_v45 = vsel %vm8873_vm2, 0, %v567_v44 }
  0x50   : > { %7678 = vmatprep.mubr.bf16.mxu1 %v692_v46  ;;  %v626_v46 = vld [vmem:[#allocation2 + $0x80] sm:$0x1]  ;;  %569 = vst [vmem:[#allocation2 + $0x6c] sm:$0x1] %v568_v45 }
  0x51   : > { %v627_v47 = vsel %vm8961_vm5, 0, %v626_v46 }
  0x52   : > { %628 = vst [vmem:[#allocation2 + $0x80] sm:$0x1] %v627_v47 }
  0x57   : > { %7679 = vmatmul.mubr.bf16.gmra.mrb[20].mxu1 %v693_v51  ;;  %v576_v51 = vld [vmem:[#allocation2 + $0x90] sm:$0x1] }
  0x58   : > { %7682 = vmatprep.mubr.bf16.mxu1 %v694_v52  ;;  %v577_v52 = vsel %vm8873_vm2, 0, %v576_v51 }
  0x59   : > { %578 = vst [vmem:[#allocation2 + $0x90] sm:$0x1] %v577_v52 }
  0x5f   : > { %7683 = vmatmul.mubr.bf16.gmra.mrb[24].mxu1 %v695_v57  ;;  %v629_v57 = vld [vmem:[#allocation2 + $0x8c] sm:$0x1] }
  0x60   : > { %7686 = vmatprep.mubr.bf16.mxu1 %v696_v58  ;;  %v630_v58 = vsel %vm8961_vm5, 0, %v629_v57 }
  0x61   : > { %631 = vst [vmem:[#allocation2 + $0x8c] sm:$0x1] %v630_v58 }
  0x67   : > { %7687 = vmatmul.mubr.bf16.gmra.mrb[28].mxu1 %v697_v61  ;;  %v579_v61 = vld [vmem:[#allocation2 + $0x9c] sm:$0x1] }
  0x68   : > { %7706 = vmatprep.mubr.msk.bf16.mxu1 %vm8740_vm3, %v8739_v22  ;;  %v580_v62 = vsel %vm8873_vm2, 0, %v579_v61 }
  0x69   : > { %581 = vst [vmem:[#allocation2 + $0x9c] sm:$0x1] %v580_v62 }
  0x6f   : > { %7707 = vmatmul.mubr.bf16.vlgmr.msra.gmra.mrb[32].mxu1 %v1483_v4  ;;  %v639_v4 = vsel %vm8961_vm5, 0, %v638_v63 }
  0x70   : > { %7711 = vmatpush3.bf16.msra.mxu1 %v8812_v0  ;;  %7726 = vmatprep.mubr.msk.bf16.mxu1 %vm8740_vm3, %v8739_v22  ;;  %v8502_v0 = vld [vmem:[%s10954_s4 + $0xd0] sm:$0xff]   ;;  %640 = vst [vmem:[#allocation2 + $0xb0] sm:$0x1] %v639_v4 }
  0x71   : > { %7712 = vmatprep.subr.bf16.mxu1 %v8739_v22  ;;  %7878 = vmatprep.subr.bf16.mxu0 %v8502_v0 }
  0x72   : > { %7879 = vmatpush3.bf16.msra.mxu0 %v8502_v0  ;;  %v635_v0 = vld [vmem:[#allocation2 + $0xa4] sm:$0x1] }
  0x73   : > { %7880 = vmatprep.subr.bf16.mxu0 %v8503_v6 }
  0x74   : > { %7713 = vmatpush3.bf16.msra.mxu1 %v8817_v1  ;;  %v543_v1 = vld [vmem:[#allocation2 + $0xc] sm:$0x1] }
  0x75   : > { %7714 = vmatprep.subr.bf16.mxu1 %v8739_v22 }
  0x76   : > { %7881 = vmatpush3.bf16.msra.mxu0 %v8503_v6  ;;  %v585_v6 = vld [vmem:[#allocation2 + $0xb4] sm:$0x1] }
  0x77   : > { %7882 = vmatprep.subr.bf16.mxu0 %v8504_v18 }
  0x78   : > { %7715 = vmatpush3.bf16.msra.mxu1 %v8825_v2  ;;  %v544_v2 = vsel %vm8873_vm2, 0, %v543_v1  ;;  %v636_v1 = vsel %vm8961_vm5, 0, %v635_v0 }
  0x79   : > { %7716 = vmatprep.subr.bf16.mxu1 %v8739_v22  ;;  %545 = vst [vmem:[#allocation2 + $0xc] sm:$0x1] %v544_v2  ;;  %637 = vst [vmem:[#allocation2 + $0xa4] sm:$0x1] %v636_v1  ;;  %v588_v2 = vld [vmem:[#allocation2 + $0xc0] sm:$0x1] }
  0x7a   : > { %7883 = vmatpush3.bf16.msra.mxu0 %v8504_v18  ;;  %v596_v18 = vld [vmem:[#allocation2 + $0x8] sm:$0x1] }
  0x7c   : > { %7717 = vmatpush3.bf16.msra.mxu1 %v8840_v3  ;;  %v8591_v3 = vld [vmem:[%s10954_s4 + $0xb8] sm:$0xff]  }
  0x7d   : > { %7718 = vmatprep.subr.bf16.mxu1 %v8739_v22 }
  0x80   : > { %7719 = vmatpush3.bf16.msra.mxu1 %v8849_v7  ;;  %v603_v7 = vsel %vm8961_vm5, 0, %v602_v5  ;;  %v589_v5 = vsel %vm8873_vm2, 0, %v588_v2  ;;  %v1366_v62 = vld [vmem:[#allocation2 + $0xc] sm:$0xf] }
  0x81   : > { %7720 = vmatprep.subr.bf16.mxu1 %v8739_v22  ;;  %604 = vst [vmem:[#allocation2 + $0x20] sm:$0x1] %v603_v7  ;;  %590 = vst [vmem:[#allocation2 + $0xc0] sm:$0x1] %v589_v5  ;;  %v586_v7 = vsel %vm8873_vm2, 0, %v585_v6 }
  0x82   : > { %587 = vst [vmem:[#allocation2 + $0xb4] sm:$0x1] %v586_v7 }
  0x84   : > { %7721 = vmatpush3.bf16.msra.mxu1 %v8856_v8  ;;  %v599_v8 = vld [vmem:[#allocation2 + $0x14] sm:$0x1] }
  0x85   : > { %7722 = vmatprep.subr.bf16.mxu1 %v8739_v22  ;;  %v600_v10 = vsel %vm8961_vm5, 0, %v599_v8  ;;  %v644_v8 = vld [vmem:[#allocation2 + $0xc8] sm:$0x1] }
  0x86   : > { %601 = vst [vmem:[#allocation2 + $0x14] sm:$0x1] %v600_v10  ;;  %v645_v10 = vsel %vm8961_vm5, 0, %v644_v8 }
  0x87   : > { %646 = vst [vmem:[#allocation2 + $0xc8] sm:$0x1] %v645_v10 }
  0x88   : > { %7723 = vmatpush3.bf16.msra.mxu1 %v8862_v9  ;;  %v550_v9 = vsel %vm8873_vm2, 0, %v549_v15  ;;  %v8526_v15 = vld [vmem:[%s10954_s4 + $0x40] sm:$0xff]  }
  0x89   : > { %7724 = vmatprep.subr.bf16.mxu1 %v8739_v22  ;;  %551 = vst [vmem:[#allocation2 + $0x24] sm:$0x1] %v550_v9  ;;  %v558_v22 = vld [vmem:[#allocation2 + $0x48] sm:$0x1]  ;;  %v540_v9 = vld [vmem:[#allocation2] sm:$0x1] }
  0x8a   : > { %v559_v23 = vsel %vm8873_vm2, 0, %v558_v22  ;;  %v541_v16 = vsel %vm8873_vm2, 0, %v540_v9  ;;  %v8537_v22 = vld [vmem:[%s10954_s4 + $0x68] sm:$0xff]   ;;  %v1377_v6 = vld [vmem:[#allocation2 + $0x20] sm:$0x1] }
  0x8b   : > { %560 = vst [vmem:[#allocation2 + $0x48] sm:$0x1] %v559_v23  ;;  %542 = vst [vmem:[#allocation2] sm:$0x1] %v541_v16  ;;  %v8539_v23 = vld [vmem:[%s10954_s4 + $0x70] sm:$0xff]  }
  0x8c   : > { %7725 = vmatpush3.bf16.msra.mxu1 %v8880_v14  ;;  %v8505_v14 = vld [vmem:[%s10954_s4 + $0xe8] sm:$0xff]  }
  0x8d   : > { %7884 = vmatprep.subr.bf16.mxu0 %v8505_v14  ;;  %7730 = vmatprep.subr.bf16.mxu1 %v8526_v15 }
  0x8e   : > { %7885 = vmatpush3.bf16.msra.mxu0 %v8505_v14  ;;  %v597_v14 = vsel %vm8961_vm5, 0, %v596_v18 }
  0x8f   : > { %7886 = vmatprep.subr.bf16.mxu0 %v8506_v21  ;;  %7727 = vmatmul.mubr.bf16.vlgmr.msra.gmra.mrb[36].mxu1 %v1568_v34  ;;  %598 = vst [vmem:[#allocation2 + $0x8] sm:$0x1] %v597_v14 }
  0x90   : > { %7731 = vmatpush3.bf16.msra.mxu1 %v8526_v15  ;;  %v1370_v15 = vld [vmem:[#allocation2 + $0x14] sm:$0x1] }
  0x91   : > { %7732 = vmatprep.subr.bf16.mxu1 %v8527_v17 }
  0x92   : > { %7887 = vmatpush3.bf16.msra.mxu0 %v8506_v21  ;;  %v8536_v21 = vld [vmem:[%s10954_s4 + $0x60] sm:$0xff]  }
  0x93   : > { %7888 = vmatprep.subr.bf16.mxu0 %v8507_v28 }
  0x94   : > { %7733 = vmatpush3.bf16.msra.mxu1 %v8527_v17 }
  0x95   : > { %7734 = vmatprep.subr.bf16.mxu1 %v8531_v19 }
  0x96   : > { %7889 = vmatpush3.bf16.msra.mxu0 %v8507_v28 }
  0x97   : > { %7922 = vmatprep.subr.bf16.mxu0 %v9024_v48 }
  0x98   : > { %7735 = vmatpush3.bf16.msra.mxu1 %v8531_v19 }
  0x99   : > { %7736 = vmatprep.subr.bf16.mxu1 %v8532_v20 }
  0x9c   : > { %7737 = vmatpush3.bf16.msra.mxu1 %v8532_v20 }
  0x9d   : > { %7738 = vmatprep.subr.bf16.mxu1 %v8536_v21 }
  0xa0   : > { %7739 = vmatpush3.bf16.msra.mxu1 %v8536_v21 }
  0xa1   : > { %7740 = vmatprep.subr.bf16.mxu1 %v8537_v22 }
  0xa4   : > { %7741 = vmatpush3.bf16.msra.mxu1 %v8537_v22 }
  0xa5   : > { %7742 = vmatprep.subr.bf16.mxu1 %v8539_v23 }
  0xa8   : > { %7743 = vmatpush3.bf16.msra.mxu1 %v8539_v23 }
  0xa9   : > { %7744 = vmatprep.subr.bf16.mxu1 %v8540_v24 }
  0xac   : > { %7745 = vmatpush3.bf16.msra.mxu1 %v8540_v24 }
 0x102   : > { %v7660_v26 = vpop.f32.mrb[0].mxu1 }
 0x103   : > { %v795_v27 = vadd.f32 %v7660_v26, %v9084_v25  ;;  %v786_v28 = vpop.f32.mrb[1].mxu1 }
 0x104   : > { %v787_v29 = vadd.f32 %v9084_v25, %v786_v28  ;;  %v7661_v30 = vpop.f32.mrb[2].mxu1 }
 0x105   : > { %v915_v31 = vmax.f32 %v795_v27, 0.0  ;;  %v798_v32 = vadd.f32 %v7661_v30, %v9084_v25  ;;  %v789_v33 = vpop.f32.mrb[3].mxu1 }
 0x106   : > { %v913_v34 = vmax.f32 %v787_v29, 0.0  ;;  %v790_v35 = vadd.f32 %v9084_v25, %v789_v33  ;;  %v1387_v33 = vld [vmem:[#allocation2 + $0x30] sm:$0xf] }
 0x107   : > { %v7325_v36 = vpack.c.bf16 %v915_v31, %v915_v31  ;;  %v916_v37 = vmax.f32 %v798_v32, 0.0 }
 0x108   : > { %v7323_v38 = vpack.c.bf16 %v913_v34, %v913_v34  ;;  %v914_v39 = vmax.f32 %v790_v35, 0.0 }
 0x109   : > { %v1061_v40 = vshrl.u32 %v7325_v36, 16  ;;  %v7326_v41 = vpack.c.bf16 %v916_v37, %v916_v37  ;;  %v1064_v42 = vshll.u32 %v7325_v36, 16 }
 0x10a   : > { %v1044_v43 = vshrl.u32 %v7323_v38, 16  ;;  %v1047_v44 = vshll.u32 %v7323_v38, 16  ;;  %v7324_v45 = vpack.c.bf16 %v914_v39, %v914_v39  ;;  %v7664_v46 = vpop.f32.mrb[4].mxu1 }
 0x10b   : > { %v1063_v47 = vrot.slane %v1061_v40, 7  ;;  %v1069_v49 = vshrl.u32 %v7326_v41, 16  ;;  %v1072_v50 = vshll.u32 %v7326_v41, 16  ;;  %v811_v51 = vadd.f32 %v7664_v46, %v9084_v25  ;;  %v802_v52 = vpop.f32.mrb[5].mxu1  ;;  %v1380_v40 = vld [vmem:[#allocation2 + $0x24] sm:$0xf] }
 0x10c   : > { %v1046_v55 = vrot.slane %v1044_v43, 7  ;;  %v1052_v56 = vshrl.u32 %v7324_v45, 16  ;;  %v1055_v57 = vshll.u32 %v7324_v45, 16  ;;  %v803_v58 = vadd.f32 %v9084_v25, %v802_v52  ;;  %v7665_v59 = vpop.f32.mrb[6].mxu1 }
 0x10d   : > { %v1066_v60 = vor.u32 %v1064_v42, %v1063_v47  ;;  %v1067_v61 = vrot.slane %v1063_v47, 4  ;;  %v1071_v63 = vrot.slane %v1069_v49, 7  ;;  %v919_v4 = vmax.f32 %v811_v51, 0.0  ;;  %v805_v0 = vpop.f32.mrb[7].mxu1 }
 0x10e   : > { %v1049_v1 = vor.u32 %v1047_v44, %v1046_v55  ;;  %v1050_v2 = vrot.slane %v1046_v55, 4  ;;  %v1054_v7 = vrot.slane %v1052_v56, 7  ;;  %v917_v8 = vmax.f32 %v803_v58, 0.0 }
 0x10f   : > { %v1374_v10 = vsel %vm9092_vm8, %v1066_v60, %v1373_v54  ;;  %v1074_v11 = vor.u32 %v1072_v50, %v1071_v63  ;;  %v1076_v13 = vrot.slane %v1071_v63, 4  ;;  %v7329_v9 = vpack.c.bf16 %v919_v4, %v919_v4  ;;  %v1391_v63 = vld [vmem:[#allocation2 + $0x38] sm:$0x1]  ;;  %v1384_v4 = vld [vmem:[#allocation2 + $0x2c] sm:$0x1] }
 0x110   : > { %1375 = vst [vmem:[#allocation2 + $0x18] sm:$0xf] %v1374_v10  ;;  %v1367_v16 = vsel %vm9092_vm8, %v1049_v1, %v1366_v62  ;;  %v1057_v17 = vor.u32 %v1055_v57, %v1054_v7  ;;  %v1059_v18 = vrot.slane %v1054_v7, 4  ;;  %v7327_v14 = vpack.c.bf16 %v917_v8, %v917_v8  ;;  %v8512_v62 = vld [vmem:[%s10954_s4 + $0x108] sm:$0xff]  }
 0x111   : > { %1368 = vst [vmem:[#allocation2 + $0xc] sm:$0xf] %v1367_v16  ;;  %v1075_v19 = vsel %vm9099_vm9, %v1067_v61, %v1074_v11  ;;  %v1378_v20 = vsel %vm8873_vm2, %v1076_v13, %v1377_v6  ;;  %v1095_v21 = vshrl.u32 %v7329_v9, 16  ;;  %v1098_v24 = vshll.u32 %v7329_v9, 16  ;;  %v1401_v13 = vld [vmem:[#allocation2 + $0x48] sm:$0xf] }
 0x112   : > { %1376 = vst [vmem:[#allocation2 + $0x1c] sm:$0xf] %v1075_v19  ;;  %1379 = vst [vmem:[#allocation2 + $0x20] sm:$0x1] %v1378_v20  ;;  %v1058_v22 = vsel %vm9099_vm9, %v1050_v2, %v1057_v17  ;;  %v1371_v23 = vsel %vm8873_vm2, %v1059_v18, %v1370_v15  ;;  %v1078_v26 = vshrl.u32 %v7327_v14, 16  ;;  %v7668_v27 = vpop.f32.mrb[8].mxu1  ;;  %v814_v29 = vadd.f32 %v7665_v59, %v9084_v25 }
 0x113   : > { %1369 = vst [vmem:[#allocation2 + $0x10] sm:$0xf] %v1058_v22  ;;  %1372 = vst [vmem:[#allocation2 + $0x14] sm:$0x1] %v1371_v23  ;;  %v9115_v28 = vrot.slane %v1095_v21, 7  ;;  %v806_v30 = vadd.f32 %v9084_v25, %v805_v0  ;;  %v827_v31 = vadd.f32 %v7668_v27, %v9084_v25  ;;  %v818_v32 = vpop.f32.mrb[9].mxu1 }
 0x114   : > { %v9120_v34 = vrot.slane %v1078_v26, 7  ;;  %v1081_v35 = vshll.u32 %v7327_v14, 16  ;;  %v819_v36 = vadd.f32 %v9084_v25, %v818_v32  ;;  %v7669_v37 = vpop.f32.mrb[10].mxu1  ;;  %v920_v41 = vmax.f32 %v814_v29, 0.0  ;;  %v1394_v27 = vld [vmem:[#allocation2 + $0x3c] sm:$0xf] }
 0x115   : > { %v1100_v38 = vor.u32 %v1098_v24, %v9115_v28  ;;  %v1101_v39 = vrot.slane %v9115_v28, 4  ;;  %v918_v42 = vmax.f32 %v806_v30, 0.0  ;;  %v821_v43 = vpop.f32.mrb[11].mxu1  ;;  %v923_v46 = vmax.f32 %v827_v31, 0.0 }
 0x116   : > { %v1083_v44 = vor.u32 %v1081_v35, %v9120_v34  ;;  %v1084_v45 = vrot.slane %v9120_v34, 4  ;;  %v921_v47 = vmax.f32 %v819_v36, 0.0  ;;  %v7330_v50 = vpack.c.bf16 %v920_v41, %v920_v41 }
 0x117   : > { %v1388_v49 = vsel %vm9092_vm8, %v1100_v38, %v1387_v33  ;;  %v7328_v51 = vpack.c.bf16 %v918_v42, %v918_v42  ;;  %v830_v52 = vadd.f32 %v7669_v37, %v9084_v25  ;;  %v7333_v55 = vpack.c.bf16 %v923_v46, %v923_v46  ;;  %v8515_v37 = vld [vmem:[%s10954_s4 + $0x110] sm:$0xff]  }
 0x118   : > { %1389 = vst [vmem:[#allocation2 + $0x30] sm:$0xf] %v1388_v49  ;;  %v1381_v54 = vsel %vm9092_vm8, %v1083_v44, %v1380_v40  ;;  %v7331_v56 = vpack.c.bf16 %v921_v47, %v921_v47  ;;  %v822_v57 = vadd.f32 %v9084_v25, %v821_v43  ;;  %v1103_v58 = vshrl.u32 %v7330_v50, 16 }
 0x119   : > { %1382 = vst [vmem:[#allocation2 + $0x24] sm:$0xf] %v1381_v54  ;;  %v1106_v59 = vshll.u32 %v7330_v50, 16  ;;  %v1086_v60 = vshrl.u32 %v7328_v51, 16  ;;  %v1089_v61 = vshll.u32 %v7328_v51, 16  ;;  %v1129_v0 = vshrl.u32 %v7333_v55, 16 }
 0x11a   : > { %v1132_v1 = vshll.u32 %v7333_v55, 16  ;;  %v1112_v2 = vshrl.u32 %v7331_v56, 16  ;;  %v1115_v6 = vshll.u32 %v7331_v56, 16  ;;  %v7672_v7 = vpop.f32.mrb[12].mxu1  ;;  %v8508_v8 = vld [vmem:[#allocation2 + $0xc] sm:$0xff]   ;;  %v1105_v10 = vrot.slane %v1103_v58, 7 }
 0x11b   : > { %v1088_v11 = vrot.slane %v1086_v60, 7  ;;  %v924_v15 = vmax.f32 %v830_v52, 0.0  ;;  %v922_v9 = vmax.f32 %v822_v57, 0.0  ;;  %v834_v16 = vpop.f32.mrb[13].mxu1  ;;  %v8510_v17 = vld [vmem:[#allocation2 + $0x18] sm:$0xff]   ;;  %v9136_v18 = vrot.slane %v1129_v0, 7  ;;  %7890 = vmatprep.mubr.bf16.mxu0 %v8508_v8 }
 0x11c   : > { %v9138_v14 = vrot.slane %v1112_v2, 7  ;;  %v843_v19 = vadd.f32 %v7672_v7, %v9084_v25  ;;  %v835_v20 = vadd.f32 %v9084_v25, %v834_v16  ;;  %v7673_v21 = vpop.f32.mrb[14].mxu1  ;;  %v1108_v22 = vor.u32 %v1106_v59, %v1105_v10  ;;  %7891 = vmatmul.mubr.bf16.vlgmr.msra.gmra.mrb[0].mxu0 %v8510_v17  ;;  %v1405_v51 = vld [vmem:[#allocation2 + $0x50] sm:$0x1]  ;;  %v8518_v58 = vld [vmem:[%s10954_s4 + $0x118] sm:$0xff]   ;;  %v8521_v16 = vld [vmem:[%s10954_s4 + $0x120] sm:$0xff]  }
 0x11d   : > { %v1110_v23 = vrot.slane %v1105_v10, 4  ;;  %v1091_v24 = vor.u32 %v1089_v61, %v1088_v11  ;;  %v1093_v26 = vrot.slane %v1088_v11, 4  ;;  %v837_v28 = vpop.f32.mrb[15].mxu1  ;;  %v1134_v29 = vor.u32 %v1132_v1, %v9136_v18  ;;  %7923 = vmatpush3.bf16.msra.mxu0 %v9024_v48  ;;  %v1398_v61 = vld [vmem:[#allocation2 + $0x44] sm:$0x1] }
 0x11e   : > { %v1135_v30 = vrot.slane %v9136_v18, 4  ;;  %v1117_v31 = vor.u32 %v1115_v6, %v9138_v14  ;;  %v1118_v32 = vrot.slane %v9138_v14, 4  ;;  %v1109_v33 = vsel %vm9099_vm9, %v1101_v39, %v1108_v22  ;;  %7924 = vmatprep.subr.bf16.mxu0 %v8512_v62 }
 0x11f   : > { %v1392_v34 = vsel %vm8873_vm2, %v1110_v23, %v1391_v63  ;;  %v1092_v35 = vsel %vm9099_vm9, %v1084_v45, %v1091_v24  ;;  %v1385_v36 = vsel %vm8873_vm2, %v1093_v26, %v1384_v4  ;;  %1390 = vst [vmem:[#allocation2 + $0x34] sm:$0xf] %v1109_v33  ;;  %v1402_v48 = vsel %vm9092_vm8, %v1134_v29, %v1401_v13 }
 0x120   : > { %1393 = vst [vmem:[#allocation2 + $0x38] sm:$0x1] %v1392_v34  ;;  %1383 = vst [vmem:[#allocation2 + $0x28] sm:$0xf] %v1092_v35  ;;  %v1395_v38 = vsel %vm9092_vm8, %v1117_v31, %v1394_v27  ;;  %v7334_v39 = vpack.c.bf16 %v924_v15, %v924_v15  ;;  %v7332_v40 = vpack.c.bf16 %v922_v9, %v922_v9  ;;  %v927_v41 = vmax.f32 %v843_v19, 0.0 }
 0x121   : > { %1386 = vst [vmem:[#allocation2 + $0x2c] sm:$0x1] %v1385_v36  ;;  %1403 = vst [vmem:[#allocation2 + $0x48] sm:$0xf] %v1402_v48  ;;  %v925_v42 = vmax.f32 %v835_v20, 0.0  ;;  %v846_v43 = vadd.f32 %v7673_v21, %v9084_v25  ;;  %v838_v44 = vadd.f32 %v9084_v25, %v837_v28  ;;  %7925 = vmatpush3.bf16.msra.mxu0 %v8512_v62 }
 0x122   : > { %1396 = vst [vmem:[#allocation2 + $0x3c] sm:$0xf] %v1395_v38  ;;  %v1137_v45 = vshrl.u32 %v7334_v39, 16  ;;  %v1140_v46 = vshll.u32 %v7334_v39, 16  ;;  %v1120_v47 = vshrl.u32 %v7332_v40, 16  ;;  %v1123_v49 = vshll.u32 %v7332_v40, 16  ;;  %7926 = vmatprep.subr.bf16.mxu0 %v8515_v37 }
 0x123   : > { %v7676_v50 = vpop.f32.mrb[16].mxu1  ;;  %v7337_v52 = vpack.c.bf16 %v927_v41, %v927_v41  ;;  %v7335_v54 = vpack.c.bf16 %v925_v42, %v925_v42  ;;  %v928_v55 = vmax.f32 %v846_v43, 0.0  ;;  %v926_v56 = vmax.f32 %v838_v44, 0.0  ;;  %v1415_v15 = vld [vmem:[#allocation2 + $0x60] sm:$0xf] }
 0x124   : > { %v850_v57 = vpop.f32.mrb[17].mxu1  ;;  %v1139_v59 = vrot.slane %v1137_v45, 7  ;;  %v1122_v60 = vrot.slane %v1120_v47, 7  ;;  %v859_v63 = vadd.f32 %v7676_v50, %v9084_v25  ;;  %v1408_v9 = vld [vmem:[#allocation2 + $0x54] sm:$0xf]  ;;  %v8524_v45 = vld [vmem:[%s10954_s4 + $0x128] sm:$0xff]  }
 0x125   : > { %v851_v4 = vadd.f32 %v9084_v25, %v850_v57  ;;  %v7677_v0 = vpop.f32.mrb[18].mxu1  ;;  %v1163_v62 = vshrl.u32 %v7337_v52, 16  ;;  %v1166_v1 = vshll.u32 %v7337_v52, 16  ;;  %v1146_v2 = vshrl.u32 %v7335_v54, 16  ;;  %7927 = vmatpush3.bf16.msra.mxu0 %v8515_v37  ;;  %v1412_v47 = vld [vmem:[#allocation2 + $0x5c] sm:$0x1] }
 0x126   : > { %v1149_v6 = vshll.u32 %v7335_v54, 16  ;;  %v853_v7 = vpop.f32.mrb[19].mxu1  ;;  %v1142_v8 = vor.u32 %v1140_v46, %v1139_v59  ;;  %v1144_v10 = vrot.slane %v1139_v59, 4  ;;  %v1125_v11 = vor.u32 %v1123_v49, %v1122_v60  ;;  %v8513_v23 = vld [vmem:[#allocation2 + $0x30] sm:$0xff]   ;;  %7928 = vmatprep.subr.bf16.mxu0 %v8518_v58  ;;  %v1419_v46 = vld [vmem:[#allocation2 + $0x68] sm:$0x1] }
 0x127   : > { %v1127_v13 = vrot.slane %v1122_v60, 4  ;;  %v1165_v17 = vrot.slane %v1163_v62, 7  ;;  %v1148_v19 = vrot.slane %v1146_v2, 7  ;;  %v7338_v20 = vpack.c.bf16 %v928_v55, %v928_v55  ;;  %v8511_v22 = vld [vmem:[#allocation2 + $0x24] sm:$0xff]   ;;  %v1429_v2 = vld [vmem:[#allocation2 + $0x78] sm:$0xf] }
 0x128   : > { %v7336_v21 = vpack.c.bf16 %v926_v56, %v926_v56  ;;  %v1143_v24 = vsel %vm9099_vm9, %v1135_v30, %v1142_v8  ;;  %v1406_v26 = vsel %vm8873_vm2, %v1144_v10, %v1405_v51  ;;  %v1126_v27 = vsel %vm9099_vm9, %v1118_v32, %v1125_v11  ;;  %7894 = vmatprep.mubr.bf16.mxu0 %v8511_v22 }
 0x129   : > { %v1399_v28 = vsel %vm8873_vm2, %v1127_v13, %v1398_v61  ;;  %1404 = vst [vmem:[#allocation2 + $0x4c] sm:$0xf] %v1143_v24  ;;  %1407 = vst [vmem:[#allocation2 + $0x50] sm:$0x1] %v1406_v26  ;;  %v1168_v29 = vor.u32 %v1166_v1, %v1165_v17  ;;  %v1169_v18 = vrot.slane %v1165_v17, 4  ;;  %v1151_v31 = vor.u32 %v1149_v6, %v1148_v19 }
 0x12a   : > { %1397 = vst [vmem:[#allocation2 + $0x40] sm:$0xf] %v1126_v27  ;;  %1400 = vst [vmem:[#allocation2 + $0x44] sm:$0x1] %v1399_v28  ;;  %v1152_v33 = vrot.slane %v1148_v19, 4  ;;  %v1171_v30 = vshrl.u32 %v7338_v20, 16  ;;  %7895 = vmatmul.mubr.bf16.gmra.mrb[4].mxu0 %v8513_v23  ;;  %v862_v42 = vadd.f32 %v7677_v0, %v9084_v25  ;;  %v854_v43 = vadd.f32 %v9084_v25, %v853_v7 }
 0x12b   : > { %v1174_v34 = vshll.u32 %v7338_v20, 16  ;;  %v1154_v35 = vshrl.u32 %v7336_v21, 16  ;;  %v1157_v36 = vshll.u32 %v7336_v21, 16  ;;  %v7680_v14 = vpop.f32.mrb[20].mxu1  ;;  %v1416_v32 = vsel %vm9092_vm8, %v1168_v29, %v1415_v15  ;;  %7929 = vmatpush3.bf16.msra.mxu0 %v8518_v58  ;;  %v8529_v15 = vld [vmem:[%s10954_s4 + $0x130] sm:$0xff]  }
 0x12c   : > { %v1409_v37 = vsel %vm9092_vm8, %v1151_v31, %v1408_v9  ;;  %v931_v48 = vmax.f32 %v859_v63, 0.0  ;;  %v929_v38 = vmax.f32 %v851_v4, 0.0  ;;  %v866_v39 = vpop.f32.mrb[21].mxu1  ;;  %1417 = vst [vmem:[#allocation2 + $0x60] sm:$0xf] %v1416_v32  ;;  %v1173_v40 = vrot.slane %v1171_v30, 7  ;;  %7930 = vmatprep.subr.bf16.mxu0 %v8521_v16 }
 0x12d   : > { %1410 = vst [vmem:[#allocation2 + $0x54] sm:$0xf] %v1409_v37  ;;  %v1156_v41 = vrot.slane %v1154_v35, 7  ;;  %v7681_v44 = vpop.f32.mrb[22].mxu1  ;;  %v875_v51 = vadd.f32 %v7680_v14, %v9084_v25  ;;  %v867_v52 = vadd.f32 %v9084_v25, %v866_v39  ;;  %v932_v10 = vmax.f32 %v862_v42, 0.0  ;;  %v8534_v32 = vld [vmem:[%s10954_s4 + $0x138] sm:$0xff]  }
 0x12e   : > { %v7341_v49 = vpack.c.bf16 %v931_v48, %v931_v48  ;;  %v7339_v50 = vpack.c.bf16 %v929_v38, %v929_v38  ;;  %v869_v54 = vpop.f32.mrb[23].mxu1  ;;  %v1176_v55 = vor.u32 %v1174_v34, %v1173_v40  ;;  %v1178_v56 = vrot.slane %v1173_v40, 4  ;;  %v1422_v9 = vld [vmem:[#allocation2 + $0x6c] sm:$0xf]  ;;  %v1433_v40 = vld [vmem:[#allocation2 + $0x80] sm:$0x1] }
 0x12f   : > { %v1159_v57 = vor.u32 %v1157_v36, %v1156_v41  ;;  %v1161_v58 = vrot.slane %v1156_v41, 4  ;;  %7931 = vmatpush3.bf16.msra.mxu0 %v8521_v16  ;;  %v930_v11 = vmax.f32 %v854_v43, 0.0  ;;  %v935_v16 = vmax.f32 %v875_v51, 0.0  ;;  %v1426_v41 = vld [vmem:[#allocation2 + $0x74] sm:$0x1] }
 0x130   : > { %v1197_v59 = vshrl.u32 %v7341_v49, 16  ;;  %v1200_v60 = vshll.u32 %v7341_v49, 16  ;;  %v1180_v61 = vshrl.u32 %v7339_v50, 16  ;;  %v1183_v63 = vshll.u32 %v7339_v50, 16  ;;  %7932 = vmatprep.subr.bf16.mxu0 %v8524_v45  ;;  %v8516_v13 = vld [vmem:[#allocation2 + $0x48] sm:$0xff]  }
 0x131   : > { %v1177_v4 = vsel %vm9099_vm9, %v1169_v18, %v1176_v55  ;;  %v1420_v0 = vsel %vm8873_vm2, %v1178_v56, %v1419_v46  ;;  %v1160_v62 = vsel %vm9099_vm9, %v1152_v33, %v1159_v57  ;;  %v1413_v1 = vsel %vm8873_vm2, %v1161_v58, %v1412_v47  ;;  %v8514_v6 = vld [vmem:[#allocation2 + $0x3c] sm:$0xff]   ;;  %v1443_v49 = vld [vmem:[#allocation2 + $0x90] sm:$0xf] }
 0x132   : > { %1418 = vst [vmem:[#allocation2 + $0x64] sm:$0xf] %v1177_v4  ;;  %1421 = vst [vmem:[#allocation2 + $0x68] sm:$0x1] %v1420_v0  ;;  %v9203_v7 = vrot.slane %v1197_v59, 7  ;;  %v9205_v8 = vrot.slane %v1180_v61, 7  ;;  %v878_v19 = vadd.f32 %v7681_v44, %v9084_v25  ;;  %v870_v20 = vadd.f32 %v9084_v25, %v869_v54  ;;  %7898 = vmatprep.mubr.bf16.mxu0 %v8514_v6 }
 0x133   : > { %1411 = vst [vmem:[#allocation2 + $0x58] sm:$0xf] %v1160_v62  ;;  %1414 = vst [vmem:[#allocation2 + $0x5c] sm:$0x1] %v1413_v1  ;;  %v933_v17 = vmax.f32 %v867_v52, 0.0  ;;  %v7684_v21 = vpop.f32.mrb[24].mxu1  ;;  %7899 = vmatmul.mubr.bf16.gmra.mrb[8].mxu0 %v8516_v13  ;;  %v7342_v28 = vpack.c.bf16 %v932_v10, %v932_v10  ;;  %v7340_v29 = vpack.c.bf16 %v930_v11, %v930_v11 }
 0x134   : > { %v1202_v22 = vor.u32 %v1200_v60, %v9203_v7  ;;  %v1203_v23 = vrot.slane %v9203_v7, 4  ;;  %v1185_v24 = vor.u32 %v1183_v63, %v9205_v8  ;;  %v1186_v26 = vrot.slane %v9205_v8, 4  ;;  %v882_v27 = vpop.f32.mrb[25].mxu1  ;;  %7933 = vmatpush3.bf16.msra.mxu0 %v8524_v45  ;;  %v9236_v59 = vld [vmem:[%s10954_s4 + $0x140] sm:$0xff]  }
 0x135   : > { %v7345_v18 = vpack.c.bf16 %v935_v16, %v935_v16  ;;  %v7343_v31 = vpack.c.bf16 %v933_v17, %v933_v17  ;;  %v9216_v33 = vpop.f32.mrb[26].mxu1  ;;  %v936_v35 = vmax.f32 %v878_v19, 0.0  ;;  %v934_v36 = vmax.f32 %v870_v20, 0.0  ;;  %7934 = vmatprep.subr.bf16.mxu0 %v8529_v15  ;;  %v1436_v0 = vld [vmem:[#allocation2 + $0x84] sm:$0xf] }
 0x136   : > { %v1430_v30 = vsel %vm9092_vm8, %v1202_v22, %v1429_v2  ;;  %v1423_v34 = vsel %vm9092_vm8, %v1185_v24, %v1422_v9  ;;  %v9222_v14 = vpop.f32.mrb[27].mxu1  ;;  %v1205_v37 = vshrl.u32 %v7342_v28, 16  ;;  %v1208_v48 = vshll.u32 %v7342_v28, 16 }
 0x137   : > { %1431 = vst [vmem:[#allocation2 + $0x78] sm:$0xf] %v1430_v30  ;;  %1424 = vst [vmem:[#allocation2 + $0x6c] sm:$0xf] %v1423_v34  ;;  %v1188_v38 = vshrl.u32 %v7340_v29, 16  ;;  %v1191_v39 = vshll.u32 %v7340_v29, 16  ;;  %v7346_v50 = vpack.c.bf16 %v936_v35, %v936_v35  ;;  %v7344_v51 = vpack.c.bf16 %v934_v36, %v934_v36 }
 0x138   : > { %v1231_v42 = vshrl.u32 %v7345_v18, 16  ;;  %v1234_v43 = vshll.u32 %v7345_v18, 16  ;;  %v1214_v44 = vshrl.u32 %v7343_v31, 16  ;;  %v1217_v45 = vshll.u32 %v7343_v31, 16  ;;  %7935 = vmatpush3.bf16.msra.mxu0 %v8529_v15  ;;  %v1447_v31 = vld [vmem:[#allocation2 + $0x98] sm:$0x1] }
 0x139   : > { %v1207_v46 = vrot.slane %v1205_v37, 7  ;;  %v1190_v47 = vrot.slane %v1188_v38, 7  ;;  %v891_v56 = vadd.f32 %v7684_v21, %v9084_v25  ;;  %v883_v57 = vadd.f32 %v9084_v25, %v882_v27  ;;  %v8519_v58 = vld [vmem:[#allocation2 + $0x60] sm:$0xff]   ;;  %7936 = vmatprep.subr.bf16.mxu0 %v8534_v32  ;;  %v1440_v38 = vld [vmem:[#allocation2 + $0x8c] sm:$0x1] }
 0x13a   : > { %v8517_v52 = vld [vmem:[#allocation2 + $0x54] sm:$0xff]   ;;  %v9227_v54 = vrot.slane %v1231_v42, 7  ;;  %v9229_v55 = vrot.slane %v1214_v44, 7  ;;  %v7688_v62 = vpop.f32.mrb[28].mxu1  ;;  %v1239_v19 = vshrl.u32 %v7346_v50, 16  ;;  %v1242_v20 = vshll.u32 %v7346_v50, 16 }
 0x13b   : > { %v1210_v60 = vor.u32 %v1208_v48, %v1207_v46  ;;  %v1212_v61 = vrot.slane %v1207_v46, 4  ;;  %v1193_v63 = vor.u32 %v1191_v39, %v1190_v47  ;;  %v1195_v4 = vrot.slane %v1190_v47, 4  ;;  %7902 = vmatprep.mubr.bf16.mxu0 %v8517_v52  ;;  %v898_v8 = vpop.f32.mrb[29].mxu1  ;;  %v1457_v46 = vld [vmem:[#allocation2 + $0xa8] sm:$0xf] }
 0x13c   : > { %v1236_v1 = vor.u32 %v1234_v43, %v9227_v54  ;;  %v1237_v2 = vrot.slane %v9227_v54, 4  ;;  %v1219_v6 = vor.u32 %v1217_v45, %v9229_v55  ;;  %v1220_v7 = vrot.slane %v9229_v55, 4  ;;  %7903 = vmatmul.mubr.bf16.gmra.mrb[12].mxu0 %v8519_v58  ;;  %v9250_v9 = vpop.f32.mrb[30].mxu1  ;;  %v1450_v55 = vld [vmem:[#allocation2 + $0x9c] sm:$0xf] }
 0x13d   : > { %v1211_v10 = vsel %vm9099_vm9, %v1203_v23, %v1210_v60  ;;  %v1434_v11 = vsel %vm8873_vm2, %v1212_v61, %v1433_v40  ;;  %v1194_v13 = vsel %vm9099_vm9, %v1186_v26, %v1193_v63  ;;  %v1427_v15 = vsel %vm8873_vm2, %v1195_v4, %v1426_v41  ;;  %7937 = vmatpush3.bf16.msra.mxu0 %v8534_v32  ;;  %v9256_v21 = vpop.f32.mrb[31].mxu1  ;;  %v9268_v32 = vld [vmem:[%s10954_s4] sm:$0xff]  }
 0x13e   : > { %1432 = vst [vmem:[#allocation2 + $0x7c] sm:$0xf] %v1211_v10  ;;  %1435 = vst [vmem:[#allocation2 + $0x80] sm:$0x1] %v1434_v11  ;;  %v1444_v16 = vsel %vm9092_vm8, %v1236_v1, %v1443_v49  ;;  %v1437_v17 = vsel %vm9092_vm8, %v1219_v6, %v1436_v0  ;;  %7970 = vmatprep.subr.bf16.mxu0 %v9236_v59  ;;  %v1222_v22 = vshrl.u32 %v7344_v51, 16  ;;  %v1225_v23 = vshll.u32 %v7344_v51, 16 }
 0x13f   : > { %1425 = vst [vmem:[#allocation2 + $0x70] sm:$0xf] %v1194_v13  ;;  %1428 = vst [vmem:[#allocation2 + $0x74] sm:$0x1] %v1427_v15  ;;  %v939_v24 = vmax.f32 %v891_v56, 0.0  ;;  %v937_v26 = vmax.f32 %v883_v57, 0.0  ;;  %v894_v28 = vadd.f32 %v9216_v33, %v9084_v25  ;;  %v886_v29 = vadd.f32 %v9084_v25, %v9222_v14  ;;  %7778 = vmatprep.subr.bf16.mxu1 %v9268_v32 }
 0x140   : > { %1445 = vst [vmem:[#allocation2 + $0x90] sm:$0xf] %v1444_v16  ;;  %1438 = vst [vmem:[#allocation2 + $0x84] sm:$0xf] %v1437_v17  ;;  %v1241_v27 = vrot.slane %v1239_v19, 7  ;;  %v907_v18 = vadd.f32 %v7688_v62, %v9084_v25  ;;  %v1224_v30 = vrot.slane %v1222_v22, 7  ;;  %v899_v36 = vadd.f32 %v9084_v25, %v898_v8 }
 0x141   : > { %v7349_v34 = vpack.c.bf16 %v939_v24, %v939_v24  ;;  %v7347_v35 = vpack.c.bf16 %v937_v26, %v937_v26  ;;  %v940_v33 = vmax.f32 %v894_v28, 0.0  ;;  %v938_v39 = vmax.f32 %v886_v29, 0.0  ;;  %v1461_v22 = vld [vmem:[#allocation2 + $0xb0] sm:$0x1]  ;;  %v1454_v29 = vld [vmem:[#allocation2 + $0xa4] sm:$0x1] }
 0x142   : > { %v1244_v37 = vor.u32 %v1242_v20, %v1241_v27  ;;  %v1246_v48 = vrot.slane %v1241_v27, 4  ;;  %v1227_v40 = vor.u32 %v1225_v23, %v1224_v30  ;;  %v1229_v14 = vrot.slane %v1224_v30, 4  ;;  %v9270_v43 = vpop.f32.mrb[32].mxu1 }
 0x143   : > { %v1265_v41 = vshrl.u32 %v7349_v34, 16  ;;  %v1268_v42 = vshll.u32 %v7349_v34, 16  ;;  %v1248_v47 = vshrl.u32 %v7347_v35, 16  ;;  %v1251_v49 = vshll.u32 %v7347_v35, 16  ;;  %v7708_v50 = vpop.f32.mrb[33].mxu1 }
 0x144   : > { %v1245_v44 = vsel %vm9099_vm9, %v1237_v2, %v1244_v37  ;;  %v1448_v45 = vsel %vm8873_vm2, %v1246_v48, %v1447_v31  ;;  %v1228_v51 = vsel %vm9099_vm9, %v1220_v7, %v1227_v40  ;;  %v1441_v52 = vsel %vm8873_vm2, %v1229_v14, %v1440_v38  ;;  %v1521_v0 = vpop.f32.mrb[34].mxu1  ;;  %v1471_v40 = vld [vmem:[#allocation2 + $0xc0] sm:$0xf] }
 0x145   : > { %1446 = vst [vmem:[#allocation2 + $0x94] sm:$0xf] %v1245_v44  ;;  %1449 = vst [vmem:[#allocation2 + $0x98] sm:$0x1] %v1448_v45  ;;  %v1267_v54 = vrot.slane %v1265_v41, 7  ;;  %v7350_v56 = vpack.c.bf16 %v940_v33, %v940_v33  ;;  %v1250_v58 = vrot.slane %v1248_v47, 7  ;;  %v7348_v60 = vpack.c.bf16 %v938_v39, %v938_v39 }
 0x146   : > { %v8520_v57 = vld [vmem:[#allocation2 + $0x6c] sm:$0xff]   ;;  %1439 = vst [vmem:[#allocation2 + $0x88] sm:$0xf] %v1228_v51  ;;  %1442 = vst [vmem:[#allocation2 + $0x8c] sm:$0x1] %v1441_v52  ;;  %v943_v61 = vmax.f32 %v907_v18, 0.0  ;;  %v910_v24 = vadd.f32 %v9250_v9, %v9084_v25  ;;  %v902_v26 = vadd.f32 %v9084_v25, %v9256_v21 }
 0x147   : > { %v941_v63 = vmax.f32 %v899_v36, 0.0  ;;  %v8522_v4 = vld [vmem:[#allocation2 + $0x78] sm:$0xff]   ;;  %v1270_v62 = vor.u32 %v1268_v42, %v1267_v54  ;;  %v1271_v1 = vrot.slane %v1267_v54, 4  ;;  %v1273_v2 = vshrl.u32 %v7350_v56, 16  ;;  %7906 = vmatprep.mubr.bf16.mxu0 %v8520_v57  ;;  %v7709_v13 = vpop.f32.mrb[35].mxu1 }
 0x148   : > { %v1276_v6 = vshll.u32 %v7350_v56, 16  ;;  %v1253_v7 = vor.u32 %v1251_v49, %v1250_v58  ;;  %v1254_v8 = vrot.slane %v1250_v58, 4  ;;  %v1256_v10 = vshrl.u32 %v7348_v60, 16  ;;  %7907 = vmatmul.mubr.bf16.gmra.mrb[16].mxu0 %v8522_v4  ;;  %v3564_v56 = vld [vmem:[#allocation2 + $0x10] sm:$0xf] }
 0x149   : > { %v1259_v11 = vshll.u32 %v7348_v60, 16  ;;  %v1458_v15 = vsel %vm9092_vm8, %v1270_v62, %v1457_v46  ;;  %v1275_v16 = vrot.slane %v1273_v2, 7  ;;  %v7353_v17 = vpack.c.bf16 %v943_v61, %v943_v61  ;;  %v1464_v46 = vld [vmem:[#allocation2 + $0xb4] sm:$0xf] }
 0x14a   : > { %v7351_v19 = vpack.c.bf16 %v941_v63, %v941_v63  ;;  %1459 = vst [vmem:[#allocation2 + $0xa8] sm:$0xf] %v1458_v15  ;;  %v1451_v20 = vsel %vm9092_vm8, %v1253_v7, %v1450_v55  ;;  %v1258_v23 = vrot.slane %v1256_v10, 7  ;;  %v944_v38 = vmax.f32 %v910_v24, 0.0  ;;  %v3563_v55 = vld [vmem:[#allocation2 + $0xc] sm:$0xf] }
 0x14b   : > { %1452 = vst [vmem:[#allocation2 + $0x9c] sm:$0xf] %v1451_v20  ;;  %v1278_v27 = vor.u32 %v1276_v6, %v1275_v16  ;;  %v1280_v28 = vrot.slane %v1275_v16, 4  ;;  %v1299_v18 = vshrl.u32 %v7353_v17, 16  ;;  %v1302_v31 = vshll.u32 %v7353_v17, 16 }
 0x14c   : > { %v1261_v30 = vor.u32 %v1259_v11, %v1258_v23  ;;  %v1263_v34 = vrot.slane %v1258_v23, 4  ;;  %v1282_v35 = vshrl.u32 %v7351_v19, 16  ;;  %v1285_v36 = vshll.u32 %v7351_v19, 16  ;;  %v8525_v42 = vld [vmem:[#allocation2 + $0x90] sm:$0xff]   ;;  %v3566_v20 = vld [vmem:[#allocation2 + $0x18] sm:$0xf] }
 0x14d   : > { %v1279_v37 = vsel %vm9099_vm9, %v1271_v1, %v1278_v27  ;;  %v1462_v48 = vsel %vm8873_vm2, %v1280_v28, %v1461_v22  ;;  %v1301_v9 = vrot.slane %v1299_v18, 7  ;;  %v8523_v33 = vld [vmem:[#allocation2 + $0x84] sm:$0xff]   ;;  %v942_v41 = vmax.f32 %v902_v26, 0.0 }
 0x14e   : > { %1460 = vst [vmem:[#allocation2 + $0xac] sm:$0xf] %v1279_v37  ;;  %1463 = vst [vmem:[#allocation2 + $0xb0] sm:$0x1] %v1462_v48  ;;  %v1262_v21 = vsel %vm9099_vm9, %v1254_v8, %v1261_v30  ;;  %v1455_v39 = vsel %vm8873_vm2, %v1263_v34, %v1454_v29  ;;  %v1284_v14 = vrot.slane %v1282_v35, 7  ;;  %v7354_v47 = vpack.c.bf16 %v944_v38, %v944_v38 }
 0x14f   : > { %1453 = vst [vmem:[#allocation2 + $0xa0] sm:$0xf] %v1262_v21  ;;  %1456 = vst [vmem:[#allocation2 + $0xa4] sm:$0x1] %v1455_v39  ;;  %v1304_v44 = vor.u32 %v1302_v31, %v1301_v9  ;;  %v1305_v45 = vrot.slane %v1301_v9, 4  ;;  %v1519_v49 = vadd.f32 %v9084_v25, %v9270_v43  ;;  %7910 = vmatprep.mubr.bf16.mxu0 %v8523_v33  ;;  %v3612_v2 = vshrl.u32 %v3563_v55, 16 }
 0x150   : > { %v1287_v50 = vor.u32 %v1285_v36, %v1284_v14  ;;  %v1288_v51 = vrot.slane %v1284_v14, 4  ;;  %v7352_v52 = vpack.c.bf16 %v942_v41, %v942_v41  ;;  %v1522_v54 = vadd.f32 %v9084_v25, %v1521_v0  ;;  %7911 = vmatmul.mubr.bf16.gmra.mrb[20].mxu0 %v8525_v42  ;;  %v1475_v0 = vld [vmem:[#allocation2 + $0xc8] sm:$0x1]  ;;  %v1468_v8 = vld [vmem:[#allocation2 + $0xbc] sm:$0x1] }
 0x151   : > { %v1472_v57 = vsel %vm9092_vm8, %v1304_v44, %v1471_v40  ;;  %v1307_v58 = vshrl.u32 %v7354_v47, 16  ;;  %v1310_v60 = vshll.u32 %v7354_v47, 16  ;;  %v1525_v61 = vmax.f32 %v1519_v49, 0.0  ;;  %v3565_v34 = vld [vmem:[#allocation2 + $0x14] sm:$0x1] }
 0x152   : > { %1473 = vst [vmem:[#allocation2 + $0xc0] sm:$0xf] %v1472_v57  ;;  %v1465_v63 = vsel %vm9092_vm8, %v1287_v50, %v1464_v46  ;;  %v1290_v43 = vshrl.u32 %v7352_v52, 16  ;;  %v1293_v4 = vshll.u32 %v7352_v52, 16  ;;  %v1526_v62 = vmax.f32 %v1522_v54, 0.0 }
 0x153   : > { %1466 = vst [vmem:[#allocation2 + $0xb4] sm:$0xf] %v1465_v63  ;;  %v1309_v25 = vrot.slane %v1307_v58, 7  ;;  %v1528_v1 = vmul.f32 0.0, %v1525_v61  ;;  %v3615_v6 = vshll.u32 %v3563_v55, 16  ;;  %v3621_v11 = vshll.u32 %v3564_v56, 16 }
 0x154   : > { %v1292_v7 = vrot.slane %v1290_v43, 7  ;;  %v1529_v10 = vmul.f32 0.0, %v1526_v62  ;;  %v3625_v13 = vshrl.u32 %v3564_v56, 16  ;;  %v3614_v19 = vrot.slane %v3612_v2, 4  ;;  %v1556_v37 = vld [vmem:[#allocation2] sm:$0xf] }
 0x155   : > { %v1312_v15 = vor.u32 %v1310_v60, %v1309_v25  ;;  %v1314_v16 = vrot.slane %v1309_v25, 4  ;;  %v7355_v17 = vpack.c.bf16 %v1528_v1, %v1528_v1  ;;  %v3617_v27 = vrot.slane %v3615_v6, 5  ;;  %v8530_v30 = vld [vmem:[#allocation2 + $0xa8] sm:$0xff]   ;;  %v3567_v49 = vld [vmem:[#allocation2 + $0x1c] sm:$0xf] }
 0x156   : > { %v1295_v22 = vor.u32 %v1293_v4, %v1292_v7  ;;  %v1297_v23 = vrot.slane %v1292_v7, 4  ;;  %v7356_v24 = vpack.c.bf16 %v1529_v10, %v1529_v10  ;;  %v8528_v26 = vld [vmem:[#allocation2 + $0x9c] sm:$0xff]   ;;  %v1560_v33 = vld [vmem:[#allocation2 + $0x8] sm:$0x1]  ;;  %v3623_v39 = vrot.slane %v3621_v11, 5 }
 0x157   : > { %v1313_v28 = vsel %vm9099_vm9, %v1305_v45, %v1312_v15  ;;  %v1476_v29 = vsel %vm8873_vm2, %v1314_v16, %v1475_v0  ;;  %v1537_v18 = vshrl.u32 %v7355_v17, 16  ;;  %v1540_v31 = vshll.u32 %v7355_v17, 16  ;;  %7914 = vmatprep.mubr.bf16.mxu0 %v8528_v26  ;;  %v3568_v50 = vld [vmem:[#allocation2 + $0x20] sm:$0x1]  ;;  %v3569_v56 = vld [vmem:[#allocation2 + $0x24] sm:$0xf] }
 0x158   : > { %1474 = vst [vmem:[#allocation2 + $0xc4] sm:$0xf] %v1313_v28  ;;  %1477 = vst [vmem:[#allocation2 + $0xc8] sm:$0x1] %v1476_v29  ;;  %v1296_v35 = vsel %vm9099_vm9, %v1288_v51, %v1295_v22  ;;  %v1469_v36 = vsel %vm8873_vm2, %v1297_v23, %v1468_v8  ;;  %v1545_v48 = vshrl.u32 %v7356_v24, 16  ;;  %v1548_v9 = vshll.u32 %v7356_v24, 16  ;;  %7915 = vmatmul.mubr.bf16.gmra.mrb[24].mxu0 %v8530_v30 }
 0x159   : > { %1467 = vst [vmem:[#allocation2 + $0xb8] sm:$0xf] %v1296_v35  ;;  %1470 = vst [vmem:[#allocation2 + $0xbc] sm:$0x1] %v1469_v36  ;;  %v1539_v38 = vrot.slane %v1537_v18, 7  ;;  %v3618_v21 = vor.u32 %v3617_v27, %v3614_v19  ;;  %v3627_v40 = vrot.slane %v3625_v13, 4 }
 0x15a   : > { %v1547_v14 = vrot.slane %v1545_v48, 7  ;;  %v3631_v41 = vshll.u32 %v3565_v34, 16  ;;  %v3636_v42 = vshrl.u32 %v3566_v20, 16  ;;  %v3639_v44 = vshll.u32 %v3566_v20, 16  ;;  %v3570_v0 = vld [vmem:[#allocation2 + $0x28] sm:$0xf] }
 0x15b   : > { %v1542_v45 = vor.u32 %v1540_v31, %v1539_v38  ;;  %v1543_v46 = vrot.slane %v1539_v38, 4  ;;  %v3628_v47 = vor.u32 %v3627_v40, %v3623_v39  ;;  %v3619_v54 = vrot.slane %v3618_v21, 4  ;;  %v3572_v1 = vld [vmem:[#allocation2 + $0x30] sm:$0xf]  ;;  %v3571_v8 = vld [vmem:[#allocation2 + $0x2c] sm:$0x1] }
 0x15c   : > { %v1550_v51 = vor.u32 %v1548_v9, %v1547_v14  ;;  %v1552_v52 = vrot.slane %v1547_v14, 4  ;;  %v3638_v55 = vrot.slane %v3636_v42, 4  ;;  %v10984_v58 = vmov 0  ;;  %v3573_v18 = vld [vmem:[#allocation2 + $0x34] sm:$0xf] }
 0x15d   : > { %v1557_v57 = vsel %vm9092_vm8, %v1542_v45, %v1556_v37  ;;  %v10985_v58 = vsel %vm9316_vm12, 4294967295, %v10984_v58  ;;  %v3629_v60 = vrot.slane %v3628_v47, 4  ;;  %v3633_v61 = vrot.slane %v3631_v41, 5  ;;  %v3574_v38 = vld [vmem:[#allocation2 + $0x38] sm:$0x1] }
 0x15e   : > { %10986 = vst [vmem:[#allocation3_spill] sm:$0xff] %v10985_v58  ;;  %v3641_v63 = vrot.slane %v3639_v44, 5  ;;  %1558 = vst [vmem:[#allocation2] sm:$0xf] %v1557_v57  ;;  %v1551_v43 = vsel %vm9099_vm9, %v1543_v46, %v1550_v51  ;;  %v1561_v4 = vsel %vm8873_vm2, %v1552_v52, %v1560_v33  ;;  %v3645_v62 = vshll.u32 %v3567_v49, 16 }
 0x15f   : > { %v3649_v25 = vshrl.u32 %v3567_v49, 16  ;;  %1559 = vst [vmem:[#allocation2 + $0x4] sm:$0xf] %v1551_v43  ;;  %1562 = vst [vmem:[#allocation2 + $0x8] sm:$0x1] %v1561_v4  ;;  %v3634_v2 = vsel %vm9316_vm12, %v3629_v60, %v3633_v61  ;;  %v3655_v7 = vshll.u32 %v3568_v50, 16  ;;  %v3624_v13 = vsel %vm9316_vm12, %v3619_v54, %v3623_v39 }
 0x160   : > { %v3642_v6 = vor.u32 %v3641_v63, %v3638_v55  ;;  %v3660_v10 = vshrl.u32 %v3569_v56, 16  ;;  %v8533_v11 = vld [vmem:[#allocation2 + $0xb4] sm:$0xff]   ;;  %v3647_v15 = vrot.slane %v3645_v62, 5  ;;  %v3663_v17 = vshll.u32 %v3569_v56, 16  ;;  %v8535_v19 = vld [vmem:[#allocation2 + $0xc0] sm:$0xff]   ;;  %v8541_v60 = vld [vmem:[%s10954_s4 + $0x148] sm:$0xff]  }
 0x161   : > { %v3651_v16 = vrot.slane %v3649_v25, 4  ;;  %v7154_v20 = vcombine.low %v3624_v13, %v3634_v2  ;;  %v3669_v24 = vshll.u32 %v3570_v0, 16  ;;  %7918 = vmatprep.mubr.bf16.mxu0 %v8533_v11  ;;  %v3673_v28 = vshrl.u32 %v3570_v0, 16  ;;  %v3575_v62 = vld [vmem:[#allocation2 + $0x3c] sm:$0xf] }
 0x162   : > { %v3643_v22 = vrot.slane %v3642_v6, 4  ;;  %v3662_v23 = vrot.slane %v3660_v10, 4  ;;  %v3665_v27 = vrot.slane %v3663_v17, 5  ;;  %v3679_v29 = vshll.u32 %v3571_v8, 16  ;;  %7919 = vmatmul.mubr.bf16.gmra.mrb[28].mxu0 %v8535_v19  ;;  %v3576_v6 = vld [vmem:[#allocation2 + $0x40] sm:$0xf] }
 0x163   : > { %v3652_v26 = vor.u32 %v3651_v16, %v3647_v15  ;;  %v3657_v31 = vrot.slane %v3655_v7, 5  ;;  %v3671_v30 = vrot.slane %v3669_v24, 5  ;;  %v3684_v34 = vshrl.u32 %v3572_v1, 16  ;;  %7938 = vmatprep.mubr.bf16.mxu0 %v7154_v20  ;;  %v3577_v17 = vld [vmem:[#allocation2 + $0x44] sm:$0x1] }
 0x164   : > { %v3687_v35 = vshll.u32 %v3572_v1, 16  ;;  %v3648_v36 = vsel %vm9316_vm12, %v3643_v22, %v3647_v15  ;;  %v3666_v48 = vor.u32 %v3665_v27, %v3662_v23  ;;  %v3675_v9 = vrot.slane %v3673_v28, 4  ;;  %v8542_v27 = vld [vmem:[%s10954_s4 + $0x150] sm:$0xff]  }
 0x165   : > { %v3653_v37 = vrot.slane %v3652_v26, 4  ;;  %v3686_v33 = vrot.slane %v3684_v34, 4  ;;  %v3693_v39 = vshll.u32 %v3573_v18, 16  ;;  %v3697_v40 = vshrl.u32 %v3573_v18, 16  ;;  %v1649_v14 = vld [vmem:[#allocation2] sm:$0xf] }
 0x166   : > { %v3689_v21 = vrot.slane %v3687_v35, 5  ;;  %v3667_v42 = vrot.slane %v3666_v48, 4  ;;  %v3676_v44 = vor.u32 %v3675_v9, %v3671_v30  ;;  %v3681_v45 = vrot.slane %v3679_v29, 5  ;;  %v1650_v46 = vld [vmem:[#allocation2 + $0x4] sm:$0xf] }
 0x167   : > { %v3658_v41 = vsel %vm9316_vm12, %v3653_v37, %v3657_v31  ;;  %v3695_v49 = vrot.slane %v3693_v39, 5  ;;  %v3699_v50 = vrot.slane %v3697_v40, 4  ;;  %v3703_v51 = vshll.u32 %v3574_v38, 16  ;;  %v1697_v52 = vld [vmem:[#allocation2 + $0x8] sm:$0x1] }
 0x168   : > { %v3690_v47 = vor.u32 %v3689_v21, %v3686_v33  ;;  %v7155_v54 = vcombine.low %v3648_v36, %v3658_v41  ;;  %v3672_v55 = vsel %vm9316_vm12, %v3667_v42, %v3671_v30  ;;  %v3677_v56 = vrot.slane %v3676_v44, 4  ;;  %v1651_v26 = vld [vmem:[#allocation2 + $0xc] sm:$0xf]  ;;  %v1652_v31 = vld [vmem:[#allocation2 + $0x10] sm:$0xf]  ;;  %v8543_v41 = vld [vmem:[%s10954_s4 + $0x158] sm:$0xff]  }
 0x169   : > { %v1717_v57 = vshrl.u32 %v1649_v14, 16  ;;  %v3700_v63 = vor.u32 %v3699_v50, %v3695_v49  ;;  %v1720_v43 = vshll.u32 %v1649_v14, 16  ;;  %v1726_v4 = vshll.u32 %v1650_v46, 16  ;;  %v1698_v40 = vld [vmem:[#allocation2 + $0x14] sm:$0x1] }
 0x16a   : > { %v3691_v61 = vrot.slane %v3690_v47, 4  ;;  %v3682_v25 = vsel %vm9316_vm12, %v3677_v56, %v3681_v45  ;;  %v1730_v1 = vshrl.u32 %v1650_v46, 16  ;;  %v1736_v2 = vshll.u32 %v1697_v52, 16  ;;  %7939 = vmatmul.mubr.bf16.vlgmr.msra.gmra.mrb[0].mxu0 %v7155_v54  ;;  %v1653_v47 = vld [vmem:[#allocation2 + $0x18] sm:$0xf] }
 0x16b   : > { %v1719_v0 = vrot.slane %v1717_v57, 4  ;;  %v7156_v7 = vcombine.low %v3672_v55, %v3682_v25  ;;  %v3701_v8 = vrot.slane %v3700_v63, 4  ;;  %v3705_v10 = vrot.slane %v3703_v51, 5  ;;  %7971 = vmatpush3.bf16.msra.mxu0 %v9236_v59  ;;  %v1654_v54 = vld [vmem:[#allocation2 + $0x1c] sm:$0xf]  ;;  %v8544_v25 = vld [vmem:[%s10954_s4 + $0x160] sm:$0xff]  }
 0x16c   : > { %v1722_v11 = vrot.slane %v1720_v43, 5  ;;  %v3696_v13 = vsel %vm9316_vm12, %v3691_v61, %v3695_v49  ;;  %v1728_v15 = vrot.slane %v1726_v4, 5  ;;  %v1732_v16 = vrot.slane %v1730_v1, 4  ;;  %7972 = vmatprep.subr.bf16.mxu0 %v8541_v60  ;;  %v1699_v43 = vld [vmem:[#allocation2 + $0x20] sm:$0x1] }
 0x16d   : > { %v3708_v19 = vshrl.u32 %v3575_v62, 16  ;;  %7942 = vmatprep.mubr.bf16.mxu0 %v7156_v7  ;;  %v1738_v22 = vrot.slane %v1736_v2, 5  ;;  %v3711_v23 = vshll.u32 %v3575_v62, 16  ;;  %v3717_v24 = vshll.u32 %v3576_v6, 16  ;;  %v3578_v7 = vld [vmem:[#allocation2 + $0x48] sm:$0xf] }
 0x16e   : > { %v1723_v20 = vor.u32 %v1722_v11, %v1719_v0  ;;  %v3706_v59 = vsel %vm9316_vm12, %v3701_v8, %v3705_v10  ;;  %v1733_v28 = vor.u32 %v1732_v16, %v1728_v15  ;;  %v3721_v18 = vshrl.u32 %v3576_v6, 16 }
 0x16f   : > { %v3710_v29 = vrot.slane %v3708_v19, 4  ;;  %v3713_v34 = vrot.slane %v3711_v23, 5  ;;  %v3719_v35 = vrot.slane %v3717_v24, 5  ;;  %v3727_v36 = vshll.u32 %v3577_v17, 16  ;;  %7973 = vmatpush3.bf16.msra.mxu0 %v8541_v60  ;;  %v3580_v24 = vld [vmem:[#allocation2 + $0x50] sm:$0x1] }
 0x170   : > { %v1724_v30 = vrot.slane %v1723_v20, 4  ;;  %v1734_v37 = vrot.slane %v1733_v28, 4  ;;  %v3723_v48 = vrot.slane %v3721_v18, 4  ;;  %v1741_v9 = vshrl.u32 %v1651_v26, 16  ;;  %7974 = vmatprep.subr.bf16.mxu0 %v8542_v27 }
 0x171   : > { %v1744_v38 = vshll.u32 %v1651_v26, 16  ;;  %v7157_v33 = vcombine.low %v3696_v13, %v3706_v59  ;;  %v3714_v39 = vor.u32 %v3713_v34, %v3710_v29  ;;  %v1750_v14 = vshll.u32 %v1652_v31, 16  ;;  %v8545_v59 = vld [vmem:[%s10954_s4 + $0x168] sm:$0xff]  }
 0x172   : > { %v1729_v21 = vsel %vm9316_vm12, %v1724_v30, %v1728_v15  ;;  %v1739_v42 = vsel %vm9316_vm12, %v1734_v37, %v1738_v22  ;;  %v3724_v44 = vor.u32 %v3723_v48, %v3719_v35  ;;  %v1743_v45 = vrot.slane %v1741_v9, 4  ;;  %v3579_v15 = vld [vmem:[#allocation2 + $0x4c] sm:$0xf]  ;;  %v3581_v30 = vld [vmem:[#allocation2 + $0x54] sm:$0xf] }
 0x173   : > { %v1746_v46 = vrot.slane %v1744_v38, 5  ;;  %7943 = vmatmul.mubr.bf16.gmra.mrb[4].mxu0 %v7157_v33  ;;  %v7042_v49 = vcombine.low %v1729_v21, %v1739_v42  ;;  %v3715_v50 = vrot.slane %v3714_v39, 4  ;;  %v1752_v51 = vrot.slane %v1750_v14, 5  ;;  %v3582_v48 = vld [vmem:[#allocation2 + $0x58] sm:$0xf]  ;;  %v8548_v14 = vld [vmem:[%s10954_s4 + $0x170] sm:$0xff]  }
 0x174   : > { %v1754_v52 = vshrl.u32 %v1652_v31, 16  ;;  %v3725_v55 = vrot.slane %v3724_v44, 4  ;;  %v3729_v56 = vrot.slane %v3727_v36, 5  ;;  %v1760_v60 = vshll.u32 %v1698_v40, 16  ;;  %7975 = vmatpush3.bf16.msra.mxu0 %v8542_v27  ;;  %v3583_v39 = vld [vmem:[#allocation2 + $0x5c] sm:$0x1] }
 0x175   : > { %v1747_v57 = vor.u32 %v1746_v46, %v1743_v45  ;;  %7746 = vmatprep.mubr.bf16.mxu1 %v7042_v49  ;;  %v3720_v61 = vsel %vm9316_vm12, %v3715_v50, %v3719_v35  ;;  %v1765_v4 = vshrl.u32 %v1653_v47, 16  ;;  %v1768_v62 = vshll.u32 %v1653_v47, 16  ;;  %7976 = vmatprep.subr.bf16.mxu0 %v8543_v41  ;;  %v8547_v40 = vld [vmem:[%s10954_s4 + $0x8] sm:$0xff]   ;;  %v1655_v46 = vld [vmem:[#allocation2 + $0x24] sm:$0xf] }
 0x176   : > { %v1756_v63 = vrot.slane %v1754_v52, 4  ;;  %v3730_v0 = vsel %vm9316_vm12, %v3725_v55, %v3729_v56  ;;  %v1762_v2 = vrot.slane %v1760_v60, 5  ;;  %v1774_v6 = vshll.u32 %v1654_v54, 16 }
 0x177   : > { %v1748_v1 = vrot.slane %v1747_v57, 4  ;;  %v7158_v8 = vcombine.low %v3720_v61, %v3730_v0  ;;  %v1767_v11 = vrot.slane %v1765_v4, 4  ;;  %v1770_v13 = vrot.slane %v1768_v62, 5  ;;  %v1656_v57 = vld [vmem:[#allocation2 + $0x28] sm:$0xf]  ;;  %v8551_v0 = vld [vmem:[%s10954_s4 + $0x178] sm:$0xff]  }
 0x178   : > { %v1757_v10 = vor.u32 %v1756_v63, %v1752_v51  ;;  %v1776_v17 = vrot.slane %v1774_v6, 5  ;;  %v1778_v19 = vshrl.u32 %v1654_v54, 16  ;;  %v1784_v20 = vshll.u32 %v1699_v43, 16  ;;  %7977 = vmatpush3.bf16.msra.mxu0 %v8543_v41  ;;  %v1700_v4 = vld [vmem:[#allocation2 + $0x2c] sm:$0x1] }
 0x179   : > { %v1753_v16 = vsel %vm9316_vm12, %v1748_v1, %v1752_v51  ;;  %7946 = vmatprep.mubr.bf16.mxu0 %v7158_v8  ;;  %v1771_v23 = vor.u32 %v1770_v13, %v1767_v11  ;;  %v3732_v26 = vshrl.u32 %v3578_v7, 16  ;;  %v3735_v27 = vshll.u32 %v3578_v7, 16  ;;  %7978 = vmatprep.subr.bf16.mxu0 %v8544_v25  ;;  %v1657_v62 = vld [vmem:[#allocation2 + $0x30] sm:$0xf]  ;;  %v1658_v13 = vld [vmem:[#allocation2 + $0x34] sm:$0xf] }
 0x17a   : > { %v1758_v22 = vrot.slane %v1757_v10, 4  ;;  %v1780_v28 = vrot.slane %v1778_v19, 4  ;;  %v1786_v29 = vrot.slane %v1784_v20, 5  ;;  %v3741_v18 = vshll.u32 %v3579_v15, 16 }
 0x17b   : > { %v3745_v31 = vshrl.u32 %v3579_v15, 16  ;;  %v1772_v35 = vrot.slane %v1771_v23, 4  ;;  %v3734_v36 = vrot.slane %v3732_v26, 4  ;;  %v3737_v37 = vrot.slane %v3735_v27, 5  ;;  %v1701_v26 = vld [vmem:[#allocation2 + $0x38] sm:$0x1] }
 0x17c   : > { %v1763_v34 = vsel %vm9316_vm12, %v1758_v22, %v1762_v2  ;;  %v1781_v38 = vor.u32 %v1780_v28, %v1776_v17  ;;  %v3743_v33 = vrot.slane %v3741_v18, 5  ;;  %7979 = vmatpush3.bf16.msra.mxu0 %v8544_v25  ;;  %v3751_v44 = vshll.u32 %v3580_v24, 16  ;;  %v8549_v25 = vld [vmem:[%s10954_s4 + $0x10] sm:$0xff]   ;;  %v3584_v27 = vld [vmem:[#allocation2 + $0x60] sm:$0xf] }
 0x17d   : > { %v7043_v9 = vcombine.low %v1753_v16, %v1763_v34  ;;  %v3747_v21 = vrot.slane %v3745_v31, 4  ;;  %v1777_v41 = vsel %vm9316_vm12, %v1772_v35, %v1776_v17  ;;  %v3738_v42 = vor.u32 %v3737_v37, %v3734_v36  ;;  %7980 = vmatprep.subr.bf16.mxu0 %v8545_v59 }
 0x17e   : > { %v3756_v45 = vshrl.u32 %v3581_v30, 16  ;;  %v1782_v47 = vrot.slane %v1781_v38, 4  ;;  %v3759_v50 = vshll.u32 %v3581_v30, 16  ;;  %v3765_v51 = vshll.u32 %v3582_v48, 16  ;;  %v9395_v30 = vld [vmem:[%s10954_s4 + $0x180] sm:$0xff]  }
 0x17f   : > { %7747 = vmatmul.mubr.bf16.vlgmr.msra.gmra.mrb[40].mxu1 %v7043_v9  ;;  %v3748_v49 = vor.u32 %v3747_v21, %v3743_v33  ;;  %v3739_v52 = vrot.slane %v3738_v42, 4  ;;  %v3753_v54 = vrot.slane %v3751_v44, 5  ;;  %v3769_v56 = vshrl.u32 %v3582_v48, 16  ;;  %v3585_v21 = vld [vmem:[#allocation2 + $0x64] sm:$0xf] }
 0x180   : > { %v3758_v55 = vrot.slane %v3756_v45, 4  ;;  %7779 = vmatpush3.bf16.msra.mxu1 %v9268_v32  ;;  %v1787_v60 = vsel %vm9316_vm12, %v1782_v47, %v1786_v29  ;;  %v3761_v63 = vrot.slane %v3759_v50, 5  ;;  %v3767_v43 = vrot.slane %v3765_v51, 5  ;;  %7981 = vmatpush3.bf16.msra.mxu0 %v8545_v59  ;;  %v8550_v59 = vld [vmem:[%s10954_s4 + $0x18] sm:$0xff]   ;;  %v3586_v42 = vld [vmem:[#allocation2 + $0x68] sm:$0x1] }
 0x181   : > { %v3749_v61 = vrot.slane %v3748_v49, 4  ;;  %7780 = vmatprep.subr.bf16.mxu1 %v8547_v40  ;;  %v7044_v1 = vcombine.low %v1777_v41, %v1787_v60  ;;  %v3744_v32 = vsel %vm9316_vm12, %v3739_v52, %v3743_v33  ;;  %v3771_v2 = vrot.slane %v3769_v56, 4  ;;  %7982 = vmatprep.subr.bf16.mxu0 %v8548_v14  ;;  %v8552_v44 = vld [vmem:[%s10954_s4 + $0x20] sm:$0xff]  }
 0x182   : > { %v3775_v6 = vshll.u32 %v3583_v39, 16  ;;  %v3762_v8 = vor.u32 %v3761_v63, %v3758_v55  ;;  %v1789_v10 = vshrl.u32 %v1655_v46, 16  ;;  %v1792_v11 = vshll.u32 %v1655_v46, 16  ;;  %v3587_v55 = vld [vmem:[#allocation2 + $0x6c] sm:$0xf] }
 0x183   : > { %v3754_v7 = vsel %vm9316_vm12, %v3749_v61, %v3753_v54  ;;  %7750 = vmatprep.mubr.bf16.mxu1 %v7044_v1  ;;  %v3772_v16 = vor.u32 %v3771_v2, %v3767_v43  ;;  %v1798_v19 = vshll.u32 %v1656_v57, 16  ;;  %v1802_v24 = vshrl.u32 %v1656_v57, 16  ;;  %v3588_v63 = vld [vmem:[#allocation2 + $0x70] sm:$0xf]  ;;  %v8553_v1 = vld [vmem:[%s10954_s4 + $0x28] sm:$0xff]  }
 0x184   : > { %v7159_v15 = vcombine.low %v3744_v32, %v3754_v7  ;;  %v3777_v17 = vrot.slane %v3775_v6, 5  ;;  %7781 = vmatpush3.bf16.msra.mxu1 %v8547_v40  ;;  %v3763_v20 = vrot.slane %v3762_v8, 4  ;;  %v1791_v22 = vrot.slane %v1789_v10, 4  ;;  %7983 = vmatpush3.bf16.msra.mxu0 %v8548_v14 }
 0x185   : > { %v1794_v23 = vrot.slane %v1792_v11, 5  ;;  %7782 = vmatprep.subr.bf16.mxu1 %v8549_v25  ;;  %v3773_v28 = vrot.slane %v3772_v16, 4  ;;  %v1800_v29 = vrot.slane %v1798_v19, 5  ;;  %v1808_v18 = vshll.u32 %v1700_v4, 16  ;;  %7984 = vmatprep.subr.bf16.mxu0 %v8551_v0 }
 0x186   : > { %7947 = vmatmul.mubr.bf16.gmra.mrb[8].mxu0 %v7159_v15  ;;  %v1813_v31 = vshrl.u32 %v1657_v62, 16  ;;  %v3768_v34 = vsel %vm9316_vm12, %v3763_v20, %v3767_v43  ;;  %v1804_v36 = vrot.slane %v1802_v24, 4  ;;  %v1816_v37 = vshll.u32 %v1657_v62, 16  ;;  %v1659_v20 = vld [vmem:[#allocation2 + $0x3c] sm:$0xf] }
 0x187   : > { %v1795_v35 = vor.u32 %v1794_v23, %v1791_v22  ;;  %v3778_v48 = vsel %vm9316_vm12, %v3773_v28, %v3777_v17  ;;  %v1810_v9 = vrot.slane %v1808_v18, 5  ;;  %v1822_v33 = vshll.u32 %v1658_v13, 16 }
 0x188   : > { %v1815_v38 = vrot.slane %v1813_v31, 4  ;;  %7783 = vmatpush3.bf16.msra.mxu1 %v8549_v25  ;;  %v7160_v39 = vcombine.low %v3768_v34, %v3778_v48  ;;  %v1805_v14 = vor.u32 %v1804_v36, %v1800_v29  ;;  %v1818_v41 = vrot.slane %v1816_v37, 5  ;;  %7985 = vmatpush3.bf16.msra.mxu0 %v8551_v0  ;;  %v3589_v0 = vld [vmem:[#allocation2 + $0x74] sm:$0x1]  ;;  %v1702_v31 = vld [vmem:[#allocation2 + $0x44] sm:$0x1] }
 0x189   : > { %v1796_v40 = vrot.slane %v1795_v35, 4  ;;  %7784 = vmatprep.subr.bf16.mxu1 %v8550_v59  ;;  %v1824_v45 = vrot.slane %v1822_v33, 5  ;;  %v1826_v46 = vshrl.u32 %v1658_v13, 16  ;;  %v1832_v47 = vshll.u32 %v1701_v26, 16  ;;  %8018 = vmatprep.subr.bf16.mxu0 %v9395_v30  ;;  %v8555_v34 = vld [vmem:[%s10954_s4 + $0x30] sm:$0xff]  }
 0x18a   : > { %v3780_v49 = vshrl.u32 %v3584_v27, 16  ;;  %7950 = vmatprep.mubr.bf16.mxu0 %v7160_v39  ;;  %v1806_v51 = vrot.slane %v1805_v14, 4  ;;  %v1819_v52 = vor.u32 %v1818_v41, %v1815_v38  ;;  %v3783_v54 = vshll.u32 %v3584_v27, 16  ;;  %v1660_v27 = vld [vmem:[#allocation2 + $0x40] sm:$0xf] }
 0x18b   : > { %v1801_v50 = vsel %vm9316_vm12, %v1796_v40, %v1800_v29  ;;  %v1828_v56 = vrot.slane %v1826_v46, 4  ;;  %v1834_v57 = vrot.slane %v1832_v47, 5  ;;  %v3789_v61 = vshll.u32 %v3585_v21, 16  ;;  %v1662_v40 = vld [vmem:[#allocation2 + $0x4c] sm:$0xf] }
 0x18c   : > { %v3782_v60 = vrot.slane %v3780_v49, 4  ;;  %7785 = vmatpush3.bf16.msra.mxu1 %v8550_v59  ;;  %v1811_v43 = vsel %vm9316_vm12, %v1806_v51, %v1810_v9  ;;  %v1820_v4 = vrot.slane %v1819_v52, 4  ;;  %v3785_v62 = vrot.slane %v3783_v54, 5  ;;  %v1661_v9 = vld [vmem:[#allocation2 + $0x48] sm:$0xf] }
 0x18d   : > { %v3793_v25 = vshrl.u32 %v3585_v21, 16  ;;  %7786 = vmatprep.subr.bf16.mxu1 %v8552_v44  ;;  %v7045_v32 = vcombine.low %v1801_v50, %v1811_v43  ;;  %v1829_v2 = vor.u32 %v1828_v56, %v1824_v45  ;;  %v3791_v6 = vrot.slane %v3789_v61, 5  ;;  %v8556_v50 = vld [vmem:[%s10954_s4 + $0x38] sm:$0xff]  }
 0x18e   : > { %v3799_v7 = vshll.u32 %v3586_v42, 16  ;;  %v1825_v8 = vsel %vm9316_vm12, %v1820_v4, %v1824_v45  ;;  %v3786_v10 = vor.u32 %v3785_v62, %v3782_v60  ;;  %v3804_v13 = vshrl.u32 %v3587_v55, 16  ;;  %v1703_v60 = vld [vmem:[#allocation2 + $0x50] sm:$0x1] }
 0x18f   : > { %v3795_v11 = vrot.slane %v3793_v25, 4  ;;  %7751 = vmatmul.mubr.bf16.gmra.mrb[44].mxu1 %v7045_v32  ;;  %v1830_v15 = vrot.slane %v1829_v2, 4  ;;  %v3807_v17 = vshll.u32 %v3587_v55, 16  ;;  %v3813_v19 = vshll.u32 %v3588_v63, 16 }
 0x190   : > { %v3801_v16 = vrot.slane %v3799_v7, 5  ;;  %v3787_v22 = vrot.slane %v3786_v10, 4  ;;  %v3806_v24 = vrot.slane %v3804_v13, 4  ;;  %v3817_v26 = vshrl.u32 %v3588_v63, 16  ;;  %7787 = vmatpush3.bf16.msra.mxu1 %v8552_v44  ;;  %v9437_v10 = vld [vmem:[%s10954_s4 + $0x80] sm:$0xff]  }
 0x191   : > { %v3796_v23 = vor.u32 %v3795_v11, %v3791_v6  ;;  %v1835_v59 = vsel %vm9316_vm12, %v1830_v15, %v1834_v57  ;;  %v3809_v28 = vrot.slane %v3807_v17, 5  ;;  %v3815_v29 = vrot.slane %v3813_v19, 5  ;;  %7788 = vmatprep.subr.bf16.mxu1 %v8553_v1  ;;  %v3593_v17 = vld [vmem:[#allocation2 + $0x84] sm:$0xf] }
 0x192   : > { %v3823_v18 = vshll.u32 %v3589_v0, 16  ;;  %v7046_v35 = vcombine.low %v1825_v8, %v1835_v59  ;;  %v3792_v36 = vsel %vm9316_vm12, %v3787_v22, %v3791_v6  ;;  %v3819_v48 = vrot.slane %v3817_v26, 4  ;;  %v3590_v0 = vld [vmem:[#allocation2 + $0x78] sm:$0xf]  ;;  %v9432_v8 = vld [vmem:[#allocation2 + $0x80] sm:$0x1] }
 0x193   : > { %v3797_v37 = vrot.slane %v3796_v23, 4  ;;  %v3810_v38 = vor.u32 %v3809_v28, %v3806_v24  ;;  %v1837_v21 = vshrl.u32 %v1659_v20, 16  ;;  %v1840_v39 = vshll.u32 %v1659_v20, 16  ;;  %v9441_v24 = vld [vmem:[#allocation2 + $0x88] sm:$0xf] }
 0x194   : > { %v3825_v33 = vrot.slane %v3823_v18, 5  ;;  %7754 = vmatprep.mubr.bf16.mxu1 %v7046_v35  ;;  %v3820_v41 = vor.u32 %v3819_v48, %v3815_v29  ;;  %v1846_v42 = vshll.u32 %v1660_v27, 16  ;;  %v1850_v44 = vshrl.u32 %v1660_v27, 16  ;;  %7789 = vmatpush3.bf16.msra.mxu1 %v8553_v1  ;;  %v9430_v1 = vld [vmem:[#allocation2 + $0x7c] sm:$0xf] }
 0x195   : > { %v3802_v14 = vsel %vm9316_vm12, %v3797_v37, %v3801_v16  ;;  %v3811_v46 = vrot.slane %v3810_v38, 4  ;;  %v1839_v47 = vrot.slane %v1837_v21, 4  ;;  %v1842_v49 = vrot.slane %v1840_v39, 5  ;;  %7790 = vmatprep.subr.bf16.mxu1 %v8555_v34 }
 0x196   : > { %v7161_v45 = vcombine.low %v3792_v36, %v3802_v14  ;;  %v3821_v51 = vrot.slane %v3820_v41, 4  ;;  %v1848_v52 = vrot.slane %v1846_v42, 5  ;;  %v1852_v54 = vrot.slane %v1850_v44, 4 }
 0x197   : > { %v1856_v55 = vshll.u32 %v1702_v31, 16  ;;  %v3816_v56 = vsel %vm9316_vm12, %v3811_v46, %v3815_v29  ;;  %v1843_v57 = vor.u32 %v1842_v49, %v1839_v47  ;;  %v1861_v61 = vshrl.u32 %v1661_v9, 16  ;;  %v1663_v49 = vld [vmem:[#allocation2 + $0x54] sm:$0xf] }
 0x198   : > { %7951 = vmatmul.mubr.bf16.gmra.mrb[12].mxu0 %v7161_v45  ;;  %v1864_v63 = vshll.u32 %v1661_v9, 16  ;;  %v3826_v43 = vsel %vm9316_vm12, %v3821_v51, %v3825_v33  ;;  %v1853_v4 = vor.u32 %v1852_v54, %v1848_v52  ;;  %v1870_v25 = vshll.u32 %v1662_v40, 16  ;;  %7791 = vmatpush3.bf16.msra.mxu1 %v8555_v34  ;;  %v9451_v33 = vld [vmem:[#allocation2 + $0x8c] sm:$0x1] }
 0x199   : > { %v1858_v62 = vrot.slane %v1856_v55, 5  ;;  %v7162_v32 = vcombine.low %v3816_v56, %v3826_v43  ;;  %v1844_v2 = vrot.slane %v1843_v57, 4  ;;  %v1863_v6 = vrot.slane %v1861_v61, 4  ;;  %7792 = vmatprep.subr.bf16.mxu1 %v8556_v50  ;;  %v1664_v55 = vld [vmem:[#allocation2 + $0x58] sm:$0xf] }
 0x19a   : > { %v1866_v7 = vrot.slane %v1864_v63, 5  ;;  %v1854_v11 = vrot.slane %v1853_v4, 4  ;;  %v1872_v13 = vrot.slane %v1870_v25, 5  ;;  %v1874_v15 = vshrl.u32 %v1662_v40, 16  ;;  %v1704_v63 = vld [vmem:[#allocation2 + $0x5c] sm:$0x1] }
 0x19b   : > { %v1880_v16 = vshll.u32 %v1703_v60, 16  ;;  %7954 = vmatprep.mubr.bf16.mxu0 %v7162_v32  ;;  %v1849_v19 = vsel %vm9316_vm12, %v1844_v2, %v1848_v52  ;;  %v3828_v22 = vshrl.u32 %v3590_v0, 16  ;;  %v3831_v23 = vshll.u32 %v3590_v0, 16 }
 0x19c   : > { %v1867_v20 = vor.u32 %v1866_v7, %v1863_v6  ;;  %v1859_v26 = vsel %vm9316_vm12, %v1854_v11, %v1858_v62  ;;  %v1876_v27 = vrot.slane %v1874_v15, 4  ;;  %v3837_v28 = vshll.u32 %v9430_v1, 16  ;;  %7793 = vmatpush3.bf16.msra.mxu1 %v8556_v50  ;;  %v9460_v7 = vld [vmem:[#allocation2 + $0x60] sm:$0xf] }
 0x19d   : > { %v1882_v59 = vrot.slane %v1880_v16, 5  ;;  %v7047_v29 = vcombine.low %v1849_v19, %v1859_v26  ;;  %v3830_v31 = vrot.slane %v3828_v22, 4  ;;  %v3833_v34 = vrot.slane %v3831_v23, 5  ;;  %7826 = vmatprep.subr.bf16.mxu1 %v9437_v10 }
 0x19e   : > { %v1868_v18 = vrot.slane %v1867_v20, 4  ;;  %v1877_v35 = vor.u32 %v1876_v27, %v1872_v13  ;;  %v3839_v36 = vrot.slane %v3837_v28, 5  ;;  %v3841_v37 = vshrl.u32 %v9430_v1, 16  ;;  %v1705_v28 = vld [vmem:[#allocation2 + $0x68] sm:$0x1] }
 0x19f   : > { %v3847_v48 = vshll.u32 %v9432_v8, 16  ;;  %7755 = vmatmul.mubr.bf16.gmra.mrb[48].mxu1 %v7047_v29  ;;  %v3834_v38 = vor.u32 %v3833_v34, %v3830_v31  ;;  %v3852_v21 = vshrl.u32 %v3593_v17, 16  ;;  %v3855_v39 = vshll.u32 %v3593_v17, 16  ;;  %v9464_v17 = vld [vmem:[#allocation2 + $0x64] sm:$0xf] }
 0x1a0   : > { %v1873_v9 = vsel %vm9316_vm12, %v1868_v18, %v1872_v13  ;;  %v1878_v40 = vrot.slane %v1877_v35, 4  ;;  %v3843_v14 = vrot.slane %v3841_v37, 4  ;;  %v3861_v42 = vshll.u32 %v9441_v24, 16 }
 0x1a1   : > { %v3849_v41 = vrot.slane %v3847_v48, 5  ;;  %v3835_v44 = vrot.slane %v3834_v38, 4  ;;  %v3854_v45 = vrot.slane %v3852_v21, 4  ;;  %v3857_v46 = vrot.slane %v3855_v39, 5  ;;  %v9474_v21 = vld [vmem:[#allocation2 + $0x94] sm:$0xf] }
 0x1a2   : > { %v3865_v47 = vshrl.u32 %v9441_v24, 16  ;;  %v1883_v50 = vsel %vm9316_vm12, %v1878_v40, %v1882_v59  ;;  %v3844_v51 = vor.u32 %v3843_v14, %v3839_v36  ;;  %v3863_v52 = vrot.slane %v3861_v42, 5 }
 0x1a3   : > { %v3871_v54 = vshll.u32 %v9451_v33, 16  ;;  %v7048_v56 = vcombine.low %v1873_v9, %v1883_v50  ;;  %v3840_v57 = vsel %vm9316_vm12, %v3835_v44, %v3839_v36  ;;  %v3858_v60 = vor.u32 %v3857_v46, %v3854_v45  ;;  %v3596_v36 = vld [vmem:[#allocation2 + $0x90] sm:$0xf] }
 0x1a4   : > { %v3867_v61 = vrot.slane %v3865_v47, 4  ;;  %v3845_v43 = vrot.slane %v3844_v51, 4  ;;  %v1885_v62 = vshrl.u32 %v1663_v49, 16  ;;  %v1888_v25 = vshll.u32 %v1663_v49, 16  ;;  %v9478_v51 = vld [vmem:[#allocation2 + $0x98] sm:$0x1] }
 0x1a5   : > { %v3873_v4 = vrot.slane %v3871_v54, 5  ;;  %7758 = vmatprep.mubr.bf16.mxu1 %v7048_v56  ;;  %v3859_v0 = vrot.slane %v3858_v60, 4  ;;  %v1894_v2 = vshll.u32 %v1664_v55, 16  ;;  %v1898_v6 = vshrl.u32 %v1664_v55, 16  ;;  %v3599_v54 = vld [vmem:[#allocation2 + $0x9c] sm:$0xf] }
 0x1a6   : > { %v3868_v32 = vor.u32 %v3867_v61, %v3863_v52  ;;  %v3850_v11 = vsel %vm9316_vm12, %v3845_v43, %v3849_v41  ;;  %v1887_v13 = vrot.slane %v1885_v62, 4  ;;  %v1890_v15 = vrot.slane %v1888_v25, 5  ;;  %v9484_v61 = vld [vmem:[#allocation2 + $0xa0] sm:$0xf] }
 0x1a7   : > { %v1904_v16 = vshll.u32 %v1704_v63, 16  ;;  %v7163_v19 = vcombine.low %v3840_v57, %v3850_v11  ;;  %v3864_v20 = vsel %vm9316_vm12, %v3859_v0, %v3863_v52  ;;  %v1896_v23 = vrot.slane %v1894_v2, 5 }
 0x1a8   : > { %v3869_v22 = vrot.slane %v3868_v32, 4  ;;  %v1891_v26 = vor.u32 %v1890_v15, %v1887_v13  ;;  %v1900_v27 = vrot.slane %v1898_v6, 4  ;;  %v1909_v29 = vshrl.u32 %v9460_v7, 16  ;;  %v9491_v13 = vld [vmem:[#allocation2 + $0xa4] sm:$0x1] }
 0x1a9   : > { %v1906_v59 = vrot.slane %v1904_v16, 5  ;;  %7955 = vmatmul.mubr.bf16.gmra.mrb[16].mxu0 %v7163_v19  ;;  %v1912_v31 = vshll.u32 %v9460_v7, 16  ;;  %v1918_v34 = vshll.u32 %v9464_v17, 16  ;;  %v1922_v35 = vshrl.u32 %v9464_v17, 16  ;;  %v9494_v19 = vld [vmem:[#allocation2 + $0x6c] sm:$0xf] }
 0x1aa   : > { %v3874_v18 = vsel %vm9316_vm12, %v3869_v22, %v3873_v4  ;;  %v1892_v48 = vrot.slane %v1891_v26, 4  ;;  %v1901_v9 = vor.u32 %v1900_v27, %v1896_v23  ;;  %v1911_v38 = vrot.slane %v1909_v29, 4  ;;  %v9496_v27 = vld [vmem:[#allocation2 + $0x70] sm:$0xf] }
 0x1ab   : > { %v7164_v37 = vcombine.low %v3864_v20, %v3874_v18  ;;  %v1914_v39 = vrot.slane %v1912_v31, 5  ;;  %v1920_v40 = vrot.slane %v1918_v34, 5  ;;  %v1924_v14 = vrot.slane %v1922_v35, 4 }
 0x1ac   : > { %v1928_v41 = vshll.u32 %v1705_v28, 16  ;;  %v1897_v42 = vsel %vm9316_vm12, %v1892_v48, %v1896_v23  ;;  %v1902_v44 = vrot.slane %v1901_v9, 4  ;;  %v3876_v45 = vshrl.u32 %v3596_v36, 16 }
 0x1ad   : > { %7958 = vmatprep.mubr.bf16.mxu0 %v7164_v37  ;;  %v3879_v46 = vshll.u32 %v3596_v36, 16  ;;  %v1915_v47 = vor.u32 %v1914_v39, %v1911_v38  ;;  %v1925_v49 = vor.u32 %v1924_v14, %v1920_v40  ;;  %v3885_v52 = vshll.u32 %v9474_v21, 16  ;;  %v1706_v36 = vld [vmem:[#allocation2 + $0x74] sm:$0x1] }
 0x1ae   : > { %v1930_v50 = vrot.slane %v1928_v41, 5  ;;  %v1907_v55 = vsel %vm9316_vm12, %v1902_v44, %v1906_v59  ;;  %v3878_v56 = vrot.slane %v3876_v45, 4  ;;  %v3889_v60 = vshrl.u32 %v9474_v21, 16 }
 0x1af   : > { %v3881_v57 = vrot.slane %v3879_v46, 5  ;;  %v7049_v63 = vcombine.low %v1897_v42, %v1907_v55  ;;  %v1916_v43 = vrot.slane %v1915_v47, 4  ;;  %v1926_v4 = vrot.slane %v1925_v49, 4 }
 0x1b0   : > { %v3887_v62 = vrot.slane %v3885_v52, 5  ;;  %v3891_v0 = vrot.slane %v3889_v60, 4  ;;  %v3895_v32 = vshll.u32 %v9478_v51, 16  ;;  %v3900_v2 = vshrl.u32 %v3599_v54, 16 }
 0x1b1   : > { %v3882_v25 = vor.u32 %v3881_v57, %v3878_v56  ;;  %7759 = vmatmul.mubr.bf16.gmra.mrb[52].mxu1 %v7049_v63  ;;  %v1921_v6 = vsel %vm9316_vm12, %v1916_v43, %v1920_v40  ;;  %v1931_v11 = vsel %vm9316_vm12, %v1926_v4, %v1930_v50  ;;  %v3903_v15 = vshll.u32 %v3599_v54, 16  ;;  %v9505_v40 = vld [vmem:[#allocation2 + $0x78] sm:$0xf]  ;;  %v9510_v50 = vld [vmem:[#allocation2 + $0x7c] sm:$0xf] }
 0x1b2   : > { %v3909_v16 = vshll.u32 %v9484_v61, 16  ;;  %v7050_v20 = vcombine.low %v1921_v6, %v1931_v11  ;;  %v3892_v23 = vor.u32 %v3891_v0, %v3887_v62  ;;  %v3897_v26 = vrot.slane %v3895_v32, 5  ;;  %v1707_v43 = vld [vmem:[#allocation2 + $0x80] sm:$0x1] }
 0x1b3   : > { %v3883_v22 = vrot.slane %v3882_v25, 4  ;;  %v3902_v59 = vrot.slane %v3900_v2, 4  ;;  %v3905_v28 = vrot.slane %v3903_v15, 5  ;;  %v3913_v18 = vshrl.u32 %v9484_v61, 16  ;;  %v3602_v2 = vld [vmem:[#allocation2 + $0xa8] sm:$0xf] }
 0x1b4   : > { %v3911_v29 = vrot.slane %v3909_v16, 5  ;;  %7762 = vmatprep.mubr.bf16.mxu1 %v7050_v20  ;;  %v3893_v34 = vrot.slane %v3892_v23, 4  ;;  %v3919_v35 = vshll.u32 %v9491_v13, 16  ;;  %v1933_v37 = vshrl.u32 %v9494_v19, 16  ;;  %v9520_v20 = vld [vmem:[#allocation2 + $0xac] sm:$0xf] }
 0x1b5   : > { %v3888_v31 = vsel %vm9316_vm12, %v3883_v22, %v3887_v62  ;;  %v3906_v48 = vor.u32 %v3905_v28, %v3902_v59  ;;  %v3915_v9 = vrot.slane %v3913_v18, 4  ;;  %v1936_v38 = vshll.u32 %v9494_v19, 16 }
 0x1b6   : > { %v1942_v39 = vshll.u32 %v9496_v27, 16  ;;  %v3898_v14 = vsel %vm9316_vm12, %v3893_v34, %v3897_v26  ;;  %v3921_v41 = vrot.slane %v3919_v35, 5  ;;  %v1935_v42 = vrot.slane %v1933_v37, 4 }
 0x1b7   : > { %v1946_v44 = vshrl.u32 %v9496_v27, 16  ;;  %v7165_v45 = vcombine.low %v3888_v31, %v3898_v14  ;;  %v3907_v46 = vrot.slane %v3906_v48, 4  ;;  %v3916_v47 = vor.u32 %v3915_v9, %v3911_v29  ;;  %v9524_v31 = vld [vmem:[#allocation2 + $0xb0] sm:$0x1]  ;;  %v3605_v9 = vld [vmem:[#allocation2 + $0xb4] sm:$0xf] }
 0x1b8   : > { %v1938_v49 = vrot.slane %v1936_v38, 5  ;;  %v1944_v52 = vrot.slane %v1942_v39, 5  ;;  %v1952_v55 = vshll.u32 %v1706_v36, 16  ;;  %v1957_v56 = vshrl.u32 %v9505_v40, 16 }
 0x1b9   : > { %v1948_v54 = vrot.slane %v1946_v44, 4  ;;  %7959 = vmatmul.mubr.bf16.gmra.mrb[20].mxu0 %v7165_v45  ;;  %v3912_v57 = vsel %vm9316_vm12, %v3907_v46, %v3911_v29  ;;  %v3917_v60 = vrot.slane %v3916_v47, 4  ;;  %v1960_v4 = vshll.u32 %v9505_v40, 16 }
 0x1ba   : > { %v1939_v63 = vor.u32 %v1938_v49, %v1935_v42  ;;  %v1954_v25 = vrot.slane %v1952_v55, 5  ;;  %v1959_v0 = vrot.slane %v1957_v56, 4  ;;  %v1966_v32 = vshll.u32 %v9510_v50, 16  ;;  %v9529_v42 = vld [vmem:[#allocation2 + $0xb8] sm:$0xf] }
 0x1bb   : > { %v1949_v62 = vor.u32 %v1948_v54, %v1944_v52  ;;  %v3922_v6 = vsel %vm9316_vm12, %v3917_v60, %v3921_v41  ;;  %v1962_v15 = vrot.slane %v1960_v4, 5  ;;  %v1970_v16 = vshrl.u32 %v9510_v50, 16  ;;  %v9535_v54 = vld [vmem:[#allocation2 + $0xbc] sm:$0x1] }
 0x1bc   : > { %v1940_v11 = vrot.slane %v1939_v63, 4  ;;  %v7166_v22 = vcombine.low %v3912_v57, %v3922_v6  ;;  %v1968_v26 = vrot.slane %v1966_v32, 5  ;;  %v1976_v59 = vshll.u32 %v1707_v43, 16  ;;  %v9537_v57 = vpop.f32.mrb[36].mxu1 }
 0x1bd   : > { %v1950_v23 = vrot.slane %v1949_v62, 4  ;;  %v1963_v29 = vor.u32 %v1962_v15, %v1959_v0  ;;  %v1972_v18 = vrot.slane %v1970_v16, 4  ;;  %v3924_v34 = vshrl.u32 %v3602_v2, 16  ;;  %v9540_v62 = vld [vmem:[#allocation2 + $0x84] sm:$0xf] }
 0x1be   : > { %v1945_v28 = vsel %vm9316_vm12, %v1940_v11, %v1944_v52  ;;  %7962 = vmatprep.mubr.bf16.mxu0 %v7166_v22  ;;  %v1978_v36 = vrot.slane %v1976_v59, 5  ;;  %v3927_v37 = vshll.u32 %v3602_v2, 16  ;;  %v3933_v48 = vshll.u32 %v9520_v20, 16  ;;  %v9545_v11 = vld [vmem:[#allocation2 + $0x88] sm:$0xf] }
 0x1bf   : > { %v1955_v35 = vsel %vm9316_vm12, %v1950_v23, %v1954_v25  ;;  %v1964_v39 = vrot.slane %v1963_v29, 4  ;;  %v1973_v14 = vor.u32 %v1972_v18, %v1968_v26  ;;  %v3926_v41 = vrot.slane %v3924_v34, 4  ;;  %v7728_v25 = vpop.f32.mrb[37].mxu1 }
 0x1c0   : > { %v7051_v38 = vcombine.low %v1945_v28, %v1955_v35  ;;  %v3929_v44 = vrot.slane %v3927_v37, 5  ;;  %v3935_v45 = vrot.slane %v3933_v48, 5  ;;  %v3937_v46 = vshrl.u32 %v9520_v20, 16  ;;  %v9547_v15 = vpop.f32.mrb[38].mxu1  ;;  %v1708_v37 = vld [vmem:[#allocation2 + $0x8c] sm:$0x1] }
 0x1c1   : > { %v3943_v47 = vshll.u32 %v9524_v31, 16  ;;  %v1969_v49 = vsel %vm9316_vm12, %v1964_v39, %v1968_v26  ;;  %v1974_v52 = vrot.slane %v1973_v14, 4  ;;  %v3948_v55 = vshrl.u32 %v3605_v9, 16  ;;  %v7729_v59 = vpop.f32.mrb[39].mxu1 }
 0x1c2   : > { %7763 = vmatmul.mubr.bf16.gmra.mrb[56].mxu1 %v7051_v38  ;;  %v3951_v56 = vshll.u32 %v3605_v9, 16  ;;  %v3930_v60 = vor.u32 %v3929_v44, %v3926_v41  ;;  %v3939_v63 = vrot.slane %v3937_v46, 4  ;;  %v3957_v4 = vshll.u32 %v9529_v42, 16  ;;  %v9555_v44 = vld [vmem:[#allocation2 + $0x90] sm:$0xf] }
 0x1c3   : > { %v3945_v43 = vrot.slane %v3943_v47, 5  ;;  %v1979_v0 = vsel %vm9316_vm12, %v1974_v52, %v1978_v36  ;;  %v3950_v32 = vrot.slane %v3948_v55, 4  ;;  %v3961_v6 = vshrl.u32 %v9529_v42, 16 }
 0x1c4   : > { %v3953_v2 = vrot.slane %v3951_v56, 5  ;;  %v7052_v16 = vcombine.low %v1969_v49, %v1979_v0  ;;  %v3931_v22 = vrot.slane %v3930_v60, 4  ;;  %v3940_v23 = vor.u32 %v3939_v63, %v3935_v45  ;;  %v9564_v0 = vld [vmem:[#allocation2 + $0x98] sm:$0x1] }
 0x1c5   : > { %v3959_v26 = vrot.slane %v3957_v4, 5  ;;  %v3963_v29 = vrot.slane %v3961_v6, 4  ;;  %v3967_v18 = vshll.u32 %v9535_v54, 16  ;;  %v1981_v34 = vshrl.u32 %v9540_v62, 16  ;;  %10987 = vst [vmem:[#allocation4_spill] sm:$0xff] %v9564_v0 }
 0x1c6   : > { %v3954_v28 = vor.u32 %v3953_v2, %v3950_v32  ;;  %7766 = vmatprep.mubr.bf16.mxu1 %v7052_v16  ;;  %v3936_v35 = vsel %vm9316_vm12, %v3931_v22, %v3935_v45  ;;  %v3941_v36 = vrot.slane %v3940_v23, 4  ;;  %v1984_v48 = vshll.u32 %v9540_v62, 16  ;;  %v9560_v45 = vld [vmem:[#allocation2 + $0x94] sm:$0xf]  ;;  %v3608_v23 = vld [vmem:[#allocation2 + $0xc0] sm:$0xf] }
 0x1c7   : > { %v1990_v9 = vshll.u32 %v9545_v11, 16  ;;  %v3964_v39 = vor.u32 %v3963_v29, %v3959_v26  ;;  %v3969_v14 = vrot.slane %v3967_v18, 5  ;;  %v1983_v41 = vrot.slane %v1981_v34, 4  ;;  %v9572_v18 = vld [vmem:[#allocation2 + $0xc4] sm:$0xf] }
 0x1c8   : > { %v3955_v38 = vrot.slane %v3954_v28, 4  ;;  %v3946_v46 = vsel %vm9316_vm12, %v3941_v36, %v3945_v43  ;;  %v1986_v47 = vrot.slane %v1984_v48, 5  ;;  %v1994_v52 = vshrl.u32 %v9545_v11, 16 }
 0x1c9   : > { %v1992_v49 = vrot.slane %v1990_v9, 5  ;;  %v7167_v55 = vcombine.low %v3936_v35, %v3946_v46  ;;  %v3965_v60 = vrot.slane %v3964_v39, 4  ;;  %v2000_v63 = vshll.u32 %v1708_v37, 16 }
 0x1ca   : > { %v3960_v56 = vsel %vm9316_vm12, %v3955_v38, %v3959_v26  ;;  %v1987_v4 = vor.u32 %v1986_v47, %v1983_v41  ;;  %v1996_v25 = vrot.slane %v1994_v52, 4  ;;  %v2005_v32 = vshrl.u32 %v9555_v44, 16  ;;  %v9577_v47 = vld [vmem:[#allocation2 + $0xc8] sm:$0x1] }
 0x1cb   : > { %v2008_v43 = vshll.u32 %v9555_v44, 16  ;;  %7963 = vmatmul.mubr.bf16.gmra.mrb[24].mxu0 %v7167_v55  ;;  %v3970_v2 = vsel %vm9316_vm12, %v3965_v60, %v3969_v14  ;;  %v2002_v6 = vrot.slane %v2000_v63, 5  ;;  %v2014_v16 = vshll.u32 %v9560_v45, 16 }
 0x1cc   : > { %v2018_v22 = vshrl.u32 %v9560_v45, 16  ;;  %v7168_v26 = vcombine.low %v3960_v56, %v3970_v2  ;;  %v1988_v59 = vrot.slane %v1987_v4, 4  ;;  %v1997_v28 = vor.u32 %v1996_v25, %v1992_v49  ;;  %v4316_v4 = vld [vmem:[#allocation2 + $0xc] sm:$0xe] }
 0x1cd   : > { %v2007_v29 = vrot.slane %v2005_v32, 4  ;;  %v2010_v34 = vrot.slane %v2008_v43, 5  ;;  %v2016_v35 = vrot.slane %v2014_v16, 5  ;;  %v2024_v37 = vshll.u32 %v9564_v0, 16  ;;  %v8632_v0 = vld [vmem:[#allocation2 + $0x28] sm:$0xf] }
 0x1ce   : > { %v2020_v36 = vrot.slane %v2018_v22, 4  ;;  %7966 = vmatprep.mubr.bf16.mxu0 %v7168_v26  ;;  %v1993_v48 = vsel %vm9316_vm12, %v1988_v59, %v1992_v49  ;;  %v1998_v9 = vrot.slane %v1997_v28, 4  ;;  %v3972_v38 = vshrl.u32 %v3608_v23, 16  ;;  %v9590_v28 = vld [vmem:[#allocation2 + $0xa0] sm:$0xf] }
 0x1cf   : > { %v3975_v39 = vshll.u32 %v3608_v23, 16  ;;  %v2011_v14 = vor.u32 %v2010_v34, %v2007_v29  ;;  %v2026_v46 = vrot.slane %v2024_v37, 5  ;;  %v3981_v52 = vshll.u32 %v9572_v18, 16  ;;  %v9584_v23 = vld [vmem:[#allocation2 + $0x9c] sm:$0xf] }
 0x1d0   : > { %v2021_v41 = vor.u32 %v2020_v36, %v2016_v35  ;;  %v2003_v55 = vsel %vm9316_vm12, %v1998_v9, %v2002_v6  ;;  %v3974_v56 = vrot.slane %v3972_v38, 4  ;;  %v3985_v63 = vshrl.u32 %v9572_v18, 16  ;;  %v8628_v9 = vld [vmem:[#allocation2 + $0x10] sm:$0xf] }
 0x1d1   : > { %v3977_v60 = vrot.slane %v3975_v39, 5  ;;  %v7053_v25 = vcombine.low %v1993_v48, %v2003_v55  ;;  %v2012_v49 = vrot.slane %v2011_v14, 4  ;;  %v3983_v43 = vrot.slane %v3981_v52, 5  ;;  %v8629_v39 = vld [vmem:[#allocation2 + $0x14] sm:$0x1] }
 0x1d2   : > { %v2022_v32 = vrot.slane %v2021_v41, 4  ;;  %v3987_v16 = vrot.slane %v3985_v63, 4  ;;  %v3991_v22 = vshll.u32 %v9577_v47, 16  ;;  %v7178_v59 = vrot.slane %v4316_v4, 9  ;;  %v9604_v63 = vld [vmem:[#allocation2 + $0xa8] sm:$0xf] }
 0x1d3   : > { %v3978_v2 = vor.u32 %v3977_v60, %v3974_v56  ;;  %7767 = vmatmul.mubr.bf16.gmra.mrb[60].mxu1 %v7053_v25  ;;  %v2017_v6 = vsel %vm9316_vm12, %v2012_v49, %v2016_v35  ;;  %v4382_v38 = vrot.slane %v8628_v9, 5  ;;  %v4385_v14 = vrot.slane %v8629_v39, 5  ;;  %v9596_v35 = vld [vmem:[#allocation2 + $0xa4] sm:$0x1]  ;;  %10991 = vst [vmem:[#allocation6_spill] sm:$0xff] %v9604_v63 }
 0x1d4   : > { %v2027_v26 = vsel %vm9316_vm12, %v2022_v32, %v2026_v46  ;;  %v3988_v36 = vor.u32 %v3987_v16, %v3983_v43  ;;  %v3993_v37 = vrot.slane %v3991_v22, 5  ;;  %10990 = vst [vmem:[#allocation5_spill] sm:$0xff] %v9596_v35  ;;  %v2029_v41 = vshrl.u32 %v9584_v23, 16 }
 0x1d5   : > { %v7054_v29 = vcombine.low %v2017_v6, %v2027_v26  ;;  %v3979_v34 = vrot.slane %v3978_v2, 4  ;;  %v2032_v46 = vshll.u32 %v9584_v23, 16  ;;  %v2038_v56 = vshll.u32 %v9590_v28, 16  ;;  %v9611_v6 = vld [vmem:[#allocation2 + $0xac] sm:$0xf] }
 0x1d6   : > { %v3989_v55 = vrot.slane %v3988_v36, 4  ;;  %v2042_v60 = vshrl.u32 %v9590_v28, 16  ;;  %v4383_v4 = vsel %vm9592_vm15, %v7178_v59, %v4382_v38  ;;  %v4384_v25 = vrot.slane %v4382_v38, 4  ;;  %v9615_v36 = vld [vmem:[#allocation2 + $0xb0] sm:$0x1] }
 0x1d7   : > { %7770 = vmatprep.mubr.bf16.mxu1 %v7054_v29  ;;  %v3984_v52 = vsel %vm9316_vm12, %v3979_v34, %v3983_v43  ;;  %v2031_v49 = vrot.slane %v2029_v41, 4  ;;  %v2034_v32 = vrot.slane %v2032_v46, 5  ;;  %v2040_v16 = vrot.slane %v2038_v56, 5  ;;  %10992 = vst [vmem:[#allocation7_spill] sm:$0xff] %v9615_v36 }
 0x1d8   : > { %v3994_v2 = vsel %vm9316_vm12, %v3989_v55, %v3993_v37  ;;  %v2044_v22 = vrot.slane %v2042_v60, 4  ;;  %v2048_v43 = vshll.u32 %v9596_v35, 16  ;;  %v4386_v29 = vsel %vm9592_vm15, %v4384_v25, %v4385_v14  ;;  %v4317_v37 = vld [vmem:[#allocation2 + $0x18] sm:$0xe] }
 0x1d9   : > { %v7169_v26 = vcombine.low %v3984_v52, %v3994_v2  ;;  %v2035_v34 = vor.u32 %v2034_v32, %v2031_v49  ;;  %v2053_v59 = vshrl.u32 %v9604_v63, 16  ;;  %v7194_v9 = vcombine.low %v4383_v4, %v4386_v29  ;;  %v8630_v2 = vld [vmem:[#allocation2 + $0x1c] sm:$0xf]  ;;  %v4318_v29 = vld [vmem:[#allocation2 + $0x24] sm:$0xe] }
 0x1da   : > { %v2045_v38 = vor.u32 %v2044_v22, %v2040_v16  ;;  %v2056_v39 = vshll.u32 %v9604_v63, 16  ;;  %v2062_v55 = vshll.u32 %v9611_v6, 16  ;;  %v2066_v52 = vshrl.u32 %v9611_v6, 16 }
 0x1db   : > { %7967 = vmatmul.mubr.bf16.gmra.mrb[28].mxu0 %v7169_v26  ;;  %v2036_v41 = vrot.slane %v2035_v34, 4  ;;  %v2055_v46 = vrot.slane %v2053_v59, 4  ;;  %v2050_v14 = vrot.slane %v2048_v43, 5  ;;  %v2072_v25 = vshll.u32 %v9615_v36, 16  ;;  %v8631_v36 = vld [vmem:[#allocation2 + $0x20] sm:$0x1] }
 0x1dc   : > { %7986 = vmatprep.mubr.bf16.mxu0 %v7194_v9  ;;  %v2046_v56 = vrot.slane %v2045_v38, 4  ;;  %v2058_v60 = vrot.slane %v2056_v39, 5  ;;  %v2064_v49 = vrot.slane %v2062_v55, 5  ;;  %v2068_v32 = vrot.slane %v2066_v52, 4  ;;  %v9626_v9 = vld [vmem:[#allocation2 + $0xb4] sm:$0xf] }
 0x1dd   : > { %v7179_v4 = vrot.slane %v4317_v37, 9  ;;  %v4389_v22 = vrot.slane %v8630_v2, 5  ;;  %v2041_v26 = vsel %vm9316_vm12, %v2036_v41, %v2040_v16  ;;  %v2074_v35 = vrot.slane %v2072_v25, 5  ;;  %10993 = vst [vmem:[#allocation8_spill] sm:$0xff] %v9626_v9  ;;  %v9630_v16 = vld [vmem:[#allocation2 + $0xb8] sm:$0xf] }
 0x1de   : > { %v2051_v34 = vsel %vm9316_vm12, %v2046_v56, %v2050_v14  ;;  %v2059_v59 = vor.u32 %v2058_v60, %v2055_v46  ;;  %v2069_v38 = vor.u32 %v2068_v32, %v2064_v49  ;;  %v4392_v55 = vrot.slane %v8631_v36, 5  ;;  %10994 = vst [vmem:[#allocation9_spill] sm:$0xff] %v9630_v16  ;;  %v8633_v32 = vld [vmem:[#allocation2 + $0x2c] sm:$0x1] }
 0x1df   : > { %v7055_v43 = vcombine.low %v2041_v26, %v2051_v34  ;;  %v4391_v39 = vrot.slane %v4389_v22, 4  ;;  %v4390_v37 = vsel %vm9592_vm15, %v7179_v4, %v4389_v22  ;;  %v7180_v2 = vrot.slane %v4318_v29, 9  ;;  %v9638_v22 = vld [vmem:[#allocation2 + $0xbc] sm:$0x1] }
 0x1e0   : > { %v2060_v52 = vrot.slane %v2059_v59, 4  ;;  %v4396_v63 = vrot.slane %v8632_v0, 5  ;;  %v2070_v41 = vrot.slane %v2069_v38, 4  ;;  %v2077_v56 = vshrl.u32 %v9626_v9, 16  ;;  %10995 = vst [vmem:[#allocation10_spill] sm:$0xff] %v9638_v22  ;;  %v8557_v0 = vld [vmem:[%s10954_s4 + $0x188] sm:$0xff]  }
 0x1e1   : > { %7771 = vmatmul.mubr.bf16.gmra.mrb[64].mxu1 %v7055_v43  ;;  %v4393_v46 = vsel %vm9592_vm15, %v4391_v39, %v4392_v55  ;;  %v2080_v14 = vshll.u32 %v9626_v9, 16  ;;  %v4399_v4 = vrot.slane %v8633_v32, 5  ;;  %v2086_v59 = vshll.u32 %v9630_v16, 16  ;;  %v4319_v55 = vld [vmem:[#allocation2 + $0x30] sm:$0xe] }
 0x1e2   : > { %v2065_v36 = vsel %vm9316_vm12, %v2060_v52, %v2064_v49  ;;  %v7195_v60 = vcombine.low %v4390_v37, %v4393_v46  ;;  %v4398_v25 = vrot.slane %v4396_v63, 4  ;;  %v2075_v29 = vsel %vm9316_vm12, %v2070_v41, %v2074_v35 }
 0x1e3   : > { %v2079_v26 = vrot.slane %v2077_v56, 4  ;;  %v2082_v34 = vrot.slane %v2080_v14, 5  ;;  %v7056_v43 = vcombine.low %v2065_v36, %v2075_v29  ;;  %v4397_v49 = vsel %vm9592_vm15, %v7180_v2, %v4396_v63  ;;  %v8634_v56 = vld [vmem:[#allocation2 + $0x34] sm:$0xf]  ;;  %v4320_v36 = vld [vmem:[#allocation2 + $0x3c] sm:$0xe] }
 0x1e4   : > { %7987 = vmatmul.mubr.bf16.vlgmr.msra.gmra.mrb[0].mxu0 %v7195_v60  ;;  %v4400_v38 = vsel %vm9592_vm15, %v4398_v25, %v4399_v4  ;;  %v2090_v39 = vshrl.u32 %v9630_v16, 16  ;;  %v2088_v35 = vrot.slane %v2086_v59, 5  ;;  %v2096_v41 = vshll.u32 %v9638_v22, 16  ;;  %v8561_v63 = vld [vmem:[%s10954_s4 + $0x190] sm:$0xff]   ;;  %v8635_v60 = vld [vmem:[#allocation2 + $0x40] sm:$0xf] }
 0x1e5   : > { %8019 = vmatpush3.bf16.msra.mxu0 %v9395_v30  ;;  %v7196_v52 = vcombine.low %v4397_v49, %v4400_v38  ;;  %v2083_v37 = vor.u32 %v2082_v34, %v2079_v26  ;;  %7774 = vmatprep.mubr.bf16.mxu1 %v7056_v43  ;;  %v4403_v14 = vrot.slane %v8634_v56, 5  ;;  %v7181_v2 = vrot.slane %v4319_v55, 9  ;;  %v8636_v29 = vld [vmem:[#allocation2 + $0x38] sm:$0x1]  ;;  %v8637_v49 = vld [vmem:[#allocation2 + $0x44] sm:$0x1] }
 0x1e6   : > { %v2092_v46 = vrot.slane %v2090_v39, 4  ;;  %8020 = vmatprep.subr.bf16.mxu0 %v8557_v0  ;;  %v4410_v25 = vrot.slane %v8635_v60, 5  ;;  %v4406_v26 = vrot.slane %v8636_v29, 5  ;;  %v2098_v34 = vrot.slane %v2096_v41, 5  ;;  %v9660_v60 = vld [vmem:[#allocation2 + $0x4] sm:$0xf] }
 0x1e7   : > { %7990 = vmatprep.mubr.bf16.mxu0 %v7196_v52  ;;  %v2084_v30 = vrot.slane %v2083_v37, 4  ;;  %v4405_v4 = vrot.slane %v4403_v14, 4  ;;  %v7182_v59 = vrot.slane %v4320_v36, 9  ;;  %v4413_v38 = vrot.slane %v8637_v49, 5  ;;  %v8638_v52 = vld [vmem:[#allocation2] sm:$0xf] }
 0x1e8   : > { %v2093_v32 = vor.u32 %v2092_v46, %v2088_v35  ;;  %v4412_v43 = vrot.slane %v4410_v25, 4  ;;  %v4404_v56 = vsel %vm9592_vm15, %v7181_v2, %v4403_v14  ;;  %v7066_v37 = vcombine.low %v8638_v52, %v9660_v60  ;;  %v8640_v36 = vld [vmem:[#allocation2 + $0x4c] sm:$0xf]  ;;  %v8564_v14 = vld [vmem:[%s10954_s4 + $0x198] sm:$0xff]  }
 0x1e9   : > { %8021 = vmatpush3.bf16.msra.mxu0 %v8557_v0  ;;  %v4407_v55 = vsel %vm9592_vm15, %v4405_v4, %v4406_v26  ;;  %v4411_v0 = vsel %vm9592_vm15, %v7182_v59, %v4410_v25  ;;  %v2089_v2 = vsel %vm9316_vm12, %v2084_v30, %v2088_v35  ;;  %v8641_v26 = vld [vmem:[#allocation2 + $0x58] sm:$0xf]  ;;  %v4321_v25 = vld [vmem:[#allocation2 + $0x48] sm:$0xe]  ;;  %v8567_v35 = vld [vmem:[%s10954_s4 + $0x1a0] sm:$0xff]   ;;  %v10996_v58 = vrot.slane %v9441_v24, 5 }
 0x1ea   : > { %v2094_v39 = vrot.slane %v2093_v32, 4  ;;  %8022 = vmatprep.subr.bf16.mxu0 %v8561_v63  ;;  %v7197_v46 = vcombine.low %v4404_v56, %v4407_v55  ;;  %v4414_v41 = vsel %vm9592_vm15, %v4412_v43, %v4413_v38  ;;  %v4417_v32 = vrot.slane %v8640_v36, 5  ;;  %v8642_v43 = vld [vmem:[#allocation2 + $0x50] sm:$0x1]  ;;  %v4322_v55 = vld [vmem:[#allocation2 + $0x54] sm:$0xe] }
 0x1eb   : > { %v7198_v29 = vcombine.low %v4411_v0, %v4414_v41  ;;  %v4424_v49 = vrot.slane %v8641_v26, 5  ;;  %v4420_v38 = vrot.slane %v8642_v43, 5  ;;  %v8643_v36 = vld [vmem:[#allocation2 + $0x5c] sm:$0x1]  ;;  %v7183_v30 = vrot.slane %v4321_v25, 9  ;;  %v8570_v26 = vld [vmem:[%s10954_s4 + $0x1a8] sm:$0xff]  }
 0x1ec   : > { %v2099_v4 = vsel %vm9316_vm12, %v2094_v39, %v2098_v34  ;;  %7991 = vmatmul.mubr.bf16.gmra.mrb[4].mxu0 %v7197_v46  ;;  %v4419_v59 = vrot.slane %v4417_v32, 4  ;;  %v4427_v22 = vrot.slane %v8643_v36, 5  ;;  %v8644_v39 = vld [vmem:[#allocation2 + $0x64] sm:$0xf]  ;;  %v7184_v0 = vrot.slane %v4322_v55, 9 }
 0x1ed   : > { %v7057_v56 = vcombine.low %v2089_v2, %v2099_v4  ;;  %7994 = vmatprep.mubr.bf16.mxu0 %v7198_v29  ;;  %8023 = vmatpush3.bf16.msra.mxu0 %v8561_v63  ;;  %v4426_v52 = vrot.slane %v4424_v49, 4  ;;  %v4431_v46 = vrot.slane %v8644_v39, 5  ;;  %v8645_v41 = vld [vmem:[#allocation2 + $0x70] sm:$0xf]  ;;  %v4418_v4 = vsel %vm9592_vm15, %v7183_v30, %v4417_v32  ;;  %v4323_v25 = vld [vmem:[#allocation2 + $0x60] sm:$0xe] }
 0x1ee   : > { %8024 = vmatprep.subr.bf16.mxu0 %v8564_v14  ;;  %v4421_v34 = vsel %vm9592_vm15, %v4419_v59, %v4420_v38  ;;  %v4438_v2 = vrot.slane %v8645_v41, 5  ;;  %v8646_v43 = vld [vmem:[#allocation2 + $0xc] sm:$0xf]  ;;  %v10966_v55 = vrot.slane %v9430_v1, 5  ;;  %v9695_v36 = vld [vmem:[#allocation2 + $0x1c] sm:$0xf]  ;;  %v7077_v12 = vcombine.low %v9540_v62, %v9545_v11 }
 0x1ef   : > { %7775 = vmatmul.mubr.bf16.gmra.mrb[68].mxu1 %v7057_v56  ;;  %v4428_v63 = vsel %vm9592_vm15, %v4426_v52, %v4427_v22  ;;  %v7199_v29 = vcombine.low %v4418_v4, %v4421_v34  ;;  %v4433_v59 = vrot.slane %v4431_v46, 4  ;;  %v9688_v22 = vld [vmem:[#allocation2 + $0x10] sm:$0xf]  ;;  %v4324_v32 = vld [vmem:[#allocation2 + $0x6c] sm:$0xe]  ;;  %v4454_v9 = vrot.slane %v10996_v58, 4 }
 0x1f0   : > { %7794 = vmatprep.mubr.bf16.mxu1 %v7066_v37  ;;  %v4425_v37 = vsel %vm9592_vm15, %v7184_v0, %v4424_v49  ;;  %v7067_v38 = vcombine.low %v8646_v43, %v9688_v22  ;;  %v8574_v49 = vld [vmem:[%s10954_s4 + $0x88] sm:$0xff]   ;;  %v8648_v52 = vld [vmem:[#allocation2 + $0x18] sm:$0xf]  ;;  %v8651_v0 = vld [vmem:[#allocation2 + $0x74] sm:$0x1]  ;;  %v7186_v43 = vrot.slane %v4324_v32, 9 }
 0x1f1   : > { %8025 = vmatpush3.bf16.msra.mxu0 %v8564_v14  ;;  %v7200_v56 = vcombine.low %v4425_v37, %v4428_v63  ;;  %v4440_v14 = vrot.slane %v4438_v2, 4  ;;  %v7068_v30 = vcombine.low %v8648_v52, %v9695_v36  ;;  %v8650_v34 = vld [vmem:[#allocation2 + $0x68] sm:$0x1]  ;;  %v4441_v63 = vrot.slane %v8651_v0, 5  ;;  %v9698_v41 = vld [vmem:[#allocation2 + $0x78] sm:$0xe] }
 0x1f2   : > { %8026 = vmatprep.subr.bf16.mxu0 %v8567_v35  ;;  %v4434_v39 = vrot.slane %v8650_v34, 5  ;;  %v7185_v37 = vrot.slane %v4323_v25, 9  ;;  %v4447_v0 = vrot.slane %v10966_v55, 4  ;;  %v4326_v4 = vld [vmem:[#allocation2 + $0x84] sm:$0xe]  ;;  %v8577_v25 = vld [vmem:[%s10954_s4 + $0x90] sm:$0xff]  }
 0x1f3   : > { %v4442_v34 = vsel %vm9592_vm15, %v4440_v14, %v4441_v63  ;;  %v9717_v32 = vld [vmem:[#allocation2 + $0x34] sm:$0xf]  ;;  %v4439_v14 = vsel %vm9592_vm15, %v7186_v43, %v4438_v2  ;;  %v4329_v63 = vld [vmem:[#allocation2 + $0xa8] sm:$0xe]  ;;  %v4448_v55 = vrot.slane %v9432_v8, 5  ;;  %v4473_v16 = vrot.slane %v9520_v20, 5 }
 0x1f4   : > { %7995 = vmatmul.mubr.bf16.gmra.mrb[8].mxu0 %v7199_v29  ;;  %v8575_v29 = vld [vmem:[%s10954_s4 + $0x1b0] sm:$0xff]   ;;  %v7188_v2 = vrot.slane %v4326_v4, 9  ;;  %v7191_v58 = vrot.slane %v4329_v63, 9  ;;  %v4476_v20 = vrot.slane %v9524_v31, 5  ;;  %v8579_v43 = vld [vmem:[%s10954_s4 + $0x98] sm:$0xff]   ;;  %v4459_v4 = vrot.slane %v9474_v21, 5 }
 0x1f5   : > { %7998 = vmatprep.mubr.bf16.mxu0 %v7200_v56  ;;  %8027 = vmatpush3.bf16.msra.mxu0 %v8567_v35  ;;  %v4435_v56 = vsel %vm9592_vm15, %v4433_v59, %v4434_v39  ;;  %v8652_v35 = vld [vmem:[#allocation2 + $0x24] sm:$0xf]  ;;  %v8654_v59 = vld [vmem:[#allocation2 + $0x30] sm:$0xf]  ;;  %v7187_v39 = vrot.slane %v9698_v41, 9  ;;  %v4455_v41 = vrot.slane %v9451_v33, 5  ;;  %v4449_v8 = vsel %vm9592_vm15, %v4447_v0, %v4448_v55 }
 0x1f6   : > { %8028 = vmatprep.subr.bf16.mxu0 %v8570_v26  ;;  %v9746_v31 = vsel %vm9592_vm15, %v7191_v58, %v4473_v16  ;;  %v8583_v63 = vld [vmem:[%s10954_s4 + $0xa0] sm:$0xff]   ;;  %v4327_v58 = vld [vmem:[#allocation2 + $0x90] sm:$0xe]  ;;  %v9829_v21 = vld [vmem:[#allocation2 + $0x58] sm:$0xf]  ;;  %v2775_v5 = vrot.slane %v9717_v32, 5 }
 0x1f7   : > { %7795 = vmatmul.mubr.bf16.vlgmr.msra.gmra.mrb[40].mxu1 %v7067_v38  ;;  %v9707_v38 = vld [vmem:[#allocation2 + $0x28] sm:$0xf]  ;;  %v4456_v55 = vsel %vm9592_vm15, %v4454_v9, %v4455_v41  ;;  %v2697_v62 = vld [vmem:[#allocation2 + $0x24] sm:$0xe] }
 0x1f8   : > { %7798 = vmatprep.mubr.bf16.mxu1 %v7068_v30  ;;  %7827 = vmatpush3.bf16.msra.mxu1 %v9437_v10  ;;  %v7069_v52 = vcombine.low %v8652_v35, %v9707_v38  ;;  %v7070_v10 = vcombine.low %v8654_v59, %v9717_v32  ;;  %v4432_v30 = vsel %vm9592_vm15, %v7185_v37, %v4431_v46  ;;  %v4330_v59 = vld [vmem:[#allocation2 + $0xb4] sm:$0xe]  ;;  %v8580_v46 = vld [vmem:[%s10954_s4 + $0x1b8] sm:$0xff]  }
 0x1f9   : > { %7828 = vmatprep.subr.bf16.mxu1 %v8574_v49  ;;  %8029 = vmatpush3.bf16.msra.mxu0 %v8570_v26  ;;  %v7201_v35 = vcombine.low %v4432_v30, %v4435_v56  ;;  %v7202_v37 = vcombine.low %v4439_v14, %v4442_v34  ;;  %v4480_v26 = vrot.slane %v9529_v42, 5  ;;  %v4475_v56 = vrot.slane %v4473_v16, 4  ;;  %v4331_v34 = vld [vmem:[#allocation2 + $0xc0] sm:$0xe] }
 0x1fa   : > { %8030 = vmatprep.subr.bf16.mxu0 %v8575_v29  ;;  %v7192_v33 = vrot.slane %v4330_v59, 9  ;;  %v4483_v42 = vrot.slane %v9535_v54, 5  ;;  %v9756_v54 = vld [vmem:[%s10954_s4 + $0x1c0] sm:$0xff]   ;;  %v7193_v14 = vrot.slane %v4331_v34, 9  ;;  %v4328_v34 = vld [vmem:[#allocation2 + $0x9c] sm:$0xe] }
 0x1fb   : > { %v9750_v0 = vsel %vm9592_vm15, %v4475_v56, %v4476_v20  ;;  %v8585_v20 = vld [vmem:[%s10954_s4 + $0xa8] sm:$0xff]  }
 0x1fc   : > { %7829 = vmatpush3.bf16.msra.mxu1 %v8574_v49  ;;  %7999 = vmatmul.mubr.bf16.gmra.mrb[12].mxu0 %v7201_v35  ;;  %v4482_v49 = vrot.slane %v4480_v26, 4  ;;  %v7207_v9 = vcombine.low %v9746_v31, %v9750_v0  ;;  %v9763_v16 = vsel %vm9592_vm15, %v7192_v33, %v4480_v26  ;;  %v10997_v35 = vrot.slane %v9430_v1, 5  ;;  %v8658_v33 = vld [vmem:[#allocation2 + $0x48] sm:$0xf] }
 0x1fd   : > { %7830 = vmatprep.subr.bf16.mxu1 %v8577_v25  ;;  %8002 = vmatprep.mubr.bf16.mxu0 %v7202_v37  ;;  %v2761_v0 = vrot.slane %v9695_v36, 5  ;;  %v7078_v36 = vcombine.low %v9555_v44, %v9560_v45 }
 0x1fe   : > { %8031 = vmatpush3.bf16.msra.mxu0 %v8575_v29  ;;  %v4487_v29 = vrot.slane %v9572_v18, 5  ;;  %v9767_v30 = vsel %vm9592_vm15, %v4482_v49, %v4483_v42  ;;  %v4446_v59 = vsel %vm9592_vm15, %v7187_v39, %v10997_v35  ;;  %v4461_v39 = vrot.slane %v4459_v4, 4  ;;  %v9802_v49 = vld [vmem:[#allocation2 + $0x4c] sm:$0xf] }
 0x1ff   : > { %7799 = vmatmul.mubr.bf16.gmra.mrb[44].mxu1 %v7069_v52  ;;  %8032 = vmatprep.subr.bf16.mxu0 %v8580_v46  ;;  %v4466_v52 = vrot.slane %v9484_v61, 5  ;;  %v7208_v18 = vcombine.low %v9763_v16, %v9767_v30  ;;  %v4490_v61 = vrot.slane %v9577_v47, 5  ;;  %v7203_v37 = vcombine.low %v4446_v59, %v4449_v8  ;;  %v8664_v30 = vld [vmem:[#allocation2 + $0x8] sm:$0x1] }
 0x200   : > { %7802 = vmatprep.mubr.bf16.mxu1 %v7070_v10  ;;  %7831 = vmatpush3.bf16.msra.mxu1 %v8577_v25  ;;  %v4489_v10 = vrot.slane %v4487_v29, 4  ;;  %v10998_v25 = vrot.slane %v9441_v24, 5  ;;  %v9785_v26 = vsel %vm9592_vm15, %v7193_v14, %v4487_v29  ;;  %v4462_v42 = vrot.slane %v9478_v51, 5  ;;  %v647_v14 = vld [vmem:[#allocation2 + $0xd4] sm:$0x1] }
 0x201   : > { %7832 = vmatprep.subr.bf16.mxu1 %v8579_v43  ;;  %v4468_v56 = vrot.slane %v4466_v52, 4  ;;  %v4469_v29 = vrot.slane %v9491_v13, 5  ;;  %v7190_v35 = vrot.slane %v4328_v34, 9  ;;  %v8590_v51 = vld [vmem:[%s10954_s4 + $0xb0] sm:$0xff]   ;;  %v8660_v13 = vld [vmem:[%s10956_s6] ss:$0 sm:$0xff] }
 0x202   : > { %8033 = vmatpush3.bf16.msra.mxu0 %v8580_v46  ;;  %v4453_v41 = vsel %vm9592_vm15, %v7188_v2, %v10998_v25  ;;  %v9789_v47 = vsel %vm9592_vm15, %v4489_v10, %v4490_v61  ;;  %v8656_v46 = vld [vmem:[#allocation2 + $0x3c] sm:$0xf]  ;;  %v9796_v2 = vld [vmem:[#allocation2 + $0x40] sm:$0xf]  ;;  %v7189_v10 = vrot.slane %v4327_v58, 9  ;;  %v4463_v61 = vsel %vm9592_vm15, %v4461_v39, %v4462_v42 }
 0x203   : > { %8066 = vmatprep.subr.bf16.mxu0 %v9756_v54  ;;  %v7204_v1 = vcombine.low %v4453_v41, %v4456_v55  ;;  %v7209_v24 = vcombine.low %v9785_v26, %v9789_v47  ;;  %v7071_v8 = vcombine.low %v8656_v46, %v9796_v2  ;;  %v591_v55 = vld [vmem:[#allocation2 + $0xcc] sm:$0x1]  ;;  %v4470_v59 = vsel %vm9592_vm15, %v4468_v56, %v4469_v29  ;;  %v8661_v56 = vld [vmem:[#allocation2 + $0x54] sm:$0xf] }
 0x204   : > { %7833 = vmatpush3.bf16.msra.mxu1 %v8579_v43  ;;  %8003 = vmatmul.mubr.bf16.gmra.mrb[16].mxu0 %v7203_v37  ;;  %v7072_v43 = vcombine.low %v8658_v33, %v9802_v49  ;;  %v592_v37 = vsel %vm8873_vm2, 0, %v591_v55  ;;  %v1604_v25 = vadd.f32 %v8660_v13, %v9537_v57  ;;  %v648_v41 = vsel %vm8961_vm5, 0, %v647_v14 }
 0x205   : > { %7834 = vmatprep.subr.bf16.mxu1 %v8583_v63  ;;  %8006 = vmatprep.mubr.bf16.mxu0 %v7204_v1  ;;  %593 = vst [vmem:[#allocation2 + $0xcc] sm:$0x1] %v592_v37  ;;  %v1607_v1 = vadd.f32 %v8660_v13, %v9547_v15  ;;  %v4467_v46 = vsel %vm9592_vm15, %v7190_v35, %v4466_v52  ;;  %649 = vst [vmem:[#allocation2 + $0xd4] sm:$0x1] %v648_v41  ;;  %v2696_v41 = vld [vmem:[#allocation2 + $0x18] sm:$0xe] }
 0x206   : > { %v7206_v58 = vcombine.low %v4467_v46, %v4470_v59  ;;  %v7074_v52 = vcombine.low %v9460_v7, %v9464_v17  ;;  %v7075_v35 = vcombine.low %v9494_v19, %v9496_v27  ;;  %v2747_v19 = vrot.slane %v9660_v60, 5 }
 0x207   : > { %7803 = vmatmul.mubr.bf16.gmra.mrb[48].mxu1 %v7071_v8  ;;  %v1610_v8 = vmax.f32 %v1604_v25, 0.0  ;;  %v1611_v57 = vmax.f32 %v1607_v1, 0.0  ;;  %v2694_v25 = vld [vmem:[#allocation2] sm:$0xe]  ;;  %v2754_v27 = vrot.slane %v9688_v22, 5  ;;  %v2750_v22 = vrot.slane %v8664_v30, 5 }
 0x208   : > { %7806 = vmatprep.mubr.bf16.mxu1 %v7072_v43  ;;  %7835 = vmatpush3.bf16.msra.mxu1 %v8583_v63  ;;  %v4460_v63 = vsel %vm9592_vm15, %v7189_v10, %v4459_v4  ;;  %v7073_v4 = vcombine.low %v8661_v56, %v9829_v21  ;;  %v7090_v60 = vrot.slane %v2694_v25, 9  ;;  %v2749_v53 = vrot.slane %v2747_v19, 4  ;;  %v2700_v25 = vld [vmem:[#allocation2 + $0x48] sm:$0xe]  ;;  %v8588_v30 = vld [vmem:[#allocation2 + $0x30] sm:$0xff]  }
 0x209   : > { %7836 = vmatprep.subr.bf16.mxu1 %v8585_v20  ;;  %v7205_v39 = vcombine.low %v4460_v63, %v4463_v61  ;;  %v1613_v15 = vmul.f32 0.0, %v1610_v8  ;;  %v1614_v33 = vmul.f32 0.0, %v1611_v57  ;;  %v2756_v63 = vrot.slane %v2754_v27, 4  ;;  %v10999_v8 = vld [vmem:[#allocation6_spill] sm:$0xff]  ;;  %v11001_v57 = vld [vmem:[#allocation8_spill] sm:$0xff] }
 0x20a   : > { %v2768_v1 = vrot.slane %v9707_v38, 5  ;;  %v7079_v46 = vcombine.low %v9584_v23, %v9590_v28  ;;  %v11000_v38 = vld [vmem:[#allocation9_spill] sm:$0xff]  ;;  %v9874_v44 = vsel %vm9592_vm15, %v7090_v60, %v2747_v19  ;;  %v9879_v26 = vsel %vm9592_vm15, %v2749_v53, %v2750_v22  ;;  %v8670_v53 = vld [vmem:[#allocation2 + $0x50] sm:$0x1] }
 0x20b   : > { %v7358_v43 = vpack.c.bf16 %v1614_v33, %v1614_v33  ;;  %v7081_v32 = vcombine.low %v11001_v57, %v11000_v38 }
 0x20c   : > { %7837 = vmatpush3.bf16.msra.mxu1 %v8585_v20  ;;  %8007 = vmatmul.mubr.bf16.gmra.mrb[20].mxu0 %v7205_v39  ;;  %v7357_v20 = vpack.c.bf16 %v1613_v15, %v1613_v15  ;;  %v1642_v10 = vld [vmem:[#allocation2 + $0xcc] sm:$0xf]  ;;  %v1646_v59 = vld [vmem:[#allocation2 + $0xd4] sm:$0x1]  ;;  %v8581_v39 = vld [vmem:[#allocation2 + $0x18] sm:$0xff]   ;;  %v7092_v15 = vrot.slane %v2696_v41, 9 }
 0x20d   : > { %7838 = vmatprep.subr.bf16.mxu1 %v8590_v51  ;;  %8010 = vmatprep.mubr.bf16.mxu0 %v7206_v58  ;;  %v1630_v55 = vshrl.u32 %v7358_v43, 16  ;;  %v1633_v29 = vshll.u32 %v7358_v43, 16  ;;  %v7080_v58 = vcombine.low %v10999_v8, %v9611_v6  ;;  %v2698_v43 = vld [vmem:[#allocation2 + $0x30] sm:$0xe]  ;;  %v5199_v8 = vld [vmem:[#allocation2 + $0x18] sm:$0xf] }
 0x20e   : > { %v1622_v42 = vshrl.u32 %v7357_v20, 16  ;;  %v1625_v34 = vshll.u32 %v7357_v20, 16  ;;  %v2789_v20 = vrot.slane %v9802_v49, 5  ;;  %v9891_v49 = vsel %vm9592_vm15, %v7092_v15, %v2761_v0  ;;  %v8671_v15 = vld [vmem:[#allocation2 + $0x5c] sm:$0x1] }
 0x20f   : > { %7807 = vmatmul.mubr.bf16.gmra.mrb[52].mxu1 %v7073_v4  ;;  %v1632_v61 = vrot.slane %v1630_v55, 7  ;;  %v2763_v4 = vrot.slane %v2761_v0, 4  ;;  %v7093_v55 = vrot.slane %v2697_v62, 9  ;;  %v8668_v0 = vld [vmem:[#allocation2 + $0x44] sm:$0x1] }
 0x210   : > { %7810 = vmatprep.mubr.bf16.mxu1 %v7074_v52  ;;  %7839 = vmatpush3.bf16.msra.mxu1 %v8590_v51  ;;  %v1624_v14 = vrot.slane %v1622_v42, 7  ;;  %v7076_v51 = vcombine.low %v9505_v40, %v9510_v50  ;;  %v8665_v52 = vld [vmem:[#allocation2 + $0x20] sm:$0x1]  ;;  %v2777_v42 = vrot.slane %v2775_v5, 4  ;;  %v2791_v19 = vrot.slane %v2789_v20, 4 }
 0x211   : > { %7840 = vmatprep.subr.bf16.mxu1 %v8591_v3  ;;  %v1635_v37 = vor.u32 %v1633_v29, %v1632_v61  ;;  %v1637_v13 = vrot.slane %v1632_v61, 4  ;;  %v2764_v33 = vrot.slane %v8665_v52, 5  ;;  %v2796_v29 = vrot.slane %v9829_v21, 5 }
 0x212   : > { %v1627_v7 = vor.u32 %v1625_v34, %v1624_v14  ;;  %v1628_v17 = vrot.slane %v1624_v14, 4  ;;  %v2799_v52 = vrot.slane %v8671_v15, 5  ;;  %v5251_v15 = vshll.u32 %v5199_v8, 16 }
 0x213   : > { %v1647_v50 = vsel %vm8873_vm2, %v1637_v13, %v1646_v59  ;;  %v9896_v14 = vsel %vm9592_vm15, %v2763_v4, %v2764_v33  ;;  %v7106_v59 = vcombine.low %v9874_v44, %v9879_v26  ;;  %v2699_v13 = vld [vmem:[#allocation2 + $0x3c] sm:$0xe]  ;;  %v2798_v41 = vrot.slane %v2796_v29, 4  ;;  %v2701_v4 = vld [vmem:[#allocation2 + $0x54] sm:$0xe] }
 0x214   : > { %7841 = vmatpush3.bf16.msra.mxu1 %v8591_v3  ;;  %8011 = vmatmul.mubr.bf16.gmra.mrb[24].mxu0 %v7207_v9  ;;  %v1643_v31 = vsel %vm9092_vm8, %v1627_v7, %v1642_v10  ;;  %v1636_v40 = vsel %vm9099_vm9, %v1628_v17, %v1635_v37  ;;  %1648 = vst [vmem:[#allocation2 + $0xd4] sm:$0x1] %v1647_v50  ;;  %v8663_v9 = vld [vmem:[#allocation2 + $0x14] sm:$0x1]  ;;  %v2782_v3 = vrot.slane %v9796_v2, 5  ;;  %v7094_v37 = vrot.slane %v2698_v43, 9 }
 0x215   : > { %8014 = vmatprep.mubr.bf16.mxu0 %v7208_v18  ;;  %1644 = vst [vmem:[#allocation2 + $0xcc] sm:$0xf] %v1643_v31  ;;  %1645 = vst [vmem:[#allocation2 + $0xd0] sm:$0xf] %v1636_v40  ;;  %v2757_v16 = vrot.slane %v8663_v9, 5  ;;  %v8592_v31 = vld [vmem:[%s10954_s4 + $0x1c8] sm:$0xff]   ;;  %v7108_v22 = vcombine.low %v9891_v49, %v9896_v14 }
 0x216   : > { %v2695_v18 = vld [vmem:[#allocation2 + $0xc] sm:$0xe]  ;;  %v8666_v10 = vld [vmem:[#allocation2 + $0x2c] sm:$0x1]  ;;  %v2784_v17 = vrot.slane %v2782_v3, 4  ;;  %v2785_v9 = vrot.slane %v8668_v0, 5 }
 0x217   : > { %7811 = vmatmul.mubr.bf16.gmra.mrb[56].mxu1 %v7075_v35  ;;  %v7091_v56 = vrot.slane %v2695_v18, 9  ;;  %v9883_v47 = vsel %vm9592_vm15, %v2756_v63, %v2757_v16  ;;  %v2771_v61 = vrot.slane %v8666_v10, 5  ;;  %v8667_v35 = vld [vmem:[#allocation2 + $0x38] sm:$0x1]  ;;  %v8669_v16 = vld [vmem:[#allocation2 + $0x64] sm:$0xf]  ;;  %v9919_v18 = vsel %vm9592_vm15, %v7093_v55, %v2768_v1 }
 0x218   : > { %7814 = vmatprep.mubr.bf16.mxu1 %v7076_v51  ;;  %v2778_v7 = vrot.slane %v8667_v35, 5  ;;  %v2803_v60 = vrot.slane %v8669_v16, 5  ;;  %v2792_v63 = vrot.slane %v8670_v53, 5  ;;  %v2702_v33 = vld [vmem:[#allocation2 + $0x60] sm:$0xe]  ;;  %v7097_v2 = vrot.slane %v2701_v4, 9 }
 0x219   : > { %v9887_v34 = vsel %vm9592_vm15, %v7091_v56, %v2754_v27  ;;  %v8587_v27 = vld [vmem:[#allocation2 + $0x24] sm:$0xff]   ;;  %v7096_v56 = vrot.slane %v2700_v25, 9  ;;  %v2703_v10 = vld [vmem:[#allocation2 + $0x6c] sm:$0xe]  ;;  %v8673_v35 = vld [vmem:[#allocation2 + $0x7c] sm:$0xf] }
 0x21a   : > { %v7107_v51 = vcombine.low %v9887_v34, %v9883_v47  ;;  %v9913_v50 = vsel %vm9592_vm15, %v2777_v42, %v2778_v7  ;;  %v2805_v55 = vrot.slane %v2803_v60, 4  ;;  %v2817_v7 = vrot.slane %v8673_v35, 5  ;;  %v8593_v16 = vld [vmem:[#allocation2 + $0x3c] sm:$0xff]  }
 0x21b   : > { %v9954_v42 = vsel %vm9592_vm15, %v7096_v56, %v2789_v20  ;;  %v2824_v25 = vrot.slane %v9545_v11, 5  ;;  %v8598_v53 = vld [vmem:[%s10954_s4 + $0x1d8] sm:$0xff]   ;;  %v2831_v56 = vrot.slane %v9560_v45, 5  ;;  %v5248_v4 = vshrl.u32 %v5199_v8, 16  ;;  %v8677_v8 = vld [vmem:[#allocation2 + $0x8c] sm:$0x1] }
 0x21c   : > { %8015 = vmatmul.mubr.bf16.gmra.mrb[28].mxu0 %v7209_v24  ;;  %v2770_v24 = vrot.slane %v2768_v1, 4  ;;  %v2845_v26 = vrot.slane %v9611_v6, 5  ;;  %v5206_v11 = vld [vmem:[#allocation2 + $0x34] sm:$0xf] }
 0x21d   : > { %8034 = vmatprep.mubr.bf16.mxu0 %v8581_v39  ;;  %v9929_v39 = vsel %vm9592_vm15, %v2784_v17, %v2785_v9  ;;  %v7098_v17 = vrot.slane %v2702_v33, 9  ;;  %v8675_v33 = vld [vmem:[#allocation2 + $0x74] sm:$0x1] }
 0x21e   : > { %v9909_v40 = vsel %vm9592_vm15, %v2770_v24, %v2771_v61  ;;  %v5200_v24 = vld [vmem:[#allocation2 + $0x1c] sm:$0xf]  ;;  %v8672_v61 = vld [vmem:[#allocation2 + $0x70] sm:$0xf] }
 0x21f   : > { %7815 = vmatmul.mubr.bf16.gmra.mrb[60].mxu1 %v7077_v12  ;;  %v9925_v12 = vsel %vm9592_vm15, %v7094_v37, %v2775_v5  ;;  %v7109_v1 = vcombine.low %v9919_v18, %v9909_v40  ;;  %v9938_v5 = vsel %vm9592_vm15, %v2791_v19, %v2792_v63  ;;  %v2810_v23 = vrot.slane %v8672_v61, 5  ;;  %v8674_v37 = vld [vmem:[#allocation2 + $0x68] sm:$0x1]  ;;  %v8676_v61 = vld [vmem:[#allocation2 + $0x80] sm:$0x1] }
 0x220   : > { %7818 = vmatprep.mubr.bf16.mxu1 %v7078_v36  ;;  %v7095_v36 = vrot.slane %v2699_v13, 9  ;;  %v7110_v62 = vcombine.low %v9925_v12, %v9913_v50  ;;  %v7112_v20 = vcombine.low %v9954_v42, %v9938_v5  ;;  %v2806_v13 = vrot.slane %v8674_v37, 5 }
 0x221   : > { %v7099_v19 = vrot.slane %v2703_v10, 9  ;;  %v5257_v0 = vshll.u32 %v5200_v24, 16  ;;  %v5261_v9 = vshrl.u32 %v5200_v24, 16  ;;  %v9981_v21 = vsel %vm9592_vm15, %v7098_v17, %v2803_v60 }
 0x222   : > { %v9950_v43 = vsel %vm9592_vm15, %v7095_v36, %v2782_v3  ;;  %v9963_v3 = vsel %vm9592_vm15, %v2798_v41, %v2799_v52  ;;  %v2812_v63 = vrot.slane %v2810_v23, 4  ;;  %v2819_v41 = vrot.slane %v2817_v7, 4  ;;  %v2705_v36 = vld [vmem:[#allocation2 + $0x84] sm:$0xe] }
 0x223   : > { %v9990_v52 = vsel %vm9592_vm15, %v7099_v19, %v2810_v23  ;;  %v2813_v24 = vrot.slane %v8675_v33, 5  ;;  %v2826_v10 = vrot.slane %v2824_v25, 4  ;;  %v2820_v45 = vrot.slane %v8676_v61, 5  ;;  %v8601_v23 = vld [vmem:[%s10954_s4 + $0x1e0] sm:$0xff]  }
 0x224   : > { %8035 = vmatmul.mubr.bf16.vlgmr.msra.gmra.mrb[0].mxu0 %v8587_v27  ;;  %v2704_v27 = vld [vmem:[#allocation2 + $0x78] sm:$0xe]  ;;  %v9996_v35 = vrot.slane %v5257_v0, 5  ;;  %v5263_v17 = vrot.slane %v5261_v9, 4  ;;  %v2827_v19 = vrot.slane %v8677_v8, 5  ;;  %v5250_v0 = vrot.slane %v5248_v4, 4 }
 0x225   : > { %8067 = vmatpush3.bf16.msra.mxu0 %v9756_v54  ;;  %8038 = vmatprep.mubr.bf16.mxu0 %v8588_v30  ;;  %v8595_v54 = vld [vmem:[%s10954_s4 + $0x1d0] sm:$0xff]   ;;  %v8594_v30 = vld [vmem:[#allocation2 + $0x48] sm:$0xff]   ;;  %v7100_v60 = vrot.slane %v2704_v27, 9  ;;  %v10017_v57 = vsel %vm9592_vm15, %v2819_v41, %v2820_v45  ;;  %v5253_v9 = vrot.slane %v5251_v15, 5  ;;  %v2838_v33 = vrot.slane %v9590_v28, 5  ;;  %v8597_v45 = vld [vmem:[#allocation2 + $0x60] sm:$0xff]  }
 0x226   : > { %8068 = vmatprep.subr.bf16.mxu0 %v8592_v31  ;;  %v5203_v27 = vld [vmem:[#allocation2 + $0x28] sm:$0xf]  ;;  %v5264_v44 = vor.u32 %v5263_v17, %v9996_v35  ;;  %v8596_v4 = vld [vmem:[#allocation2 + $0x54] sm:$0xff]  }
 0x227   : > { %7819 = vmatmul.mubr.bf16.gmra.mrb[64].mxu1 %v7079_v46  ;;  %v7111_v46 = vcombine.low %v9950_v43, %v9929_v39  ;;  %v10010_v37 = vsel %vm9592_vm15, %v7100_v60, %v2817_v7  ;;  %v5281_v41 = vshll.u32 %v5203_v27, 16  ;;  %v8604_v15 = vld [vmem:[%s10954_s4 + $0x1e8] sm:$0xff]   ;;  %v5254_v8 = vor.u32 %v5253_v9, %v5250_v0 }
 0x228   : > { %7822 = vmatprep.mubr.bf16.mxu1 %v7080_v58  ;;  %v9972_v58 = vsel %vm9592_vm15, %v7097_v2, %v2796_v29  ;;  %v9985_v29 = vsel %vm9592_vm15, %v2805_v55, %v2806_v13  ;;  %v2706_v2 = vld [vmem:[#allocation2 + $0x90] sm:$0xe]  ;;  %v7101_v13 = vrot.slane %v2705_v36, 9  ;;  %v5201_v36 = vld [vmem:[#allocation2 + $0x20] sm:$0x1] }
 0x229   : > { %8069 = vmatpush3.bf16.msra.mxu0 %v8592_v31  ;;  %v7102_v7 = vrot.slane %v2706_v2, 9  ;;  %v5265_v2 = vrot.slane %v5264_v44, 4  ;;  %v2708_v55 = vld [vmem:[#allocation2 + $0xa8] sm:$0xe]  ;;  %v10055_v0 = vrot.slane %v5281_v41, 5  ;;  %v5309_v44 = vshrl.u32 %v5206_v11, 16 }
 0x22a   : > { %8070 = vmatprep.subr.bf16.mxu0 %v8595_v54  ;;  %v5255_v41 = vrot.slane %v5254_v8, 4  ;;  %v7104_v34 = vrot.slane %v2708_v55, 9  ;;  %v10078_v8 = vld [vmem:[#allocation2 + $0x38] sm:$0x1] }
 0x22b   : > { %v10042_v61 = vsel %vm9592_vm15, %v7102_v7, %v2831_v56  ;;  %v5204_v7 = vld [vmem:[#allocation2 + $0x2c] sm:$0x1]  ;;  %11006 = vst [vmem:[#allocation6_spill] sm:$0xff] %v10078_v8  ;;  %v8610_v55 = vld [vmem:[%s10954_s4 + $0x1f8] sm:$0xff]   ;;  %v5315_v28 = vshll.u32 %v10078_v8, 16 }
 0x22c   : > { %8039 = vmatmul.mubr.bf16.gmra.mrb[4].mxu0 %v8593_v16  ;;  %v10021_v16 = vsel %vm9592_vm15, %v2826_v10, %v2827_v19  ;;  %v5267_v19 = vshll.u32 %v5201_v36, 16 }
 0x22d   : > { %8042 = vmatprep.mubr.bf16.mxu0 %v8594_v30  ;;  %8071 = vmatpush3.bf16.msra.mxu0 %v8595_v54  ;;  %v10006_v54 = vsel %vm9592_vm15, %v2812_v63, %v2813_v24  ;;  %v11002_v30 = vld [vmem:[#allocation4_spill] sm:$0xff]  ;;  %v5285_v24 = vshrl.u32 %v5203_v27, 16  ;;  %v5205_v27 = vld [vmem:[#allocation2 + $0x30] sm:$0xf] }
 0x22e   : > { %8072 = vmatprep.subr.bf16.mxu0 %v8598_v53  ;;  %v2834_v63 = vrot.slane %v11002_v30, 5  ;;  %v2707_v30 = vld [vmem:[#allocation2 + $0x9c] sm:$0xe]  ;;  %v5296_v36 = vshrl.u32 %v5205_v27, 16 }
 0x22f   : > { %7823 = vmatmul.mubr.bf16.gmra.mrb[68].mxu1 %v7081_v32  ;;  %v2833_v32 = vrot.slane %v2831_v56, 4  ;;  %v5287_v9 = vrot.slane %v5285_v24, 4  ;;  %v7103_v24 = vrot.slane %v2707_v30, 9  ;;  %v8600_v30 = vld [vmem:[#allocation2 + $0x78] sm:$0xff]  }
 0x230   : > { %7842 = vmatprep.mubr.bf16.mxu1 %v7106_v59  ;;  %v5202_v59 = vld [vmem:[#allocation2 + $0x24] sm:$0xf] }
 0x231   : > { %8073 = vmatpush3.bf16.msra.mxu0 %v8598_v53  ;;  %v10038_v53 = vsel %vm9592_vm15, %v7101_v13, %v2824_v25  ;;  %v10048_v17 = vsel %vm9592_vm15, %v2833_v32, %v2834_v63  ;;  %v2840_v25 = vrot.slane %v2838_v33, 4  ;;  %v11003_v13 = vld [vmem:[#allocation5_spill] sm:$0xff]  ;;  %v5272_v10 = vshrl.u32 %v5202_v59, 16  ;;  %v8607_v63 = vld [vmem:[%s10954_s4 + $0x1f0] sm:$0xff]  }
 0x232   : > { %8074 = vmatprep.subr.bf16.mxu0 %v8601_v23  ;;  %v2841_v56 = vrot.slane %v11003_v13, 5  ;;  %v5275_v60 = vshll.u32 %v5202_v59, 16  ;;  %v2847_v32 = vrot.slane %v2845_v26, 4  ;;  %v5299_v59 = vshll.u32 %v5205_v27, 16  ;;  %v8682_v27 = vld [vmem:[#allocation2 + $0x2c] sm:$0x1] }
 0x233   : > { %v5288_v14 = vor.u32 %v5287_v9, %v10055_v0  ;;  %v5208_v9 = vld [vmem:[#allocation2 + $0x3c] sm:$0xf] }
 0x234   : > { %8043 = vmatmul.mubr.bf16.gmra.mrb[8].mxu0 %v8596_v4  ;;  %v5269_v4 = vrot.slane %v5267_v19, 5  ;;  %v10069_v47 = vsel %vm9592_vm15, %v2840_v25, %v2841_v56  ;;  %v5277_v31 = vrot.slane %v5275_v60, 5  ;;  %v8599_v19 = vld [vmem:[#allocation2 + $0x6c] sm:$0xff]   ;;  %v5298_v60 = vrot.slane %v5296_v36, 4 }
 0x235   : > { %8046 = vmatprep.mubr.bf16.mxu0 %v8597_v45  ;;  %8075 = vmatpush3.bf16.msra.mxu0 %v8601_v23  ;;  %v5305_v23 = vshll.u32 %v5206_v11, 16  ;;  %v11004_v45 = vld [vmem:[#allocation7_spill] sm:$0xff]  ;;  %v5260_v56 = vsel %vm9316_vm12, %v5255_v41, %v9996_v35  ;;  %v2852_v41 = vrot.slane %v11000_v38, 5 }
 0x236   : > { %8076 = vmatprep.subr.bf16.mxu0 %v8604_v15  ;;  %v2848_v13 = vrot.slane %v11004_v45, 5  ;;  %v5270_v11 = vsel %vm9316_vm12, %v5265_v2, %v5269_v4  ;;  %v5311_v2 = vrot.slane %v5309_v44, 4  ;;  %v5211_v4 = vld [vmem:[#allocation2 + $0x48] sm:$0xf]  ;;  %v2709_v45 = vld [vmem:[#allocation2 + $0xb4] sm:$0xe] }
 0x237   : > { %7843 = vmatmul.mubr.bf16.vlgmr.msra.gmra.mrb[40].mxu1 %v7107_v51  ;;  %v5274_v51 = vrot.slane %v5272_v10, 4  ;;  %v10083_v10 = vrot.slane %v5305_v23, 5  ;;  %v10107_v23 = vld [vmem:[#allocation2 + $0x40] sm:$0xf]  ;;  %v10111_v6 = vcombine.low %v5260_v56, %v5270_v11  ;;  %v10130_v11 = vrot.slane %v5315_v28, 5 }
 0x238   : > { %7846 = vmatprep.mubr.bf16.mxu1 %v7108_v22  ;;  %v10075_v49 = vsel %vm9592_vm15, %v2847_v32, %v2848_v13  ;;  %v5291_v22 = vshll.u32 %v5204_v7, 16  ;;  %v10094_v7 = vsel %vm9592_vm15, %v7103_v24, %v2838_v33  ;;  %v10100_v32 = vsel %vm9592_vm15, %v7104_v34, %v2845_v26  ;;  %v10109_v33 = vld [vmem:[#allocation2 + $0x4c] sm:$0xf]  ;;  %v10140_v28 = vld [vmem:[#allocation2 + $0x58] sm:$0xf] }
 0x239   : > { %8077 = vmatpush3.bf16.msra.mxu0 %v8604_v15  ;;  %v5301_v15 = vrot.slane %v5299_v59, 5  ;;  %v5278_v59 = vor.u32 %v5277_v31, %v5274_v51  ;;  %v5289_v26 = vrot.slane %v5288_v14, 4  ;;  %v10120_v31 = vld [vmem:[%s10954_s4 + $0x200] sm:$0xff]   ;;  %v5320_v13 = vshrl.u32 %v5208_v9, 16  ;;  %11008 = vst [vmem:[#allocation9_spill] sm:$0xff] %v10140_v28 }
 0x23a   : > { %8078 = vmatprep.subr.bf16.mxu0 %v8607_v63  ;;  %v5293_v44 = vrot.slane %v5291_v22, 5  ;;  %v5323_v34 = vshll.u32 %v5208_v9, 16  ;;  %v5329_v38 = vshll.u32 %v10107_v23, 16  ;;  %v5333_v40 = vshrl.u32 %v10107_v23, 16 }
 0x23b   : > { %v5302_v24 = vor.u32 %v5301_v15, %v5298_v60  ;;  %v5353_v18 = vshll.u32 %v10109_v33, 16  ;;  %v5279_v51 = vrot.slane %v5278_v59, 4  ;;  %v5344_v14 = vshrl.u32 %v5211_v4, 16 }
 0x23c   : > { %8047 = vmatmul.mubr.bf16.gmra.mrb[12].mxu0 %v8599_v19  ;;  %v5347_v22 = vshll.u32 %v5211_v4, 16  ;;  %v8602_v19 = vld [vmem:[#allocation2 + $0x84] sm:$0xff]   ;;  %v5294_v60 = vsel %vm9316_vm12, %v5289_v26, %v5293_v44  ;;  %v7105_v50 = vrot.slane %v2709_v45, 9  ;;  %v2854_v12 = vrot.slane %v2852_v41, 4  ;;  %v8603_v4 = vld [vmem:[#allocation2 + $0x90] sm:$0xff]  }
 0x23d   : > { %8050 = vmatprep.mubr.bf16.mxu0 %v8600_v30  ;;  %8079 = vmatpush3.bf16.msra.mxu0 %v8607_v63  ;;  %v5312_v63 = vor.u32 %v5311_v2, %v10083_v10  ;;  %v5214_v2 = vld [vmem:[#allocation2 + $0x54] sm:$0xf]  ;;  %v10136_v30 = vrot.slane %v5302_v24, 4  ;;  %v5322_v9 = vrot.slane %v5320_v13, 4  ;;  %v5325_v59 = vrot.slane %v5323_v34, 5 }
 0x23e   : > { %8080 = vmatprep.subr.bf16.mxu0 %v8610_v55  ;;  %v5335_v35 = vrot.slane %v5333_v40, 4  ;;  %v10144_v26 = vrot.slane %v5353_v18, 5  ;;  %v10146_v45 = vld [vmem:[#allocation2 + $0x44] sm:$0x1]  ;;  %v5349_v36 = vrot.slane %v5347_v22, 5  ;;  %v5368_v24 = vshrl.u32 %v5214_v2, 16 }
 0x23f   : > { %7847 = vmatmul.mubr.bf16.gmra.mrb[44].mxu1 %v7109_v1  ;;  %v5357_v1 = vshrl.u32 %v10109_v33, 16  ;;  %v10138_v56 = vrot.slane %v5312_v63, 4  ;;  %v5371_v25 = vshll.u32 %v5214_v2, 16  ;;  %v5284_v63 = vsel %vm9316_vm12, %v5279_v51, %v10055_v0  ;;  %v10155_v34 = vld [vmem:[#allocation2 + $0x50] sm:$0x1] }
 0x240   : > { %7850 = vmatprep.mubr.bf16.mxu1 %v7110_v62  ;;  %v11007_v62 = vld [vmem:[#allocation10_spill] sm:$0xff]  ;;  %v10153_v13 = vsel %vm9592_vm15, %v7105_v50, %v2852_v41  ;;  %v5381_v40 = vshrl.u32 %v10140_v28, 16  ;;  %v10162_v18 = vcombine.low %v5284_v63, %v5294_v60  ;;  %v5308_v0 = vsel %vm9316_vm12, %v10136_v30, %v10083_v10  ;;  %v5217_v51 = vld [vmem:[#allocation2 + $0x60] sm:$0xf]  ;;  %v5220_v22 = vld [vmem:[#allocation2 + $0x6c] sm:$0xf] }
 0x241   : > { %8081 = vmatpush3.bf16.msra.mxu0 %v8610_v55  ;;  %v2855_v15 = vrot.slane %v11007_v62, 5  ;;  %v10142_v55 = vrot.slane %v5329_v38, 5  ;;  %v5359_v44 = vrot.slane %v5357_v1, 4  ;;  %v5346_v62 = vrot.slane %v5344_v14, 4  ;;  %v10182_v14 = vld [vmem:[#allocation2 + $0x64] sm:$0xf] }
 0x242   : > { %8114 = vmatprep.subr.bf16.mxu0 %v10120_v31  ;;  %v5377_v38 = vshll.u32 %v10140_v28, 16  ;;  %v5318_v41 = vsel %vm9316_vm12, %v10138_v56, %v10130_v11  ;;  %v5326_v39 = vor.u32 %v5325_v59, %v5322_v9  ;;  %11009 = vst [vmem:[#allocation8_spill] sm:$0xff] %v10182_v14  ;;  %v5370_v60 = vrot.slane %v5368_v24, 4  ;;  %v8606_v59 = vld [vmem:[#allocation2 + $0xa8] sm:$0xff]  }
 0x243   : > { %v10174_v1 = vsel %vm9592_vm15, %v2854_v12, %v2855_v15  ;;  %v5336_v43 = vor.u32 %v5335_v35, %v10142_v55  ;;  %v5360_v10 = vor.u32 %v5359_v44, %v10144_v26  ;;  %v5350_v11 = vor.u32 %v5349_v36, %v5346_v62  ;;  %v10185_v12 = vld [vmem:[#allocation2 + $0x5c] sm:$0x1] }
 0x244   : > { %8051 = vmatmul.mubr.bf16.gmra.mrb[16].mxu0 %v8602_v19  ;;  %v5363_v19 = vshll.u32 %v10155_v34, 16  ;;  %v5373_v50 = vrot.slane %v5371_v25, 5  ;;  %v10187_v15 = vrot.slane %v5377_v38, 5  ;;  %v5383_v5 = vrot.slane %v5381_v40, 4  ;;  %v8605_v35 = vld [vmem:[#allocation2 + $0x9c] sm:$0xff]  }
 0x245   : > { %8054 = vmatprep.mubr.bf16.mxu0 %v8603_v4  ;;  %v5392_v42 = vshrl.u32 %v5217_v51, 16  ;;  %v5401_v2 = vshll.u32 %v10182_v14, 16  ;;  %v5405_v30 = vshrl.u32 %v10182_v14, 16  ;;  %v5416_v56 = vshrl.u32 %v5220_v22, 16  ;;  %v10194_v40 = vld [vmem:[#allocation2 + $0x70] sm:$0xf] }
 0x246   : > { %v5419_v9 = vshll.u32 %v5220_v22, 16  ;;  %v5327_v4 = vrot.slane %v5326_v39, 4  ;;  %v5337_v25 = vrot.slane %v5336_v43, 4  ;;  %v5361_v44 = vrot.slane %v5360_v10, 4  ;;  %v10197_v22 = vld [vmem:[#allocation2 + $0x68] sm:$0x1] }
 0x247   : > { %7851 = vmatmul.mubr.bf16.gmra.mrb[48].mxu1 %v7111_v46  ;;  %v5339_v46 = vshll.u32 %v10146_v45, 16  ;;  %v5365_v24 = vrot.slane %v5363_v19, 5  ;;  %v5374_v63 = vor.u32 %v5373_v50, %v5370_v60  ;;  %v5387_v38 = vshll.u32 %v10185_v12, 16 }
 0x248   : > { %7854 = vmatprep.mubr.bf16.mxu1 %v7112_v20  ;;  %v5395_v20 = vshll.u32 %v5217_v51, 16  ;;  %v5351_v51 = vrot.slane %v5350_v11, 4  ;;  %v5384_v8 = vor.u32 %v5383_v5, %v10187_v15  ;;  %v5394_v14 = vrot.slane %v5392_v42, 4 }
 0x249   : > { %v5341_v62 = vrot.slane %v5339_v46, 5  ;;  %v11010_v39 = vcombine.low %v9972_v58, %v9963_v3  ;;  %v10202_v43 = vrot.slane %v5401_v2, 5  ;;  %v5407_v46 = vrot.slane %v5405_v30, 4 }
 0x24a   : > { %v5397_v28 = vrot.slane %v5395_v20, 5  ;;  %v5418_v10 = vrot.slane %v5416_v56, 4  ;;  %v5421_v19 = vrot.slane %v5419_v9, 5  ;;  %v11011_v60 = vcombine.low %v9981_v21, %v9985_v29  ;;  %v10219_v29 = vld [vmem:[#allocation2 + $0x7c] sm:$0xf] }
 0x24b   : > { %v5342_v11 = vsel %vm9316_vm12, %v5337_v25, %v5341_v62  ;;  %v5366_v50 = vsel %vm9316_vm12, %v5361_v44, %v5365_v24  ;;  %v5425_v5 = vshll.u32 %v10194_v40, 16  ;;  %v5429_v3 = vshrl.u32 %v10194_v40, 16  ;;  %v5223_v62 = vld [vmem:[#allocation2 + $0x78] sm:$0xf] }
 0x24c   : > { %8055 = vmatmul.mubr.bf16.gmra.mrb[20].mxu0 %v8605_v35  ;;  %v10213_v58 = vcombine.low %v5308_v0, %v5318_v41  ;;  %v5332_v42 = vsel %vm9316_vm12, %v5327_v4, %v10142_v55  ;;  %v5375_v20 = vrot.slane %v5374_v63, 4  ;;  %v5411_v21 = vshll.u32 %v10197_v22, 16  ;;  %v8609_v35 = vld [vmem:[#allocation2 + $0xc0] sm:$0xff]   ;;  %v8608_v0 = vld [vmem:[#allocation2 + $0xb4] sm:$0xff]  }
 0x24d   : > { %8058 = vmatprep.mubr.bf16.mxu0 %v8606_v59  ;;  %v5356_v2 = vsel %vm9316_vm12, %v5351_v51, %v10144_v26  ;;  %v5385_v30 = vrot.slane %v5384_v8, 4  ;;  %v5389_v56 = vrot.slane %v5387_v38, 5  ;;  %v5398_v9 = vor.u32 %v5397_v28, %v5394_v14  ;;  %v10224_v59 = vld [vmem:[#allocation2 + $0x88] sm:$0xf]  ;;  %v10231_v4 = vld [vmem:[#allocation2 + $0x74] sm:$0x1] }
 0x24e   : > { %v10226_v41 = vcombine.low %v5332_v42, %v5342_v11  ;;  %v10228_v25 = vcombine.low %v5356_v2, %v5366_v50  ;;  %v5408_v55 = vor.u32 %v5407_v46, %v10202_v43  ;;  %v5422_v44 = vor.u32 %v5421_v19, %v5418_v10  ;;  %v5226_v26 = vld [vmem:[#allocation2 + $0x84] sm:$0xf]  ;;  %v5229_v11 = vld [vmem:[#allocation2 + $0x90] sm:$0xf] }
 0x24f   : > { %7855 = vmatmul.mubr.bf16.gmra.mrb[52].mxu1 %v11010_v39  ;;  %v10233_v24 = vrot.slane %v5425_v5, 5  ;;  %v5431_v63 = vrot.slane %v5429_v3, 4  ;;  %v5449_v8 = vshll.u32 %v10219_v29, 16  ;;  %v5453_v28 = vshrl.u32 %v10219_v29, 16 }
 0x250   : > { %7858 = vmatprep.mubr.bf16.mxu1 %v11011_v60  ;;  %v5380_v14 = vsel %vm9316_vm12, %v5375_v20, %v10187_v15  ;;  %v5413_v38 = vrot.slane %v5411_v21, 5  ;;  %v5473_v51 = vshll.u32 %v10224_v59, 16  ;;  %v5477_v39 = vshrl.u32 %v10224_v59, 16  ;;  %v10248_v20 = vld [vmem:[#allocation2 + $0x94] sm:$0xf] }
 0x251   : > { %v5390_v46 = vsel %vm9316_vm12, %v5385_v30, %v5389_v56  ;;  %v5399_v10 = vrot.slane %v5398_v9, 4  ;;  %v5440_v19 = vshrl.u32 %v5223_v62, 16  ;;  %v5443_v60 = vshll.u32 %v5223_v62, 16  ;;  %v10256_v30 = vld [vmem:[#allocation2 + $0x80] sm:$0x1] }
 0x252   : > { %v11012_v50 = vcombine.low %v9990_v52, %v10006_v54  ;;  %v5409_v5 = vrot.slane %v5408_v55, 4  ;;  %v5435_v15 = vshll.u32 %v10231_v4, 16  ;;  %v5464_v3 = vshrl.u32 %v5226_v26, 16 }
 0x253   : > { %v5467_v42 = vshll.u32 %v5226_v26, 16  ;;  %v11013_v21 = vcombine.low %v10010_v37, %v10017_v57  ;;  %v5432_v2 = vor.u32 %v5431_v63, %v10233_v24  ;;  %v10258_v56 = vrot.slane %v5449_v8, 5  ;;  %v8611_v57 = vld [vmem:[#allocation2 + $0xcc] sm:$0xff]  }
 0x254   : > { %8059 = vmatmul.mubr.bf16.gmra.mrb[24].mxu0 %v8608_v0  ;;  %v5455_v52 = vrot.slane %v5453_v28, 4  ;;  %v10260_v54 = vrot.slane %v5473_v51, 5  ;;  %v5479_v9 = vrot.slane %v5477_v39, 4  ;;  %v5488_v0 = vshrl.u32 %v5229_v11, 16 }
 0x255   : > { %8062 = vmatprep.mubr.bf16.mxu0 %v8609_v35  ;;  %v10253_v35 = vrot.slane %v5422_v44, 4  ;;  %v5491_v55 = vshll.u32 %v5229_v11, 16  ;;  %v5442_v62 = vrot.slane %v5440_v19, 4  ;;  %v5445_v26 = vrot.slane %v5443_v60, 5  ;;  %v10275_v60 = vld [vmem:[#allocation2 + $0x8c] sm:$0x1] }
 0x256   : > { %v5501_v37 = vshrl.u32 %v10248_v20, 16  ;;  %v5414_v44 = vsel %vm9316_vm12, %v5409_v5, %v5413_v38  ;;  %v5459_v63 = vshll.u32 %v10256_v30, 16  ;;  %v5466_v8 = vrot.slane %v5464_v3, 4 }
 0x257   : > { %7859 = vmatmul.mubr.bf16.gmra.mrb[56].mxu1 %v11012_v50  ;;  %v5497_v50 = vshll.u32 %v10248_v20, 16  ;;  %v10267_v28 = vcombine.low %v5380_v14, %v5390_v46  ;;  %v5404_v51 = vsel %vm9316_vm12, %v5399_v10, %v10202_v43  ;;  %v10272_v39 = vrot.slane %v5432_v2, 4  ;;  %v10287_v2 = vld [vmem:[#allocation2 + $0xac] sm:$0xf] }
 0x258   : > { %7862 = vmatprep.mubr.bf16.mxu1 %v11013_v21  ;;  %v5469_v21 = vrot.slane %v5467_v42, 5  ;;  %v5456_v19 = vor.u32 %v5455_v52, %v10258_v56  ;;  %v10277_v11 = vrot.slane %v5435_v15, 5  ;;  %v5480_v38 = vor.u32 %v5479_v9, %v10260_v54  ;;  %v10280_v42 = vld [vmem:[#allocation2 + $0xa0] sm:$0xf] }
 0x259   : > { %v5490_v5 = vrot.slane %v5488_v0, 4  ;;  %v5493_v3 = vrot.slane %v5491_v55, 5  ;;  %v10283_v14 = vcombine.low %v5404_v51, %v5414_v44  ;;  %v5446_v43 = vor.u32 %v5445_v26, %v5442_v62  ;;  %v5232_v55 = vld [vmem:[#allocation2 + $0x9c] sm:$0xf] }
 0x25a   : > { %v10285_v46 = vrot.slane %v5497_v50, 5  ;;  %v5503_v10 = vrot.slane %v5501_v37, 4  ;;  %v11014_v15 = vcombine.low %v10038_v53, %v10021_v16  ;;  %v5428_v52 = vsel %vm9316_vm12, %v10253_v35, %v10233_v24  ;;  %v5235_v24 = vld [vmem:[#allocation2 + $0xa8] sm:$0xf]  ;;  %v10306_v37 = vld [vmem:[#allocation2 + $0x98] sm:$0x1] }
 0x25b   : > { %v5461_v9 = vrot.slane %v5459_v63, 5  ;;  %v5470_v0 = vor.u32 %v5469_v21, %v5466_v8  ;;  %v11015_v62 = vcombine.low %v10042_v61, %v10048_v17  ;;  %v5438_v16 = vsel %vm9316_vm12, %v10272_v39, %v10277_v11  ;;  %v10311_v8 = vld [vmem:[#allocation2 + $0xa4] sm:$0x1]  ;;  %v8613_v39 = vld [vmem:[%s10954_s4 + $0x208] sm:$0xff]  }
 0x25c   : > { %8063 = vmatmul.mubr.bf16.gmra.mrb[28].mxu0 %v8611_v57  ;;  %v5457_v53 = vrot.slane %v5456_v19, 4  ;;  %v5521_v26 = vshll.u32 %v10280_v42, 16  ;;  %v5525_v50 = vshrl.u32 %v10280_v42, 16  ;;  %v5481_v35 = vrot.slane %v5480_v38, 4 }
 0x25d   : > { %8082 = vmatprep.mubr.bf16.mxu0 %v10111_v6  ;;  %v5483_v6 = vshll.u32 %v10275_v60, 16  ;;  %v5494_v57 = vor.u32 %v5493_v3, %v5490_v5  ;;  %v5545_v44 = vshll.u32 %v10287_v2, 16  ;;  %v5549_v61 = vshrl.u32 %v10287_v2, 16 }
 0x25e   : > { %v5447_v17 = vrot.slane %v5446_v43, 4  ;;  %v5504_v63 = vor.u32 %v5503_v10, %v10285_v46  ;;  %v5512_v21 = vshrl.u32 %v5232_v55, 16  ;;  %v5515_v51 = vshll.u32 %v5232_v55, 16 }
 0x25f   : > { %7863 = vmatmul.mubr.bf16.gmra.mrb[60].mxu1 %v11014_v15  ;;  %v5471_v19 = vrot.slane %v5470_v0, 4  ;;  %v5485_v11 = vrot.slane %v5483_v6, 5  ;;  %v5536_v38 = vshrl.u32 %v5235_v24, 16  ;;  %v5539_v15 = vshll.u32 %v5235_v24, 16  ;;  %v10328_v6 = vld [vmem:[#allocation2 + $0xb8] sm:$0xf] }
 0x260   : > { %7866 = vmatprep.mubr.bf16.mxu1 %v11015_v62  ;;  %v5462_v5 = vsel %vm9316_vm12, %v5457_v53, %v5461_v9  ;;  %v5507_v3 = vshll.u32 %v10306_v37, 16  ;;  %v10319_v43 = vrot.slane %v5521_v26, 5  ;;  %v5527_v10 = vrot.slane %v5525_v50, 4  ;;  %v8614_v24 = vld [vmem:[%s10954_s4 + $0x210] sm:$0xff]  }
 0x261   : > { %v5486_v55 = vsel %vm9316_vm12, %v5481_v35, %v5485_v11  ;;  %v10324_v62 = vrot.slane %v5494_v57, 4  ;;  %v10326_v36 = vrot.slane %v5545_v44, 5  ;;  %v5551_v0 = vrot.slane %v5549_v61, 4  ;;  %v10351_v35 = vld [vmem:[#allocation2 + $0xb0] sm:$0x1] }
 0x262   : > { %v10332_v9 = vrot.slane %v5504_v63, 4  ;;  %v10334_v53 = vrot.slane %v5512_v21, 4  ;;  %v10336_v26 = vrot.slane %v5515_v51, 5  ;;  %v11016_v50 = vcombine.low %v10094_v7, %v10069_v47  ;;  %v10363_v63 = vld [vmem:[#allocation2 + $0xb4] sm:$0xf] }
 0x263   : > { %v10353_v57 = vrot.slane %v5536_v38, 4  ;;  %v10355_v44 = vrot.slane %v5539_v15, 5  ;;  %v11017_v47 = vcombine.low %v10100_v32, %v10075_v49  ;;  %v10360_v7 = vrot.slane %v5507_v3, 5  ;;  %v10374_v49 = vld [vmem:[#allocation2 + $0xc0] sm:$0xf] }
 0x264   : > { %8083 = vmatmul.mubr.bf16.vlgmr.msra.gmra.mrb[0].mxu0 %v10162_v18  ;;  %v5531_v18 = vshll.u32 %v10311_v8, 16  ;;  %v5528_v61 = vor.u32 %v5527_v10, %v10319_v43  ;;  %v10388_v38 = vld [vmem:[#allocation2 + $0xc4] sm:$0xf]  ;;  %v5955_v15 = vld [vmem:[#allocation2 + $0x3c] sm:$0xe]  ;;  %v6046_v10 = vrot.slane %v10109_v33, 5 }
 0x265   : > { %8115 = vmatpush3.bf16.msra.mxu0 %v10120_v31  ;;  %8086 = vmatprep.mubr.bf16.mxu0 %v10213_v58  ;;  %v5452_v31 = vsel %vm9316_vm12, %v5447_v17, %v10258_v56  ;;  %v5476_v58 = vsel %vm9316_vm12, %v5471_v19, %v10260_v54  ;;  %v5569_v56 = vshll.u32 %v10328_v6, 16  ;;  %v5573_v54 = vshrl.u32 %v10328_v6, 16  ;;  %v11020_v33 = vld [vmem:[#allocation8_spill] sm:$0xff] }
 0x266   : > { %8116 = vmatprep.subr.bf16.mxu0 %v8613_v39  ;;  %v10367_v17 = vcombine.low %v5428_v52, %v5438_v16  ;;  %v10369_v21 = vcombine.low %v5452_v31, %v5462_v5  ;;  %v10371_v51 = vcombine.low %v5476_v58, %v5486_v55  ;;  %v5552_v19 = vor.u32 %v5551_v0, %v10326_v36  ;;  %v5956_v0 = vld [vmem:[#allocation2 + $0x48] sm:$0xe]  ;;  %v5957_v16 = vld [vmem:[#allocation2 + $0x54] sm:$0xe]  ;;  %v5959_v5 = vld [vmem:[#allocation2 + $0x6c] sm:$0xe] }
 0x267   : > { %7867 = vmatmul.mubr.bf16.gmra.mrb[64].mxu1 %v11016_v50  ;;  %v10386_v11 = vrot.slane %v5531_v18, 5  ;;  %v10398_v18 = vrot.slane %v5528_v61, 4  ;;  %v10400_v50 = vrot.slane %v5569_v56, 5  ;;  %v10402_v31 = vrot.slane %v5573_v54, 4  ;;  %v5961_v61 = vld [vmem:[#allocation2 + $0x84] sm:$0xe] }
 0x268   : > { %7870 = vmatprep.mubr.bf16.mxu1 %v11017_v47  ;;  %v6039_v58 = vrot.slane %v10107_v23, 5  ;;  %v10406_v47 = vrot.slane %v5552_v19, 4  ;;  %v7269_v3 = vrot.slane %v5955_v15, 9  ;;  %v6042_v54 = vrot.slane %v10146_v45, 5  ;;  %v5958_v45 = vld [vmem:[#allocation2 + $0x60] sm:$0xe] }
 0x269   : > { %8117 = vmatpush3.bf16.msra.mxu0 %v8613_v39  ;;  %v8615_v39 = vld [vmem:[%s10954_s4 + $0x218] sm:$0xff]   ;;  %v7270_v55 = vrot.slane %v5956_v0, 9  ;;  %v11018_v23 = vcombine.low %v10153_v13, %v10174_v1  ;;  %v6049_v19 = vrot.slane %v10155_v34, 5  ;;  %v7271_v1 = vrot.slane %v5957_v16, 9  ;;  %v11019_v0 = vld [vmem:[#allocation9_spill] sm:$0xff] }
 0x26a   : > { %8118 = vmatprep.subr.bf16.mxu0 %v8614_v24  ;;  %v6041_v56 = vrot.slane %v6039_v58, 4  ;;  %v6056_v34 = vrot.slane %v10185_v12, 5  ;;  %v7272_v16 = vrot.slane %v5958_v45, 9  ;;  %v6070_v45 = vrot.slane %v10231_v4, 5 }
 0x26b   : > { %v10431_v13 = vsel %vm9592_vm15, %v7270_v55, %v6046_v10 }
 0x26c   : > { %8087 = vmatmul.mubr.bf16.gmra.mrb[4].mxu0 %v10226_v41  ;;  %v8616_v41 = vld [vmem:[%s10954_s4 + $0x220] sm:$0xff]   ;;  %v10427_v15 = vsel %vm9592_vm15, %v6041_v56, %v6042_v54  ;;  %v6060_v56 = vrot.slane %v11020_v33, 5  ;;  %v6063_v54 = vrot.slane %v10197_v22, 5  ;;  %v7273_v33 = vrot.slane %v5959_v5, 9 }
 0x26d   : > { %8090 = vmatprep.mubr.bf16.mxu0 %v10228_v25  ;;  %8119 = vmatpush3.bf16.msra.mxu0 %v8614_v24  ;;  %v10422_v25 = vsel %vm9592_vm15, %v7269_v3, %v6039_v58  ;;  %v6048_v24 = vrot.slane %v6046_v10, 4  ;;  %v8617_v3 = vld [vmem:[%s10954_s4 + $0x228] sm:$0xff]   ;;  %v6074_v10 = vrot.slane %v10219_v29, 5 }
 0x26e   : > { %8120 = vmatprep.subr.bf16.mxu0 %v8615_v39  ;;  %v6062_v12 = vrot.slane %v6060_v56, 4  ;;  %v10459_v22 = vsel %vm9592_vm15, %v7272_v16, %v6060_v56  ;;  %v5962_v56 = vld [vmem:[#allocation2 + $0x90] sm:$0xe]  ;;  %v7275_v16 = vrot.slane %v5961_v61, 9  ;;  %v6091_v61 = vrot.slane %v10306_v37, 5 }
 0x26f   : > { %7871 = vmatmul.mubr.bf16.gmra.mrb[68].mxu1 %v11018_v23  ;;  %v6053_v23 = vrot.slane %v11019_v0, 5  ;;  %v10438_v58 = vsel %vm9592_vm15, %v6048_v24, %v6049_v19  ;;  %v5960_v0 = vld [vmem:[#allocation2 + $0x78] sm:$0xe] }
 0x271   : > { %8121 = vmatpush3.bf16.msra.mxu0 %v8615_v39  ;;  %v6055_v55 = vrot.slane %v6053_v23, 4  ;;  %v10450_v24 = vsel %vm9592_vm15, %v7271_v1, %v6053_v23  ;;  %v6067_v39 = vrot.slane %v10194_v40, 5  ;;  %v10468_v40 = vsel %vm9592_vm15, %v6062_v12, %v6063_v54 }
 0x272   : > { %8122 = vmatprep.subr.bf16.mxu0 %v8616_v41  ;;  %v7274_v23 = vrot.slane %v5960_v0, 9  ;;  %v6081_v54 = vrot.slane %v10224_v59, 5  ;;  %v5963_v0 = vld [vmem:[#allocation2 + $0x9c] sm:$0xe]  ;;  %v5964_v59 = vld [vmem:[#allocation2 + $0xa8] sm:$0xe] }
 0x273   : > { %v10455_v19 = vsel %vm9592_vm15, %v6055_v55, %v6056_v34  ;;  %v6069_v1 = vrot.slane %v6067_v39, 4  ;;  %v10475_v29 = vsel %vm9592_vm15, %v7273_v33, %v6067_v39  ;;  %v6077_v34 = vrot.slane %v10256_v30, 5  ;;  %v8618_v55 = vld [vmem:[%s10954_s4 + $0x230] sm:$0xff]  }
 0x274   : > { %8091 = vmatmul.mubr.bf16.gmra.mrb[8].mxu0 %v10267_v28  ;;  %v6076_v28 = vrot.slane %v6074_v10, 4  ;;  %v6084_v33 = vrot.slane %v10275_v60, 5  ;;  %v6088_v39 = vrot.slane %v10248_v20, 5  ;;  %v8619_v20 = vld [vmem:[%s10954_s4 + $0x238] sm:$0xff]  }
 0x275   : > { %8094 = vmatprep.mubr.bf16.mxu0 %v10283_v14  ;;  %8123 = vmatpush3.bf16.msra.mxu0 %v8616_v41  ;;  %v10483_v14 = vsel %vm9592_vm15, %v6069_v1, %v6070_v45  ;;  %v10487_v41 = vsel %vm9592_vm15, %v7274_v23, %v6074_v10  ;;  %v6083_v10 = vrot.slane %v6081_v54, 4  ;;  %v7276_v1 = vrot.slane %v5962_v56, 9  ;;  %v5966_v45 = vld [vmem:[#allocation2 + $0xc0] sm:$0xe] }
 0x276   : > { %8124 = vmatprep.subr.bf16.mxu0 %v8617_v3  ;;  %v10494_v12 = vsel %vm9592_vm15, %v6076_v28, %v6077_v34  ;;  %v10503_v23 = vsel %vm9592_vm15, %v7275_v16, %v6081_v54  ;;  %v6090_v30 = vrot.slane %v6088_v39, 4  ;;  %v7277_v28 = vrot.slane %v5963_v0, 9  ;;  %v5965_v16 = vld [vmem:[#allocation2 + $0xb4] sm:$0xe]  ;;  %v10519_v54 = vld [vmem:[#allocation2 + $0xbc] sm:$0x1] }
 0x277   : > { %v6095_v34 = vrot.slane %v10280_v42, 5  ;;  %v10511_v60 = vsel %vm9592_vm15, %v6083_v10, %v6084_v33  ;;  %v10515_v37 = vsel %vm9592_vm15, %v7276_v1, %v6088_v39  ;;  %v6102_v56 = vrot.slane %v10287_v2, 5  ;;  %v5967_v42 = vld [vmem:[#allocation2 + $0xcc] sm:$0xe] }
 0x278   : > { %v10525_v0 = vsel %vm9592_vm15, %v6090_v30, %v6091_v61  ;;  %v7278_v10 = vrot.slane %v5964_v59, 9  ;;  %v6105_v1 = vrot.slane %v10351_v35, 5  ;;  %v10536_v30 = vld [vmem:[#allocation2 + $0xc8] sm:$0x1]  ;;  %v10538_v61 = vld [vmem:[#allocation2 + $0xd4] sm:$0x1]  ;;  %v11036_v48 = vcombine.low %v10475_v29, %v10483_v14 }
 0x279   : > { %8125 = vmatpush3.bf16.msra.mxu0 %v8617_v3  ;;  %v6098_v3 = vrot.slane %v10311_v8, 5  ;;  %v6097_v33 = vrot.slane %v6095_v34, 4  ;;  %v10532_v2 = vsel %vm9592_vm15, %v7277_v28, %v6095_v34  ;;  %v6104_v8 = vrot.slane %v6102_v56, 4  ;;  %v8624_v14 = vld [vmem:[%s10955_s5 + $0x20] sm:$0xff]  }
 0x27a   : > { %8126 = vmatprep.subr.bf16.mxu0 %v8618_v55  ;;  %v10546_v59 = vsel %vm9592_vm15, %v7278_v10, %v6102_v56  ;;  %v7279_v28 = vrot.slane %v5965_v16, 9  ;;  %v6109_v34 = vrot.slane %v10328_v6, 5  ;;  %v6112_v39 = vrot.slane %v10519_v54, 5 }
 0x27b   : > { %v7280_v16 = vrot.slane %v5966_v45, 9  ;;  %v7281_v4 = vrot.slane %v5967_v42, 9  ;;  %v6119_v5 = vrot.slane %v10536_v30, 5 }
 0x27c   : > { %8095 = vmatmul.mubr.bf16.gmra.mrb[12].mxu0 %v10367_v17  ;;  %v10542_v17 = vsel %vm9592_vm15, %v6097_v33, %v6098_v3  ;;  %v6116_v3 = vrot.slane %v10388_v38, 5  ;;  %v5245_v33 = vld [vmem:[#allocation2 + $0xd0] sm:$0xf]  ;;  %v6111_v10 = vrot.slane %v6109_v34, 4 }
 0x27d   : > { %8098 = vmatprep.mubr.bf16.mxu0 %v10369_v21  ;;  %8127 = vmatpush3.bf16.msra.mxu0 %v8618_v55  ;;  %v10553_v55 = vsel %vm9592_vm15, %v6104_v8, %v6105_v1  ;;  %v6123_v32 = vrot.slane %v5245_v33, 5  ;;  %v6126_v21 = vrot.slane %v10538_v61, 5  ;;  %v5587_v8 = vshll.u32 %v10374_v49, 16 }
 0x27e   : > { %8128 = vmatprep.subr.bf16.mxu0 %v8619_v20  ;;  %v6118_v6 = vrot.slane %v6116_v3, 4  ;;  %v10564_v1 = vsel %vm9592_vm15, %v7279_v28, %v6109_v34  ;;  %v10568_v52 = vsel %vm9592_vm15, %v6111_v10, %v6112_v39  ;;  %v10572_v45 = vsel %vm9592_vm15, %v7280_v16, %v6116_v3 }
 0x27f   : > { %v7295_v42 = vcombine.low %v10564_v1, %v10568_v52  ;;  %v6125_v28 = vrot.slane %v6123_v32, 4  ;;  %v11021_v39 = vsel %vm9316_vm12, %v10332_v9, %v10360_v7  ;;  %v11022_v34 = vsel %vm9316_vm12, %v10324_v62, %v10285_v46 }
 0x280   : > { %v10578_v56 = vsel %vm9592_vm15, %v6118_v6, %v6119_v5  ;;  %v7252_v3 = vcombine.low %v11022_v34, %v11021_v39  ;;  %v11023_v5 = vor.u32 %v10336_v26, %v10334_v53  ;;  %v11024_v16 = vshll.u32 %v10351_v35, 16  ;;  %v5244_v53 = vld [vmem:[#allocation2 + $0xcc] sm:$0xf] }
 0x281   : > { %8129 = vmatpush3.bf16.msra.mxu0 %v8619_v20  ;;  %v10582_v20 = vsel %vm9592_vm15, %v7281_v4, %v6123_v32  ;;  %v11025_v9 = vor.u32 %v10355_v44, %v10353_v57  ;;  %v11026_v6 = vshll.u32 %v10388_v38, 16  ;;  %v11027_v62 = vshrl.u32 %v10388_v38, 16 }
 0x282   : > { %v5519_v10 = vrot.slane %v11023_v5, 4  ;;  %v5557_v4 = vrot.slane %v11024_v16, 5  ;;  %v10611_v26 = vsel %vm9592_vm15, %v6125_v28, %v6126_v21  ;;  %v5534_v35 = vsel %vm9316_vm12, %v10398_v18, %v10386_v11 }
 0x283   : > { %v5543_v7 = vrot.slane %v11025_v9, 4  ;;  %v5595_v46 = vrot.slane %v11026_v6, 5  ;;  %v5599_v39 = vrot.slane %v11027_v62, 4  ;;  %v11028_v57 = vshrl.u32 %v10363_v63, 16 }
 0x284   : > { %8099 = vmatmul.mubr.bf16.gmra.mrb[16].mxu0 %v10371_v51  ;;  %v11029_v51 = vshll.u32 %v10363_v63, 16  ;;  %v5558_v21 = vsel %vm9316_vm12, %v10406_v47, %v5557_v4  ;;  %v5576_v28 = vor.u32 %v10402_v31, %v10400_v50  ;;  %v5589_v11 = vrot.slane %v5587_v8, 5 }
 0x285   : > { %8102 = vmatprep.mubr.bf16.mxu0 %v7252_v3  ;;  %v5562_v44 = vrot.slane %v11028_v57, 4  ;;  %v11030_v3 = vshrl.u32 %v10374_v49, 16  ;;  %v5608_v18 = vshrl.u32 %v5244_v53, 16  ;;  %v5611_v16 = vshll.u32 %v5244_v53, 16 }
 0x286   : > { %v5565_v34 = vrot.slane %v11029_v51, 5  ;;  %v5617_v9 = vshll.u32 %v5245_v33, 16  ;;  %v5621_v6 = vshrl.u32 %v5245_v33, 16  ;;  %v5524_v63 = vsel %vm9316_vm12, %v5519_v10, %v10319_v43 }
 0x287   : > { %v5586_v5 = vrot.slane %v11030_v3, 4  ;;  %v5600_v62 = vor.u32 %v5599_v39, %v5595_v46  ;;  %v7253_v57 = vcombine.low %v5524_v63, %v5534_v35  ;;  %v5548_v47 = vsel %vm9316_vm12, %v5543_v7, %v10326_v36 }
 0x288   : > { %v5566_v4 = vor.u32 %v5565_v34, %v5562_v44  ;;  %v5579_v31 = vshll.u32 %v10519_v54, 16  ;;  %v7254_v49 = vcombine.low %v5548_v47, %v5558_v21  ;;  %v5577_v51 = vrot.slane %v5576_v28, 4  ;;  %v8678_v34 = vld [vmem:[#allocation2 + $0x1c] sm:$0xf] }
 0x289   : > { %v5590_v8 = vor.u32 %v5589_v11, %v5586_v5  ;;  %v5603_v53 = vshll.u32 %v10536_v30, 16  ;;  %v5610_v3 = vrot.slane %v5608_v18, 4  ;;  %v5613_v33 = vrot.slane %v5611_v16, 5 }
 0x28a   : > { %v5619_v38 = vrot.slane %v5617_v9, 5  ;;  %v5623_v32 = vrot.slane %v5621_v6, 4  ;;  %v5601_v43 = vrot.slane %v5600_v62, 4  ;;  %v5567_v10 = vrot.slane %v5566_v4, 4  ;;  %v8679_v62 = vld [vmem:[#allocation2 + $0x20] sm:$0x1] }
 0x28b   : > { %v5581_v39 = vrot.slane %v5579_v31, 5  ;;  %v5591_v35 = vrot.slane %v5590_v8, 4  ;;  %v5605_v63 = vrot.slane %v5603_v53, 5  ;;  %v5614_v54 = vor.u32 %v5613_v33, %v5610_v3  ;;  %v8680_v4 = vld [vmem:[#allocation2 + $0x28] sm:$0xf] }
 0x28c   : > { %8103 = vmatmul.mubr.bf16.gmra.mrb[20].mxu0 %v7253_v57  ;;  %v5624_v7 = vor.u32 %v5623_v32, %v5619_v38  ;;  %v5627_v44 = vshll.u32 %v10538_v61, 16  ;;  %v6018_v21 = vrot.slane %v8678_v34, 5  ;;  %v5572_v28 = vsel %vm9316_vm12, %v5567_v10, %v10400_v50  ;;  %v5952_v61 = vld [vmem:[#allocation2 + $0x18] sm:$0xe]  ;;  %v5953_v10 = vld [vmem:[#allocation2 + $0x24] sm:$0xe] }
 0x28d   : > { %8106 = vmatprep.mubr.bf16.mxu0 %v7254_v49  ;;  %v5582_v36 = vsel %vm9316_vm12, %v5577_v51, %v5581_v39  ;;  %v5606_v30 = vsel %vm9316_vm12, %v5601_v43, %v5605_v63  ;;  %v5596_v11 = vsel %vm9316_vm12, %v5591_v35, %v5595_v46  ;;  %v5615_v16 = vrot.slane %v5614_v54, 4  ;;  %v8681_v51 = vld [vmem:[#allocation2 + $0x34] sm:$0xf]  ;;  %v5954_v35 = vld [vmem:[#allocation2 + $0x30] sm:$0xe] }
 0x28e   : > { %v7255_v5 = vcombine.low %v5572_v28, %v5582_v36  ;;  %v7256_v18 = vcombine.low %v5596_v11, %v5606_v30  ;;  %v5625_v9 = vrot.slane %v5624_v7, 4  ;;  %v5629_v6 = vrot.slane %v5627_v44, 5  ;;  %v11031_v63 = vld [vmem:[#allocation6_spill] sm:$0xff] }
 0x28f   : > { %v6020_v32 = vrot.slane %v6018_v21, 4  ;;  %v6021_v57 = vrot.slane %v8679_v62, 5  ;;  %v5620_v47 = vsel %vm9316_vm12, %v5615_v16, %v5619_v38  ;;  %v6025_v31 = vrot.slane %v8680_v4, 5 }
 0x290   : > { %v5630_v50 = vsel %vm9316_vm12, %v5625_v9, %v5629_v6  ;;  %v7266_v49 = vrot.slane %v5952_v61, 9  ;;  %v6032_v8 = vrot.slane %v8681_v51, 5  ;;  %v6028_v39 = vrot.slane %v8682_v27, 5 }
 0x291   : > { %v6022_v46 = vsel %vm9592_vm15, %v6020_v32, %v6021_v57  ;;  %v7257_v53 = vcombine.low %v5620_v47, %v5630_v50  ;;  %v6027_v43 = vrot.slane %v6025_v31, 4  ;;  %v6035_v36 = vrot.slane %v11031_v63, 5 }
 0x292   : > { %v6019_v3 = vsel %vm9592_vm15, %v7266_v49, %v6018_v21  ;;  %v6034_v38 = vrot.slane %v6032_v8, 4  ;;  %v7267_v54 = vrot.slane %v5953_v10, 9  ;;  %v7268_v44 = vrot.slane %v5954_v35, 9 }
 0x293   : > { %v7282_v33 = vcombine.low %v6019_v3, %v6022_v46  ;;  %v6029_v7 = vsel %vm9592_vm15, %v6027_v43, %v6028_v39  ;;  %v11032_v11 = vcombine.low %v10422_v25, %v10427_v15  ;;  %v11034_v16 = vcombine.low %v10450_v24, %v10455_v19  ;;  %v8622_v19 = vld [vmem:[%s10955_s5 + $0x10] sm:$0xff]   ;;  %v10777_v39 = vld [vmem:[%s10957_s7] ss:$0 sm:$0xff] }
 0x294   : > { %8107 = vmatmul.mubr.bf16.gmra.mrb[24].mxu0 %v7255_v5  ;;  %v6036_v30 = vsel %vm9592_vm15, %v6034_v38, %v6035_v36  ;;  %v6026_v34 = vsel %vm9592_vm15, %v7267_v54, %v6025_v31  ;;  %v6033_v28 = vsel %vm9592_vm15, %v7268_v44, %v6032_v8  ;;  %v11035_v9 = vcombine.low %v10459_v22, %v10468_v40  ;;  %v8623_v40 = vld [vmem:[%s10955_s5 + $0x18] sm:$0xff]  }
 0x295   : > { %8110 = vmatprep.mubr.bf16.mxu0 %v7256_v18  ;;  %v7283_v21 = vcombine.low %v6026_v34, %v6029_v7  ;;  %v7284_v5 = vcombine.low %v6033_v28, %v6036_v30  ;;  %v11033_v18 = vcombine.low %v10431_v13, %v10438_v58  ;;  %v11037_v25 = vcombine.low %v10487_v41, %v10494_v12  ;;  %v8620_v13 = vld [vmem:[%s10955_s5] sm:$0xff]   ;;  %v8621_v58 = vld [vmem:[%s10955_s5 + $0x8] sm:$0xff]  }
 0x296   : > { %v11038_v15 = vcombine.low %v10503_v23, %v10511_v60  ;;  %v11039_v24 = vcombine.low %v10515_v37, %v10525_v0  ;;  %8162 = vmatprep.subr.bf16.mxu1 %v8620_v13  ;;  %v11040_v22 = vcombine.low %v10532_v2, %v10542_v17  ;;  %v11041_v29 = vcombine.low %v10546_v59, %v10553_v55  ;;  %v8625_v41 = vld [vmem:[%s10955_s5 + $0x28] sm:$0xff]   ;;  %v8626_v23 = vld [vmem:[%s10955_s5 + $0x30] sm:$0xff]   ;;  %v8627_v60 = vld [vmem:[%s10955_s5 + $0x38] sm:$0xff]  }
 0x297   : > { %8163 = vmatpush3.bf16.msra.mxu1 %v8620_v13  ;;  %v11042_v12 = vcombine.low %v10572_v45, %v10578_v56  ;;  %v11043_v52 = vcombine.low %v10582_v20, %v10611_v26 }
 0x298   : > { %8164 = vmatprep.subr.bf16.mxu1 %v8621_v58 }
 0x29b   : > { %8165 = vmatpush3.bf16.msra.mxu1 %v8621_v58 }
 0x29c   : > { %8111 = vmatmul.mubr.bf16.gmra.mrb[28].mxu0 %v7257_v53  ;;  %8166 = vmatprep.subr.bf16.mxu1 %v8622_v19 }
 0x29d   : > { %8130 = vmatprep.mubr.bf16.mxu0 %v7282_v33 }
 0x29f   : > { %8167 = vmatpush3.bf16.msra.mxu1 %v8622_v19 }
 0x2a0   : > { %8168 = vmatprep.subr.bf16.mxu1 %v8623_v40 }
 0x2a3   : > { %8169 = vmatpush3.bf16.msra.mxu1 %v8623_v40 }
 0x2a4   : > { %8131 = vmatmul.mubr.bf16.vlgmr.msra.gmra.mrb[0].mxu0 %v7283_v21  ;;  %8170 = vmatprep.subr.bf16.mxu1 %v8624_v14 }
 0x2a5   : > { %8134 = vmatprep.mubr.bf16.mxu0 %v7284_v5 }
 0x2a7   : > { %8171 = vmatpush3.bf16.msra.mxu1 %v8624_v14 }
 0x2a8   : > { %8172 = vmatprep.subr.bf16.mxu1 %v8625_v41 }
 0x2ab   : > { %8173 = vmatpush3.bf16.msra.mxu1 %v8625_v41 }
 0x2ac   : > { %8135 = vmatmul.mubr.bf16.gmra.mrb[4].mxu0 %v11032_v11  ;;  %8174 = vmatprep.subr.bf16.mxu1 %v8626_v23 }
 0x2ad   : > { %8138 = vmatprep.mubr.bf16.mxu0 %v11033_v18 }
 0x2af   : > { %8175 = vmatpush3.bf16.msra.mxu1 %v8626_v23 }
 0x2b0   : > { %8176 = vmatprep.subr.bf16.mxu1 %v8627_v60 }
 0x2b3   : > { %8177 = vmatpush3.bf16.msra.mxu1 %v8627_v60 }
 0x2b4   : > { %8139 = vmatmul.mubr.bf16.gmra.mrb[8].mxu0 %v11034_v16 }
 0x2b5   : > { %8142 = vmatprep.mubr.bf16.mxu0 %v11035_v9 }
 0x2bc   : > { %8143 = vmatmul.mubr.bf16.gmra.mrb[12].mxu0 %v11036_v48 }
 0x2bd   : > { %8146 = vmatprep.mubr.bf16.mxu0 %v11037_v25 }
 0x2c4   : > { %8147 = vmatmul.mubr.bf16.gmra.mrb[16].mxu0 %v11038_v15 }
 0x2c5   : > { %8150 = vmatprep.mubr.bf16.mxu0 %v11039_v24 }
 0x2cc   : > { %8151 = vmatmul.mubr.bf16.gmra.mrb[20].mxu0 %v11040_v22 }
 0x2cd   : > { %8154 = vmatprep.mubr.bf16.mxu0 %v11041_v29 }
 0x2d4   : > { %8155 = vmatmul.mubr.bf16.gmra.mrb[24].mxu0 %v7295_v42 }
 0x2d5   : > { %8158 = vmatprep.mubr.bf16.mxu0 %v11042_v12 }
 0x2dc   : > { %8159 = vmatmul.mubr.bf16.gmra.mrb[28].mxu0 %v11043_v52 }
 0x30a   : > { %v7844_v37 = vpop.f32.mrb[40].mxu1 }
 0x30b   : > { %v3019_v0 = vpop.f32.mrb[41].mxu1 }
 0x30c   : > { %v7845_v2 = vpop.f32.mrb[42].mxu1 }
 0x30d   : > { %v3022_v17 = vpop.f32.mrb[43].mxu1 }
 0x312   : > { %v7848_v59 = vpop.f32.mrb[44].mxu1 }
 0x313   : > { %v3035_v55 = vpop.f32.mrb[45].mxu1 }
 0x314   : > { %v7849_v56 = vpop.f32.mrb[46].mxu1 }
 0x315   : > { %v3038_v1 = vpop.f32.mrb[47].mxu1 }
 0x31a   : > { %v7852_v45 = vpop.f32.mrb[48].mxu1 }
 0x31b   : > { %v10728_v42 = vpop.f32.mrb[49].mxu1 }
 0x31c   : > { %v10730_v20 = vpop.f32.mrb[50].mxu1 }
 0x31d   : > { %v10732_v26 = vpop.f32.mrb[51].mxu1 }
 0x322   : > { %v10734_v6 = vpop.f32.mrb[52].mxu1 }
 0x323   : > { %v10736_v32 = vpop.f32.mrb[53].mxu1 }
 0x324   : > { %v10738_v61 = vpop.f32.mrb[54].mxu1 }
 0x325   : > { %v10740_v62 = vpop.f32.mrb[55].mxu1 }
 0x32a   : > { %v10742_v57 = vpop.f32.mrb[56].mxu1 }
 0x32b   : > { %v10744_v47 = vpop.f32.mrb[57].mxu1 }
 0x32c   : > { %v10746_v50 = vpop.f32.mrb[58].mxu1 }
 0x32d   : > { %v10748_v4 = vpop.f32.mrb[59].mxu1 }
 0x332   : > { %v10750_v31 = vpop.f32.mrb[60].mxu1 }
 0x333   : > { %v10752_v49 = vpop.f32.mrb[61].mxu1 }
 0x334   : > { %v10754_v46 = vpop.f32.mrb[62].mxu1 }
 0x335   : > { %v10756_v51 = vpop.f32.mrb[63].mxu1 }
 0x33a   : > { %v10758_v8 = vpop.f32.mrb[64].mxu1 }
 0x33b   : > { %v10760_v53 = vpop.f32.mrb[65].mxu1 }
 0x33c   : > { %v10762_v3 = vpop.f32.mrb[66].mxu1 }
 0x33d   : > { %v10764_v33 = vpop.f32.mrb[67].mxu1 }
 0x342   : > { %v10766_v43 = vpop.f32.mrb[68].mxu1 }
 0x343   : > { %v10768_v10 = vpop.f32.mrb[69].mxu1 }
 0x344   : > { %v10770_v38 = vpop.f32.mrb[70].mxu1 }
 0x345   : > { %v10772_v27 = vpop.f32.mrb[71].mxu1 }
 0x377   : > { %v8132_v35 = vpop.f32.mrb[0].mxu0 }
 0x378   : > { %v8210_v63 = vadd.f32 %v8132_v35, %v7844_v37  ;;  %v6290_v36 = vpop.f32.mrb[1].mxu0 }
 0x379   : > { %v8211_v54 = vadd.f32 %v6290_v36, %v3019_v0  ;;  %v8133_v7 = vpop.f32.mrb[2].mxu0 }
 0x37a   : > { %v6457_v44 = vadd.f32 %v8210_v63, %v10777_v39  ;;  %v8212_v30 = vadd.f32 %v8133_v7, %v7845_v2  ;;  %v6293_v34 = vpop.f32.mrb[3].mxu0 }
 0x37b   : > { %v6455_v21 = vadd.f32 %v8211_v54, %v10777_v39  ;;  %v8213_v28 = vadd.f32 %v6293_v34, %v3022_v17 }
 0x37c   : > { %v6458_v5 = vadd.f32 %v8212_v30, %v10777_v39  ;;  %v6489_v18 = vmax.f32 %v6457_v44, 0.0 }
 0x37d   : > { %v6456_v11 = vadd.f32 %v8213_v28, %v10777_v39  ;;  %v6487_v9 = vmax.f32 %v6455_v21, 0.0 }
 0x37e   : > { %v6490_v16 = vmax.f32 %v6458_v5, 0.0 }
 0x37f   : > { %v6488_v48 = vmax.f32 %v6456_v11, 0.0  ;;  %v8136_v25 = vpop.f32.mrb[4].mxu0 }
 0x380   : > { %v6520_v15 = vpack.c.bf16 %v6490_v16, %v6489_v18  ;;  %v8214_v13 = vadd.f32 %v8136_v25, %v7848_v59  ;;  %v6306_v58 = vpop.f32.mrb[5].mxu0 }
 0x381   : > { %v8215_v24 = vadd.f32 %v6306_v58, %v3035_v55  ;;  %v8137_v19 = vpop.f32.mrb[6].mxu0  ;;  %v6519_v22 = vpack.c.bf16 %v6488_v48, %v6487_v9 }
 0x382   : > { %v6461_v40 = vadd.f32 %v8214_v13, %v10777_v39  ;;  %v8216_v29 = vadd.f32 %v8137_v19, %v7849_v56  ;;  %v6309_v14 = vpop.f32.mrb[7].mxu0 }
 0x383   : > { %v6459_v41 = vadd.f32 %v8215_v24, %v10777_v39  ;;  %v8217_v12 = vadd.f32 %v6309_v14, %v3038_v1  ;;  %8178 = vmatprep.mubr.bf16.mxu1 %v6519_v22 }
 0x384   : > { %v6462_v23 = vadd.f32 %v8216_v29, %v10777_v39  ;;  %8179 = vmatmul.mubr.bf16.vlgmr.msra.gmra.mrb[72].mxu1 %v6520_v15  ;;  %v6493_v60 = vmax.f32 %v6461_v40, 0.0 }
 0x385   : > { %v6460_v52 = vadd.f32 %v8217_v12, %v10777_v39  ;;  %v6491_v0 = vmax.f32 %v6459_v41, 0.0 }
 0x386   : > { %v6494_v37 = vmax.f32 %v6462_v23, 0.0 }
 0x387   : > { %v6492_v2 = vmax.f32 %v6460_v52, 0.0  ;;  %v8140_v17 = vpop.f32.mrb[8].mxu0 }
 0x388   : > { %v8218_v59 = vadd.f32 %v8140_v17, %v7852_v45  ;;  %v6322_v55 = vpop.f32.mrb[9].mxu0  ;;  %v6522_v35 = vpack.c.bf16 %v6494_v37, %v6493_v60 }
 0x389   : > { %v8219_v56 = vadd.f32 %v6322_v55, %v10728_v42  ;;  %v8141_v63 = vpop.f32.mrb[10].mxu0  ;;  %v6521_v36 = vpack.c.bf16 %v6492_v2, %v6491_v0 }
 0x38a   : > { %v6465_v1 = vadd.f32 %v8218_v59, %v10777_v39  ;;  %v8220_v54 = vadd.f32 %v8141_v63, %v10730_v20  ;;  %v6325_v7 = vpop.f32.mrb[11].mxu0 }
 0x38b   : > { %v6463_v44 = vadd.f32 %v8219_v56, %v10777_v39  ;;  %v8221_v30 = vadd.f32 %v6325_v7, %v10732_v26  ;;  %8182 = vmatprep.mubr.bf16.mxu1 %v6521_v36 }
 0x38c   : > { %v6466_v34 = vadd.f32 %v8220_v54, %v10777_v39  ;;  %8183 = vmatmul.mubr.bf16.gmra.mrb[76].mxu1 %v6522_v35  ;;  %v6497_v21 = vmax.f32 %v6465_v1, 0.0 }
 0x38d   : > { %v6464_v45 = vadd.f32 %v8221_v30, %v10777_v39  ;;  %v6495_v42 = vmax.f32 %v6463_v44, 0.0 }
 0x38e   : > { %v6498_v28 = vmax.f32 %v6466_v34, 0.0 }
 0x38f   : > { %v6496_v5 = vmax.f32 %v6464_v45, 0.0  ;;  %v8144_v11 = vpop.f32.mrb[12].mxu0 }
 0x390   : > { %v8222_v18 = vadd.f32 %v8144_v11, %v10734_v6  ;;  %v6338_v16 = vpop.f32.mrb[13].mxu0  ;;  %v6524_v20 = vpack.c.bf16 %v6498_v28, %v6497_v21 }
 0x391   : > { %v8223_v9 = vadd.f32 %v6338_v16, %v10736_v32  ;;  %v8145_v48 = vpop.f32.mrb[14].mxu0  ;;  %v6523_v25 = vpack.c.bf16 %v6496_v5, %v6495_v42 }
 0x392   : > { %v6469_v26 = vadd.f32 %v8222_v18, %v10777_v39  ;;  %v8224_v15 = vadd.f32 %v8145_v48, %v10738_v61  ;;  %v6341_v13 = vpop.f32.mrb[15].mxu0 }
 0x393   : > { %v6467_v58 = vadd.f32 %v8223_v9, %v10777_v39  ;;  %v8225_v24 = vadd.f32 %v6341_v13, %v10740_v62  ;;  %8186 = vmatprep.mubr.bf16.mxu1 %v6523_v25 }
 0x394   : > { %v6470_v19 = vadd.f32 %v8224_v15, %v10777_v39  ;;  %8187 = vmatmul.mubr.bf16.gmra.mrb[80].mxu1 %v6524_v20  ;;  %v6501_v22 = vmax.f32 %v6469_v26, 0.0 }
 0x395   : > { %v6468_v6 = vadd.f32 %v8225_v24, %v10777_v39  ;;  %v6499_v32 = vmax.f32 %v6467_v58, 0.0 }
 0x396   : > { %v6502_v40 = vmax.f32 %v6470_v19, 0.0 }
 0x397   : > { %v6500_v29 = vmax.f32 %v6468_v6, 0.0  ;;  %v8148_v14 = vpop.f32.mrb[16].mxu0 }
 0x398   : > { %v8226_v41 = vadd.f32 %v8148_v14, %v10742_v57  ;;  %v6354_v12 = vpop.f32.mrb[17].mxu0  ;;  %v6526_v61 = vpack.c.bf16 %v6502_v40, %v6501_v22 }
 0x399   : > { %v8227_v23 = vadd.f32 %v6354_v12, %v10744_v47  ;;  %v8149_v52 = vpop.f32.mrb[18].mxu0  ;;  %v6525_v60 = vpack.c.bf16 %v6500_v29, %v6499_v32 }
 0x39a   : > { %v6473_v62 = vadd.f32 %v8226_v41, %v10777_v39  ;;  %v8228_v37 = vadd.f32 %v8149_v52, %v10746_v50  ;;  %v6357_v0 = vpop.f32.mrb[19].mxu0 }
 0x39b   : > { %v6471_v2 = vadd.f32 %v8227_v23, %v10777_v39  ;;  %v8229_v17 = vadd.f32 %v6357_v0, %v10748_v4  ;;  %8190 = vmatprep.mubr.bf16.mxu1 %v6525_v60 }
 0x39c   : > { %v6474_v59 = vadd.f32 %v8228_v37, %v10777_v39  ;;  %8191 = vmatmul.mubr.bf16.gmra.mrb[84].mxu1 %v6526_v61  ;;  %v6505_v55 = vmax.f32 %v6473_v62, 0.0 }
 0x39d   : > { %v6472_v57 = vadd.f32 %v8229_v17, %v10777_v39  ;;  %v6503_v47 = vmax.f32 %v6471_v2, 0.0 }
 0x39e   : > { %v6506_v35 = vmax.f32 %v6474_v59, 0.0 }
 0x39f   : > { %v6504_v56 = vmax.f32 %v6472_v57, 0.0  ;;  %v8152_v63 = vpop.f32.mrb[20].mxu0 }
 0x3a0   : > { %v8230_v36 = vadd.f32 %v8152_v63, %v10750_v31  ;;  %v6370_v1 = vpop.f32.mrb[21].mxu0  ;;  %v6528_v50 = vpack.c.bf16 %v6506_v35, %v6505_v55 }
 0x3a1   : > { %v8231_v54 = vadd.f32 %v6370_v1, %v10752_v49  ;;  %v8153_v7 = vpop.f32.mrb[22].mxu0  ;;  %v6527_v44 = vpack.c.bf16 %v6504_v56, %v6503_v47  ;;  %v8683_v47 = vld [vmem:[%s8833_s22 + $0x10] sm:$0xff]  ;;  %v8684_v1 = vld [vmem:[%s8833_s22] sm:$0xff] }
 0x3a2   : > { %v6477_v4 = vadd.f32 %v8230_v36, %v10777_v39  ;;  %v8232_v30 = vadd.f32 %v8153_v7, %v10754_v46  ;;  %v6373_v34 = vpop.f32.mrb[23].mxu0 }
 0x3a3   : > { %v6475_v45 = vadd.f32 %v8231_v54, %v10777_v39  ;;  %v8233_v21 = vadd.f32 %v6373_v34, %v10756_v51  ;;  %8194 = vmatprep.mubr.bf16.mxu1 %v6527_v44  ;;  %v8685_v44 = vld [vmem:[%s8833_s22 + $0x18] sm:$0xff]  ;;  %v8686_v34 = vld [vmem:[%s8833_s22 + $0x8] sm:$0xff] }
 0x3a4   : > { %v6478_v28 = vadd.f32 %v8232_v30, %v10777_v39  ;;  %8195 = vmatmul.mubr.bf16.gmra.mrb[88].mxu1 %v6528_v50  ;;  %v6509_v42 = vmax.f32 %v6477_v4, 0.0 }
 0x3a5   : > { %v6476_v31 = vadd.f32 %v8233_v21, %v10777_v39  ;;  %v6507_v49 = vmax.f32 %v6475_v45, 0.0 }
 0x3a6   : > { %v6510_v5 = vmax.f32 %v6478_v28, 0.0 }
 0x3a7   : > { %v6508_v11 = vmax.f32 %v6476_v31, 0.0  ;;  %v8156_v18 = vpop.f32.mrb[24].mxu0 }
 0x3a8   : > { %v8234_v16 = vadd.f32 %v8156_v18, %v10758_v8  ;;  %v6386_v20 = vpop.f32.mrb[25].mxu0  ;;  %v6530_v46 = vpack.c.bf16 %v6510_v5, %v6509_v42  ;;  %v8687_v18 = vld [vmem:[%s8833_s22 + $0x30] sm:$0xff] }
 0x3a9   : > { %v8235_v9 = vadd.f32 %v6386_v20, %v10760_v53  ;;  %v8157_v48 = vpop.f32.mrb[26].mxu0  ;;  %v6529_v25 = vpack.c.bf16 %v6508_v11, %v6507_v49 }
 0x3aa   : > { %v6481_v51 = vadd.f32 %v8234_v16, %v10777_v39  ;;  %v8236_v26 = vadd.f32 %v8157_v48, %v10762_v3  ;;  %v6389_v15 = vpop.f32.mrb[27].mxu0 }
 0x3ab   : > { %v6479_v13 = vadd.f32 %v8235_v9, %v10777_v39  ;;  %v8237_v58 = vadd.f32 %v6389_v15, %v10764_v33  ;;  %8198 = vmatprep.mubr.bf16.mxu1 %v6529_v25  ;;  %v8688_v9 = vld [vmem:[%s8833_s22 + $0x20] sm:$0xff] }
 0x3ac   : > { %v6482_v24 = vadd.f32 %v8236_v26, %v10777_v39  ;;  %8199 = vmatmul.mubr.bf16.gmra.mrb[92].mxu1 %v6530_v46  ;;  %v6513_v19 = vmax.f32 %v6481_v51, 0.0  ;;  %v8689_v26 = vld [vmem:[%s8833_s22 + $0x38] sm:$0xff] }
 0x3ad   : > { %v6480_v8 = vadd.f32 %v8237_v58, %v10777_v39  ;;  %v6511_v53 = vmax.f32 %v6479_v13, 0.0  ;;  %v8690_v58 = vld [vmem:[%s8833_s22 + $0x28] sm:$0xff] }
 0x3ae   : > { %v6514_v6 = vmax.f32 %v6482_v24, 0.0 }
 0x3af   : > { %v6512_v22 = vmax.f32 %v6480_v8, 0.0  ;;  %v8160_v40 = vpop.f32.mrb[28].mxu0 }
 0x3b0   : > { %v8238_v32 = vadd.f32 %v8160_v40, %v10766_v43  ;;  %v6402_v29 = vpop.f32.mrb[29].mxu0  ;;  %v6532_v3 = vpack.c.bf16 %v6514_v6, %v6513_v19 }
 0x3b1   : > { %v8239_v14 = vadd.f32 %v6402_v29, %v10768_v10  ;;  %v8161_v41 = vpop.f32.mrb[30].mxu0  ;;  %v6531_v12 = vpack.c.bf16 %v6512_v22, %v6511_v53  ;;  %v8691_v29 = vld [vmem:[%s8833_s22 + $0x50] sm:$0xff] }
 0x3b2   : > { %v6485_v33 = vadd.f32 %v8238_v32, %v10777_v39  ;;  %v8240_v61 = vadd.f32 %v8161_v41, %v10770_v38  ;;  %v6405_v23 = vpop.f32.mrb[31].mxu0 }
 0x3b3   : > { %v6483_v52 = vadd.f32 %v8239_v14, %v10777_v39  ;;  %v8241_v60 = vadd.f32 %v6405_v23, %v10772_v27  ;;  %8202 = vmatprep.mubr.bf16.mxu1 %v6531_v12  ;;  %v10837_v27 = vld [vmem:[%s10958_s8] ss:$0 sm:$0xff] }
 0x3b4   : > { %v6486_v62 = vadd.f32 %v8240_v61, %v10777_v39  ;;  %8203 = vmatmul.mubr.bf16.gmra.mrb[96].mxu1 %v6532_v3  ;;  %v6517_v37 = vmax.f32 %v6485_v33, 0.0  ;;  %v8692_v12 = vld [vmem:[%s8833_s22 + $0x40] sm:$0xff] }
 0x3b5   : > { %v6484_v43 = vadd.f32 %v8241_v60, %v10777_v39  ;;  %v6515_v0 = vmax.f32 %v6483_v52, 0.0  ;;  %v8693_v52 = vld [vmem:[%s8833_s22 + $0x58] sm:$0xff] }
 0x3b6   : > { %v6518_v10 = vmax.f32 %v6486_v62, 0.0 }
 0x3b7   : > { %v6516_v2 = vmax.f32 %v6484_v43, 0.0  ;;  %v8694_v43 = vld [vmem:[%s8833_s22 + $0x48] sm:$0xff] }
 0x3b8   : > { %v6534_v17 = vpack.c.bf16 %v6518_v10, %v6517_v37 }
 0x3b9   : > { %v6533_v38 = vpack.c.bf16 %v6516_v2, %v6515_v0 }
 0x3bb   : > { %8206 = vmatprep.mubr.bf16.mxu1 %v6533_v38 }
 0x3bc   : > { %8207 = vmatmul.mubr.bf16.gmra.mrb[100].mxu1 %v6534_v17 }
 0x457   : > { %v8180_v59 = vpop.f32.mrb[72].mxu1 }
 0x458   : > { %v6632_v57 = vadd.f32 %v8180_v59, %v10837_v27  ;;  %v6623_v39 = vpop.f32.mrb[73].mxu1 }
 0x459   : > { %v6624_v55 = vadd.f32 %v10837_v27, %v6623_v39  ;;  %v8181_v35 = vpop.f32.mrb[74].mxu1  ;;  %v8695_v39 = vld [vmem:[%s8833_s22 + $0x70] sm:$0xff] }
 0x45a   : > { %v6752_v56 = vadd.f32 %v8683_v47, %v6632_v57  ;;  %v6635_v63 = vadd.f32 %v8181_v35, %v10837_v27  ;;  %v6626_v36 = vpop.f32.mrb[75].mxu1 }
 0x45b   : > { %v6750_v50 = vadd.f32 %v8684_v1, %v6624_v55  ;;  %v6627_v54 = vadd.f32 %v10837_v27, %v6626_v36 }
 0x45c   : > { %v6784_v7 = vmax.f32 %v6752_v56, 0.0  ;;  %v6753_v4 = vadd.f32 %v8685_v44, %v6635_v63  ;;  %v8696_v56 = vld [vmem:[%s8833_s22 + $0x60] sm:$0xff]  ;;  %v8698_v44 = vld [vmem:[%s8833_s22 + $0x68] sm:$0xff] }
 0x45d   : > { %v6782_v30 = vmax.f32 %v6750_v50, 0.0  ;;  %v6751_v45 = vadd.f32 %v8686_v34, %v6627_v54  ;;  %v8697_v50 = vld [vmem:[%s8833_s22 + $0x78] sm:$0xff] }
 0x45e   : > { %6816 = vst [vmem:[%s10847_s16 + $0x10] sm:$0xff] %v6784_v7  ;;  %v6785_v21 = vmax.f32 %v6753_v4, 0.0 }
 0x45f   : > { %6814 = vst [vmem:[%s10847_s16] sm:$0xff] %v6782_v30  ;;  %v6783_v28 = vmax.f32 %v6751_v45, 0.0  ;;  %v8184_v31 = vpop.f32.mrb[76].mxu1 }
 0x460   : > { %6817 = vst [vmem:[%s10847_s16 + $0x18] sm:$0xff] %v6785_v21  ;;  %v6648_v42 = vadd.f32 %v8184_v31, %v10837_v27  ;;  %v6639_v5 = vpop.f32.mrb[77].mxu1 }
 0x461   : > { %6815 = vst [vmem:[%s10847_s16 + $0x8] sm:$0xff] %v6783_v28  ;;  %v6640_v49 = vadd.f32 %v10837_v27, %v6639_v5  ;;  %v8185_v11 = vpop.f32.mrb[78].mxu1  ;;  %v8699_v5 = vld [vmem:[%s8833_s22 + $0x90] sm:$0xff] }
 0x462   : > { %v6756_v16 = vadd.f32 %v8687_v18, %v6648_v42  ;;  %v6651_v20 = vadd.f32 %v8185_v11, %v10837_v27  ;;  %v6642_v46 = vpop.f32.mrb[79].mxu1 }
 0x463   : > { %v6754_v48 = vadd.f32 %v8688_v9, %v6640_v49  ;;  %v6643_v25 = vadd.f32 %v10837_v27, %v6642_v46 }
 0x464   : > { %v6788_v51 = vmax.f32 %v6756_v16, 0.0  ;;  %v6757_v15 = vadd.f32 %v8689_v26, %v6651_v20  ;;  %v8700_v16 = vld [vmem:[%s8833_s22 + $0x80] sm:$0xff]  ;;  %v8702_v26 = vld [vmem:[%s8833_s22 + $0x88] sm:$0xff] }
 0x465   : > { %v6786_v13 = vmax.f32 %v6754_v48, 0.0  ;;  %v6755_v24 = vadd.f32 %v8690_v58, %v6643_v25  ;;  %v8701_v48 = vld [vmem:[%s8833_s22 + $0x98] sm:$0xff] }
 0x466   : > { %6820 = vst [vmem:[%s10847_s16 + $0x30] sm:$0xff] %v6788_v51  ;;  %v6789_v8 = vmax.f32 %v6757_v15, 0.0 }
 0x467   : > { %6818 = vst [vmem:[%s10847_s16 + $0x20] sm:$0xff] %v6786_v13  ;;  %v6787_v19 = vmax.f32 %v6755_v24, 0.0  ;;  %v8188_v6 = vpop.f32.mrb[80].mxu1 }
 0x468   : > { %6821 = vst [vmem:[%s10847_s16 + $0x38] sm:$0xff] %v6789_v8  ;;  %v6664_v53 = vadd.f32 %v8188_v6, %v10837_v27  ;;  %v6655_v22 = vpop.f32.mrb[81].mxu1 }
 0x469   : > { %6819 = vst [vmem:[%s10847_s16 + $0x28] sm:$0xff] %v6787_v19  ;;  %v6656_v40 = vadd.f32 %v10837_v27, %v6655_v22  ;;  %v8189_v32 = vpop.f32.mrb[82].mxu1  ;;  %v8703_v22 = vld [vmem:[%s8833_s22 + $0xb0] sm:$0xff] }
 0x46a   : > { %v6760_v3 = vadd.f32 %v8691_v29, %v6664_v53  ;;  %v6667_v14 = vadd.f32 %v8189_v32, %v10837_v27  ;;  %v6658_v41 = vpop.f32.mrb[83].mxu1 }
 0x46b   : > { %v6758_v33 = vadd.f32 %v8692_v12, %v6656_v40  ;;  %v6659_v61 = vadd.f32 %v10837_v27, %v6658_v41 }
 0x46c   : > { %v6792_v23 = vmax.f32 %v6760_v3, 0.0  ;;  %v6761_v60 = vadd.f32 %v8693_v52, %v6667_v14  ;;  %v8704_v3 = vld [vmem:[%s8833_s22 + $0xa0] sm:$0xff]  ;;  %v8706_v52 = vld [vmem:[%s8833_s22 + $0xa8] sm:$0xff] }
 0x46d   : > { %v6790_v62 = vmax.f32 %v6758_v33, 0.0  ;;  %v6759_v37 = vadd.f32 %v8694_v43, %v6659_v61  ;;  %v8705_v33 = vld [vmem:[%s8833_s22 + $0xb8] sm:$0xff] }
 0x46e   : > { %6824 = vst [vmem:[%s10847_s16 + $0x50] sm:$0xff] %v6792_v23  ;;  %v6793_v10 = vmax.f32 %v6761_v60, 0.0 }
 0x46f   : > { %6822 = vst [vmem:[%s10847_s16 + $0x40] sm:$0xff] %v6790_v62  ;;  %v6791_v0 = vmax.f32 %v6759_v37, 0.0  ;;  %v8192_v2 = vpop.f32.mrb[84].mxu1 }
 0x470   : > { %6825 = vst [vmem:[%s10847_s16 + $0x58] sm:$0xff] %v6793_v10  ;;  %v6680_v17 = vadd.f32 %v8192_v2, %v10837_v27  ;;  %v6671_v38 = vpop.f32.mrb[85].mxu1 }
 0x471   : > { %6823 = vst [vmem:[%s10847_s16 + $0x48] sm:$0xff] %v6791_v0  ;;  %v6672_v59 = vadd.f32 %v10837_v27, %v6671_v38  ;;  %v8193_v57 = vpop.f32.mrb[86].mxu1  ;;  %v8707_v38 = vld [vmem:[%s8833_s22 + $0xd0] sm:$0xff] }
 0x472   : > { %v6764_v55 = vadd.f32 %v8695_v39, %v6680_v17  ;;  %v6683_v35 = vadd.f32 %v8193_v57, %v10837_v27  ;;  %v6674_v47 = vpop.f32.mrb[87].mxu1 }
 0x473   : > { %v6762_v63 = vadd.f32 %v8696_v56, %v6672_v59  ;;  %v6675_v36 = vadd.f32 %v10837_v27, %v6674_v47 }
 0x474   : > { %v6796_v1 = vmax.f32 %v6764_v55, 0.0  ;;  %v6765_v54 = vadd.f32 %v8697_v50, %v6683_v35  ;;  %v8708_v55 = vld [vmem:[%s8833_s22 + $0xc0] sm:$0xff]  ;;  %v8710_v50 = vld [vmem:[%s8833_s22 + $0xc8] sm:$0xff] }
 0x475   : > { %v6794_v7 = vmax.f32 %v6762_v63, 0.0  ;;  %v6763_v4 = vadd.f32 %v8698_v44, %v6675_v36  ;;  %v8709_v63 = vld [vmem:[%s8833_s22 + $0xd8] sm:$0xff] }
 0x476   : > { %6828 = vst [vmem:[%s10847_s16 + $0x70] sm:$0xff] %v6796_v1  ;;  %v6797_v30 = vmax.f32 %v6765_v54, 0.0 }
 0x477   : > { %6826 = vst [vmem:[%s10847_s16 + $0x60] sm:$0xff] %v6794_v7  ;;  %v6795_v34 = vmax.f32 %v6763_v4, 0.0  ;;  %v8196_v45 = vpop.f32.mrb[88].mxu1 }
 0x478   : > { %6829 = vst [vmem:[%s10847_s16 + $0x78] sm:$0xff] %v6797_v30  ;;  %v6696_v21 = vadd.f32 %v8196_v45, %v10837_v27  ;;  %v6687_v28 = vpop.f32.mrb[89].mxu1 }
 0x479   : > { %6827 = vst [vmem:[%s10847_s16 + $0x68] sm:$0xff] %v6795_v34  ;;  %v6688_v31 = vadd.f32 %v10837_v27, %v6687_v28  ;;  %v8197_v42 = vpop.f32.mrb[90].mxu1  ;;  %v8711_v28 = vld [vmem:[%s8833_s22 + $0xf0] sm:$0xff] }
 0x47a   : > { %v6768_v49 = vadd.f32 %v8699_v5, %v6696_v21  ;;  %v6699_v11 = vadd.f32 %v8197_v42, %v10837_v27  ;;  %v6690_v18 = vpop.f32.mrb[91].mxu1 }
 0x47b   : > { %v6766_v20 = vadd.f32 %v8700_v16, %v6688_v31  ;;  %v6691_v46 = vadd.f32 %v10837_v27, %v6690_v18 }
 0x47c   : > { %v6800_v9 = vmax.f32 %v6768_v49, 0.0  ;;  %v6769_v25 = vadd.f32 %v8701_v48, %v6699_v11  ;;  %v8712_v49 = vld [vmem:[%s8833_s22 + $0xe0] sm:$0xff]  ;;  %v8714_v48 = vld [vmem:[%s8833_s22 + $0xe8] sm:$0xff] }
 0x47d   : > { %v6798_v51 = vmax.f32 %v6766_v20, 0.0  ;;  %v6767_v15 = vadd.f32 %v8702_v26, %v6691_v46  ;;  %v8713_v20 = vld [vmem:[%s8833_s22 + $0xf8] sm:$0xff] }
 0x47e   : > { %6832 = vst [vmem:[%s10847_s16 + $0x90] sm:$0xff] %v6800_v9  ;;  %v6801_v13 = vmax.f32 %v6769_v25, 0.0 }
 0x47f   : > { %6830 = vst [vmem:[%s10847_s16 + $0x80] sm:$0xff] %v6798_v51  ;;  %v6799_v58 = vmax.f32 %v6767_v15, 0.0  ;;  %v8200_v24 = vpop.f32.mrb[92].mxu1 }
 0x480   : > { %6833 = vst [vmem:[%s10847_s16 + $0x98] sm:$0xff] %v6801_v13  ;;  %v6712_v8 = vadd.f32 %v8200_v24, %v10837_v27  ;;  %v6703_v19 = vpop.f32.mrb[93].mxu1 }
 0x481   : > { %6831 = vst [vmem:[%s10847_s16 + $0x88] sm:$0xff] %v6799_v58  ;;  %v6704_v6 = vadd.f32 %v10837_v27, %v6703_v19  ;;  %v8201_v53 = vpop.f32.mrb[94].mxu1 }
 0x482   : > { %v6772_v40 = vadd.f32 %v8703_v22, %v6712_v8  ;;  %v6715_v32 = vadd.f32 %v8201_v53, %v10837_v27  ;;  %v6706_v29 = vpop.f32.mrb[95].mxu1 }
 0x483   : > { %v6770_v14 = vadd.f32 %v8704_v3, %v6704_v6  ;;  %v6707_v41 = vadd.f32 %v10837_v27, %v6706_v29 }
 0x484   : > { %v6804_v12 = vmax.f32 %v6772_v40, 0.0  ;;  %v6773_v61 = vadd.f32 %v8705_v33, %v6715_v32 }
 0x485   : > { %v6802_v23 = vmax.f32 %v6770_v14, 0.0  ;;  %v6771_v60 = vadd.f32 %v8706_v52, %v6707_v41 }
 0x486   : > { %6836 = vst [vmem:[%s10847_s16 + $0xb0] sm:$0xff] %v6804_v12  ;;  %v6805_v62 = vmax.f32 %v6773_v61, 0.0 }
 0x487   : > { %6834 = vst [vmem:[%s10847_s16 + $0xa0] sm:$0xff] %v6802_v23  ;;  %v6803_v43 = vmax.f32 %v6771_v60, 0.0  ;;  %v8204_v37 = vpop.f32.mrb[96].mxu1 }
 0x488   : > { %6837 = vst [vmem:[%s10847_s16 + $0xb8] sm:$0xff] %v6805_v62  ;;  %v6728_v10 = vadd.f32 %v8204_v37, %v10837_v27  ;;  %v6719_v0 = vpop.f32.mrb[97].mxu1 }
 0x489   : > { %6835 = vst [vmem:[%s10847_s16 + $0xa8] sm:$0xff] %v6803_v43  ;;  %v6720_v2 = vadd.f32 %v10837_v27, %v6719_v0  ;;  %v8205_v17 = vpop.f32.mrb[98].mxu1 }
 0x48a   : > { %v6776_v59 = vadd.f32 %v8707_v38, %v6728_v10  ;;  %v6731_v57 = vadd.f32 %v8205_v17, %v10837_v27  ;;  %v6722_v39 = vpop.f32.mrb[99].mxu1 }
 0x48b   : > { %v6774_v35 = vadd.f32 %v8708_v55, %v6720_v2  ;;  %v6723_v47 = vadd.f32 %v10837_v27, %v6722_v39 }
 0x48c   : > { %v6808_v56 = vmax.f32 %v6776_v59, 0.0  ;;  %v6777_v36 = vadd.f32 %v8709_v63, %v6731_v57 }
 0x48d   : > { %v6806_v1 = vmax.f32 %v6774_v35, 0.0  ;;  %v6775_v54 = vadd.f32 %v8710_v50, %v6723_v47 }
 0x48e   : > { %6840 = vst [vmem:[%s10847_s16 + $0xd0] sm:$0xff] %v6808_v56  ;;  %v6809_v7 = vmax.f32 %v6777_v36, 0.0 }
 0x48f   : > { %6838 = vst [vmem:[%s10847_s16 + $0xc0] sm:$0xff] %v6806_v1  ;;  %v6807_v44 = vmax.f32 %v6775_v54, 0.0  ;;  %v8208_v4 = vpop.f32.mrb[100].mxu1 }
 0x490   : > { %6841 = vst [vmem:[%s10847_s16 + $0xd8] sm:$0xff] %v6809_v7  ;;  %v6744_v30 = vadd.f32 %v8208_v4, %v10837_v27  ;;  %v6735_v34 = vpop.f32.mrb[101].mxu1 }
 0x491   : > { %6839 = vst [vmem:[%s10847_s16 + $0xc8] sm:$0xff] %v6807_v44  ;;  %v6736_v45 = vadd.f32 %v10837_v27, %v6735_v34  ;;  %v8209_v21 = vpop.f32.mrb[102].mxu1 }
 0x492   : > { %v6780_v31 = vadd.f32 %v8711_v28, %v6744_v30  ;;  %v6747_v42 = vadd.f32 %v8209_v21, %v10837_v27  ;;  %v6738_v5 = vpop.f32.mrb[103].mxu1 }
 0x493   : > { %v6778_v11 = vadd.f32 %v8712_v49, %v6736_v45  ;;  %v6739_v18 = vadd.f32 %v10837_v27, %v6738_v5 }
 0x494   : > { %v6812_v16 = vmax.f32 %v6780_v31, 0.0  ;;  %v6781_v46 = vadd.f32 %v8713_v20, %v6747_v42 }
 0x495   : > { %v6810_v9 = vmax.f32 %v6778_v11, 0.0  ;;  %v6779_v25 = vadd.f32 %v8714_v48, %v6739_v18 }
 0x496   : > { %6844 = vst [vmem:[%s10847_s16 + $0xf0] sm:$0xff] %v6812_v16  ;;  %v6813_v51 = vmax.f32 %v6781_v46, 0.0 }
 0x497   : > { %6842 = vst [vmem:[%s10847_s16 + $0xe0] sm:$0xff] %v6810_v9  ;;  %v6811_v26 = vmax.f32 %v6779_v25, 0.0 }
 0x498   : > { %6845 = vst [vmem:[%s10847_s16 + $0xf8] sm:$0xff] %v6813_v51 }
 0x499   : > { %6843 = vst [vmem:[%s10847_s16 + $0xe8] sm:$0xff] %v6811_v26 }
 0x49a PF: > { %s19_s11 = sadd.s32 1, %s8737_s11   ;;  %s11044_s30 = smov %s8733_s10 }
 0x49b   : > { %p16_p5 = scmp.ge.s32.totalorder %s19_s11, 4   ;;  %s11045_s10 = smov %s11047_s12 }
 0x49d   :  { %18 = sbr.rel (!%p16_p5) target bundleno = 2 (0x2), region = 95 }

</bundles_post_ra>
